<compile_context>
chip_gen: v7x
topology: tpu7x:2x2x1
jax: 0.10.0
libtpu: 0.0.40
codegen_flags: <defaults>
</compile_context>

<pallas_src>
import functools
import math

import jax
import jax.numpy as jnp
from jax.experimental import pallas as pl
from jax.experimental.pallas import tpu as pltpu

# MXU input precision: bf16 operands + f32 accumulation (preferred_element_type)
# double MXU throughput and halve HBM/VMEM bytes on v5e/v6e/v7x.  Spikes (0/1)
# are exact in bf16.  Set to jnp.float32 to recover exact-f32 matmul numerics.
_MXU_DTYPE = jnp.bfloat16

# Scoped-VMEM budget: the tiles below use only a few MiB with double buffering,
# so 48 MiB leaves ample headroom even on v7x (64 MiB physical per TensorCore).
_VMEM_LIMIT_BYTES = 48 * 1024 * 1024

_LEAKY_SLOPE = 0.1


def _round_up(x, m):
    return ((x + m - 1) // m) * m


def _pick_tiles(M, K, N):
    """Tile sizes + padded dims for the tiled GEMMs.

    (tm, tn, tk) <= (256, 256, 512): sized against v7x's 64 MiB VMEM with lots
    of headroom; tn/tk are 128/256 multiples so the 256-wide MXU (v6e/v7x)
    stays full, stores are lane-dense, and 128-alignment is optimal on v5e.
    """
    tm = min(256, _round_up(M, 8))
    Mp = _round_up(M, tm)
    Kp = _round_up(K, 128)
    tk = 512 if Kp % 512 == 0 else (256 if Kp % 256 == 0 else 128)
    Np = _round_up(N, 128)
    tn = 256 if Np % 256 == 0 else 128
    return (tm, tk, tn), (Mp, Kp, Np)


# -----------------------------------------------------------------------------
# Pallas kernels
# -----------------------------------------------------------------------------
def _gemm_epilogue_kernel(*refs, has_bias, act, k_axis):
    """Tiled GEMM with f32 accumulator scratch + fused bias / LeakyReLU(0.1).

    `k_axis` is the (last, reduction) grid axis index; the same body is used
    for the plain 3-D grid GEMM and for the 4-D (parity-batched) deconv GEMM.
    """
    if has_bias:
        x_ref, w_ref, b_ref, o_ref, acc_ref = refs
    else:
        x_ref, w_ref, o_ref, acc_ref = refs
        b_ref = None
    k = pl.program_id(k_axis)

    @pl.when(k == 0)
    def _():
        acc_ref[...] = jnp.zeros_like(acc_ref)

    acc_ref[...] += jnp.dot(x_ref[...], w_ref[...],
                            preferred_element_type=jnp.float32)

    @pl.when(k == pl.num_programs(k_axis) - 1)
    def _():
        acc = acc_ref[...]
        if b_ref is not None:
            acc = acc + b_ref[...]
        if act:
            acc = jnp.where(acc >= 0.0, acc, acc * _LEAKY_SLOPE)
        o_ref[...] = acc.astype(o_ref.dtype)


def _gemm_lif_kernel(x_ref, w_ref, mem_ref, tot_ref,
                     spike_ref, newmem_ref, newtot_ref, acc_ref, *, threshold):
    """Encoder conv GEMM with fused LIF update + total accumulation epilogue."""
    k = pl.program_id(2)

    @pl.when(k == 0)
    def _():
        acc_ref[...] = jnp.zeros_like(acc_ref)

    acc_ref[...] += jnp.dot(x_ref[...], w_ref[...],
                            preferred_element_type=jnp.float32)

    @pl.when(k == pl.num_programs(2) - 1)
    def _():
        cur = acc_ref[...]                                    # conv output (current)
        v = mem_ref[...] + cur                                # mem += current
        ex = jnp.where(v > threshold, v, 0.0)                 # F.threshold(v, thr, 0)
        newmem_ref[...] = (v - ex) * 0.9                      # reset-by-subtraction + leak
        spike_ref[...] = (ex > 1e-5).astype(spike_ref.dtype)  # SpikingNN.forward value
        newtot_ref[...] = tot_ref[...] + cur                  # mem_total += current


# -----------------------------------------------------------------------------
# Tiled GEMM wrappers
# -----------------------------------------------------------------------------
def pallas_gemm(x, w, b=None, *, act=False):
    """(M,K) x (K,N) GEMM with fused bias + LeakyReLU; pads to tile multiples."""
    M, K = x.shape
    K2, N = w.shape
    assert K == K2
    (tm, tk, tn), (Mp, Kp, Np) = _pick_tiles(M, K, N)
    xp = jnp.pad(x.astype(_MXU_DTYPE), ((0, Mp - M), (0, Kp - K)))
    wp = jnp.pad(w.astype(_MXU_DTYPE), ((0, Kp - K), (0, Np - N)))

    in_specs = [pl.BlockSpec((tm, tk), lambda i, j, k: (i, k)),
                pl.BlockSpec((tk, tn), lambda i, j, k: (k, j))]
    operands = [xp, wp]
    if b is not None:
        bp = jnp.pad(b.astype(jnp.float32), (0, Np - N)).reshape(1, Np)
        in_specs.append(pl.BlockSpec((1, tn), lambda i, j, k: (0, j)))
        operands.append(bp)

    out = pl.pallas_call(
        functools.partial(_gemm_epilogue_kernel,
                          has_bias=b is not None, act=act, k_axis=2),
        out_shape=jax.ShapeDtypeStruct((Mp, Np), jnp.float32),
        grid_spec=pltpu.PrefetchScalarGridSpec(
            num_scalar_prefetch=0,
            grid=(Mp // tm, Np // tn, Kp // tk),
            in_specs=in_specs,
            out_specs=pl.BlockSpec((tm, tn), lambda i, j, k: (i, j)),
            scratch_shapes=[pltpu.VMEM((tm, tn), jnp.float32)]),
        compiler_params=pltpu.CompilerParams(
            dimension_semantics=("parallel", "parallel", "arbitrary"),
            vmem_limit_bytes=_VMEM_LIMIT_BYTES),
    )(*operands)
    return out[:M, :N]


def pallas_batched_gemm(xp, wp, bp=None, *, act=False, tiles):
    """Batched (P,Mp,Kp) x (P,Kp,Np) GEMM (already padded) over a leading grid axis."""
    P, Mp, Kp = xp.shape
    _, _, Np = wp.shape
    tm, tk, tn = tiles

    in_specs = [pl.BlockSpec((None, tm, tk), lambda p, i, j, k: (p, i, k)),
                pl.BlockSpec((None, tk, tn), lambda p, i, j, k: (p, k, j))]
    operands = [xp, wp]
    if bp is not None:
        in_specs.append(pl.BlockSpec((1, tn), lambda p, i, j, k: (0, j)))
        operands.append(bp)

    return pl.pallas_call(
        functools.partial(_gemm_epilogue_kernel,
                          has_bias=bp is not None, act=act, k_axis=3),
        out_shape=jax.ShapeDtypeStruct((P, Mp, Np), jnp.float32),
        grid_spec=pltpu.PrefetchScalarGridSpec(
            num_scalar_prefetch=0,
            grid=(P, Mp // tm, Np // tn, Kp // tk),
            in_specs=in_specs,
            out_specs=pl.BlockSpec((None, tm, tn), lambda p, i, j, k: (p, i, j)),
            scratch_shapes=[pltpu.VMEM((tm, tn), jnp.float32)]),
        compiler_params=pltpu.CompilerParams(
            dimension_semantics=("parallel", "parallel", "parallel", "arbitrary"),
            vmem_limit_bytes=_VMEM_LIMIT_BYTES),
    )(*operands)


def conv_lif_step(x_nhwc, w_padded, dims, tiles, mem_p, tot_p, threshold):
    """Fused 3x3 / stride-2 conv (bias-free) + LIF update + total accumulation.

    mem_p / tot_p live in the padded (Mp, Np) GEMM layout for the whole time
    loop and are updated in place via input_output_aliases.  `w_padded` is the
    encoder weight already padded to (Kp, Np) bf16 (done once outside the loop).
    Returns (spike NHWC in bf16, new mem_p, new tot_p).
    """
    B = x_nhwc.shape[0]
    M, K, N = dims
    (tm, tk, tn), (Mp, Kp, Np) = tiles
    patches, OH, OW = _im2col(x_nhwc.astype(_MXU_DTYPE), 3, 3, 2, 1)
    assert patches.shape == (M, K)
    assert mem_p.shape == (Mp, Np) and tot_p.shape == (Mp, Np)
    xp = jnp.pad(patches, ((0, Mp - M), (0, Kp - K)))

    tile2d = pl.BlockSpec((tm, tn), lambda i, j, k: (i, j))
    spike, new_mem, new_tot = pl.pallas_call(
        functools.partial(_gemm_lif_kernel, threshold=float(threshold)),
        out_shape=(jax.ShapeDtypeStruct((Mp, Np), _MXU_DTYPE),    # spike
                   jax.ShapeDtypeStruct((Mp, Np), jnp.float32),   # new mem
                   jax.ShapeDtypeStruct((Mp, Np), jnp.float32)),  # new tot
        grid_spec=pltpu.PrefetchScalarGridSpec(
            num_scalar_prefetch=0,
            grid=(Mp // tm, Np // tn, Kp // tk),
            in_specs=[pl.BlockSpec((tm, tk), lambda i, j, k: (i, k)),
                      pl.BlockSpec((tk, tn), lambda i, j, k: (k, j)),
                      tile2d, tile2d],
            out_specs=(tile2d, tile2d, tile2d),
            scratch_shapes=[pltpu.VMEM((tm, tn), jnp.float32)]),
        compiler_params=pltpu.CompilerParams(
            dimension_semantics=("parallel", "parallel", "arbitrary"),
            vmem_limit_bytes=_VMEM_LIMIT_BYTES),
        input_output_aliases={2: 1, 3: 2},  # mem -> new_mem, tot -> new_tot (in place)
    )(xp, w_padded, mem_p, tot_p)

    spike_nhwc = spike[:M, :N].reshape(B, OH, OW, N)
    return spike_nhwc, new_mem, new_tot


# -----------------------------------------------------------------------------
# Conv / transposed-conv glue (im2col in JAX, GEMM in Pallas)
# -----------------------------------------------------------------------------
def _im2col(x, kh, kw, stride, padding):
    """x: (B, H, W, C) -> (B*OH*OW, kh*kw*C); patch element order (i, j, c).

    TODO(synk): patch construction still materializes the kh*kw-amplified
    im2col matrix in HBM via XLA; forming the patch slab inside the GEMM kernel
    (halo BlockSpec / strided in-kernel loads) would cut encoder HBM traffic.
    """
    B, H, W, C = x.shape
    if padding > 0:
        x = jnp.pad(x, ((0, 0), (padding, padding), (padding, padding), (0, 0)))
    OH = (H + 2 * padding - kh) // stride + 1
    OW = (W + 2 * padding - kw) // stride + 1
    cols = []
    for i in range(kh):
        for j in range(kw):
            cols.append(x[:, i:i + stride * OH:stride, j:j + stride * OW:stride, :])
    patches = jnp.concatenate(cols, axis=-1)
    return patches.reshape(B * OH * OW, kh * kw * C), OH, OW


def conv2d(x, w_mat, b_vec, k, stride, padding, act):
    B = x.shape[0]
    patches, OH, OW = _im2col(x.astype(_MXU_DTYPE), k, k, stride, padding)
    out = pallas_gemm(patches, w_mat, b_vec, act=act)
    return out.reshape(B, OH, OW, -1)


def conv_transpose2d(x, w_pq, b_vec, act):
    """ConvTranspose2d(k=4, s=2, p=1) via sub-pixel decomposition.

    Instead of zero-dilating the input (75% zeros -> 4x wasted MXU work), each
    output parity (py, qx) is a 2x2 stride-1 conv over the original input with
    its own 2x2 sub-kernel.  The 4 parity GEMMs are batched into ONE Pallas
    call over a leading parity grid axis, then interleaved into the 2x output.
    """
    B, H, W, Cin = x.shape
    Cout = w_pq.shape[-1]
    M, K, N = B * H * W, 4 * Cin, Cout
    (tm, tk, tn), (Mp, Kp, Np) = _pick_tiles(M, K, N)

    xpad = jnp.pad(x.astype(_MXU_DTYPE), ((0, 0), (1, 1), (1, 1), (0, 0)))
    slabs = []
    for py in (0, 1):
        for qx in (0, 1):
            cols = [xpad[:, py + dy:py + dy + H, qx + dx:qx + dx + W, :]
                    for dy in (0, 1) for dx in (0, 1)]
            slabs.append(jnp.concatenate(cols, axis=-1).reshape(M, K))
    patches = jnp.pad(jnp.stack(slabs, axis=0),
                      ((0, 0), (0, Mp - M), (0, Kp - K)))              # (4, Mp, Kp)
    weights = jnp.pad(w_pq.reshape(4, K, N).astype(_MXU_DTYPE),
                      ((0, 0), (0, Kp - K), (0, Np - N)))              # (4, Kp, Np)
    bias = None
    if b_vec is not None:
        bias = jnp.pad(b_vec.astype(jnp.float32), (0, Np - N)).reshape(1, Np)

    out = pallas_batched_gemm(patches, weights, bias, act=act, tiles=(tm, tk, tn))
    o = out[:, :M, :N].reshape(2, 2, B, H, W, N)
    o = jnp.transpose(o, (2, 3, 0, 4, 1, 5)).reshape(B, 2 * H, 2 * W, N)
    return o


def _crop_like(x, target):
    if x.shape[1:3] == target.shape[1:3]:
        return x
    return x[:, :target.shape[1], :target.shape[2], :]


# -----------------------------------------------------------------------------
# Deterministic parameter construction (matches the module's __init__ init rule)
# -----------------------------------------------------------------------------
def _conv_weight(key, cin, cout, k):
    std = math.sqrt(3.0 / (k * k * cin))
    w = jax.random.normal(key, (cout, cin, k, k), jnp.float32) * std  # PyTorch Conv2d layout
    # -> (k*k*cin, cout) matching im2col (i, j, c) row ordering
    return jnp.transpose(w, (2, 3, 1, 0)).reshape(k * k * cin, cout)


def _deconv_weight(key, cin, cout, k=4):
    std = math.sqrt(3.0 / (k * k * cin))
    wt = jax.random.normal(key, (cin, cout, k, k), jnp.float32) * std  # ConvTranspose2d layout
    # Sub-pixel decomposition: for output parity (py, qx) the contributing taps
    # are W[:, :, 3-py-2*dy, 3-qx-2*dx] for dy, dx in {0,1}; rows follow the
    # (dy, dx, ci) patch ordering used in conv_transpose2d.
    rows = []
    for py in (0, 1):
        col = []
        for qx in (0, 1):
            taps = [wt[:, :, 3 - py - 2 * dy, 3 - qx - 2 * dx]
                    for dy in (0, 1) for dx in (0, 1)]
            col.append(jnp.concatenate(taps, axis=0))          # (4*cin, cout)
        rows.append(jnp.stack(col, axis=0))                    # (2, 4*cin, cout)
    return jnp.stack(rows, axis=0)                             # (2, 2, 4*cin, cout)


def init_params(key):
    convs = [
        ("conv1", 4, 64, 3, False), ("conv2", 64, 128, 3, False),
        ("conv3", 128, 256, 3, False), ("conv4", 256, 512, 3, False),
        ("conv_r11", 512, 512, 3, True), ("conv_r12", 512, 512, 3, True),
        ("conv_r21", 512, 512, 3, True), ("conv_r22", 512, 512, 3, True),
        ("predict_flow4", 32, 2, 1, False), ("predict_flow3", 32, 2, 1, False),
        ("predict_flow2", 32, 2, 1, False), ("predict_flow1", 32, 2, 1, False),
    ]
    deconvs = [
        ("deconv3", 512, 128, True), ("deconv2", 386, 64, True), ("deconv1", 194, 4, True),
        ("up4to3", 512, 32, False), ("up3to2", 386, 32, False),
        ("up2to1", 194, 32, False), ("up1to0", 70, 32, False),
    ]
    keys = jax.random.split(key, len(convs) + len(deconvs))
    params = {}
    i = 0
    for name, cin, cout, k, has_bias in convs:
        params[name + "_w"] = _conv_weight(keys[i], cin, cout, k)
        if has_bias:
            params[name + "_b"] = jnp.zeros((cout,), jnp.float32)  # constant_(bias, 0)
        i += 1
    for name, cin, cout, has_bias in deconvs:
        params[name + "_w"] = _deconv_weight(keys[i], cin, cout, 4)
        if has_bias:
            params[name + "_b"] = jnp.zeros((cout,), jnp.float32)
        i += 1
    return params


# -----------------------------------------------------------------------------
# Forward pass (mirrors SpikingFlowNet.forward)
# -----------------------------------------------------------------------------
def spiking_flownet_forward(params, x, sp_threshold):
    # x: (B, 4, H, W, T) float32 (NCHW + time axis last), exactly like PyTorch.
    B, C, H, W, T = x.shape
    thr = float(sp_threshold)

    # Encoder output spatial sizes, GEMM dims and tile/pad geometry (k=3, s=2, p=1).
    in_ch, out_ch = [4, 64, 128, 256], [64, 128, 256, 512]
    enc_hw, enc_dims, enc_tiles = [], [], []
    h, w = H, W
    for l in range(4):
        h = (h + 2 - 3) // 2 + 1
        w = (w + 2 - 3) // 2 + 1
        enc_hw.append((h, w))
        M, K, N = B * h * w, 9 * in_ch[l], out_ch[l]
        enc_dims.append((M, K, N))
        enc_tiles.append(_pick_tiles(M, K, N))

    # Encoder weights padded to the lane-dense GEMM layout ONCE (reused every timestep).
    wenc_p = []
    for l, name in enumerate(["conv1_w", "conv2_w", "conv3_w", "conv4_w"]):
        _, K, N = enc_dims[l]
        _, (_, Kp, Np) = enc_tiles[l]
        wenc_p.append(jnp.pad(params[name].astype(_MXU_DTYPE),
                              ((0, Kp - K), (0, Np - N))))

    # LIF membrane + total state kept in padded lane-dense (Mp, Np) GEMM layout
    # for the whole time loop (updated in place inside the fused kernel).
    mems = [jnp.zeros((t[1][0], t[1][2]), jnp.float32) for t in enc_tiles]
    tots = [jnp.zeros((t[1][0], t[1][2]), jnp.float32) for t in enc_tiles]

    for t in range(T):
        spk = jnp.transpose(x[..., t], (0, 2, 3, 1))  # NCHW -> NHWC
        for l in range(4):
            spk, mems[l], tots[l] = conv_lif_step(
                spk, wenc_p[l], enc_dims[l], enc_tiles[l], mems[l], tots[l], thr)

    def tot_to_nhwc(layer):
        M, _, N = enc_dims[layer]
        OH, OW = enc_hw[layer]
        return tots[layer][:M, :N].reshape(B, OH, OW, N)

    out_conv1, out_conv2, out_conv3, out_conv4 = (tot_to_nhwc(l) for l in range(4))

    r11 = conv2d(out_conv4, params["conv_r11_w"], params["conv_r11_b"], 3, 1, 1, act=True)
    r12 = conv2d(r11, params["conv_r12_w"], params["conv_r12_b"], 3, 1, 1, act=True) + out_conv4
    r21 = conv2d(r12, params["conv_r21_w"], params["conv_r21_b"], 3, 1, 1, act=True)
    r22 = conv2d(r21, params["conv_r22_w"], params["conv_r22_b"], 3, 1, 1, act=True) + r12

    # predict_flow* is a bias-free 1x1 conv applied directly to the output of a
    # bias-free, activation-free up*to* deconv, so the two linear maps compose
    # exactly: flow = deconv(x; W_up @ W_pf).  This removes 4 GEMM launches and
    # the full-resolution 32-channel intermediate tensors.
    def fused_flow_w(up_name, pf_name):
        return jnp.einsum("pqkc,cf->pqkf", params[up_name], params[pf_name])

    flow4 = conv_transpose2d(r22, fused_flow_w("up4to3_w", "predict_flow4_w"), None, act=False)
    flow4_up = _crop_like(flow4, out_conv3)
    out_deconv3 = _crop_like(
        conv_transpose2d(r22, params["deconv3_w"], params["deconv3_b"], act=True), out_conv3)
    concat3 = jnp.concatenate([out_conv3, out_deconv3, flow4_up], axis=-1)

    flow3 = conv_transpose2d(concat3, fused_flow_w("up3to2_w", "predict_flow3_w"), None, act=False)
    flow3_up = _crop_like(flow3, out_conv2)
    out_deconv2 = _crop_like(
        conv_transpose2d(concat3, params["deconv2_w"], params["deconv2_b"], act=True), out_conv2)
    concat2 = jnp.concatenate([out_conv2, out_deconv2, flow3_up], axis=-1)

    flow2 = conv_transpose2d(concat2, fused_flow_w("up2to1_w", "predict_flow2_w"), None, act=False)
    flow2_up = _crop_like(flow2, out_conv1)
    out_deconv1 = _crop_like(
        conv_transpose2d(concat2, params["deconv1_w"], params["deconv1_b"], act=True), out_conv1)
    concat1 = jnp.concatenate([out_conv1, out_deconv1, flow2_up], axis=-1)

    flow1 = conv_transpose2d(concat1, fused_flow_w("up1to0_w", "predict_flow1_w"), None, act=False)

    to_nchw = lambda a: jnp.transpose(a, (0, 3, 1, 2))
    return to_nchw(flow1), to_nchw(flow2), to_nchw(flow3), to_nchw(flow4)


# -----------------------------------------------------------------------------
# Main
# -----------------------------------------------------------------------------
if __name__ == "__main__":
    key = jax.random.PRNGKey(0)
    kx, kp = jax.random.split(key)

    B, C, H, W, T = 2, 4, 16, 16, 4
    x = jax.random.normal(kx, (B, C, H, W, T), jnp.float32)
    params = init_params(kp)
    sp_threshold = 0.75

    fwd = jax.jit(functools.partial(spiking_flownet_forward, sp_threshold=sp_threshold))
    flow1, flow2, flow3, flow4 = fwd(params, x)
    jax.block_until_ready((flow1, flow2, flow3, flow4))

    assert flow1.shape == (B, 2, H, W)
    assert flow2.shape == (B, 2, H // 2, W // 2)
    assert flow3.shape == (B, 2, H // 4, W // 4)
    assert flow4.shape == (B, 2, H // 8, W // 8)
    for f in (flow1, flow2, flow3, flow4):
        assert bool(jnp.all(jnp.isfinite(f)))
    print("KERNEL_OK")
</pallas_src>

<mosaic_0001>
module attributes {stable_mosaic.version = 11 : i64} {
  func.func @_gemm_lif_kernel(%arg0: i32, %arg1: i32, %arg2: i32, %arg3: memref<128x128xbf16, #tpu.memory_space<vmem>>, %arg4: memref<128x128xbf16, #tpu.memory_space<vmem>>, %arg5: memref<128x128xf32, #tpu.memory_space<vmem>>, %arg6: memref<128x128xf32, #tpu.memory_space<vmem>>, %arg7: memref<128x128xbf16, #tpu.memory_space<vmem>>, %arg8: memref<128x128xf32, #tpu.memory_space<vmem>>, %arg9: memref<128x128xf32, #tpu.memory_space<vmem>>, %arg10: memref<128x128xf32, #tpu.memory_space<vmem>>) attributes {dimension_semantics = [#tpu.dimension_semantics<parallel>, #tpu.dimension_semantics<parallel>, #tpu.dimension_semantics<arbitrary>], iteration_bounds = array<i64: 1, 1, 1>, scalar_prefetch = 0 : i64, scratch_operands = 1 : i64, tpu.core_type = #tpu.core_type<tc>, window_params = [{transform_indices = @transform_0, window_bounds = array<i64: 128, 128>}, {transform_indices = @transform_1, window_bounds = array<i64: 128, 128>}, {transform_indices = @transform_2, window_bounds = array<i64: 128, 128>}, {transform_indices = @transform_3, window_bounds = array<i64: 128, 128>}, {transform_indices = @transform_4, window_bounds = array<i64: 128, 128>}, {transform_indices = @transform_5, window_bounds = array<i64: 128, 128>}, {transform_indices = @transform_6, window_bounds = array<i64: 128, 128>}]} {
    %c0_i32 = arith.constant 0 : i32
    %0 = arith.cmpi eq, %arg2, %c0_i32 : i32
    %1 = arith.extui %0 : i1 to i32
    %c0_i32_0 = arith.constant 0 : i32
    %2 = arith.cmpi ne, %1, %c0_i32_0 : i32
    scf.if %2 {
      %cst_10 = arith.constant 0.000000e+00 : f32
      %12 = vector.broadcast %cst_10 : f32 to vector<128x128xf32>
      %c0_11 = arith.constant 0 : index
      %c0_12 = arith.constant 0 : index
      %13 = vector.load %arg10[%c0_11, %c0_12] : memref<128x128xf32, #tpu.memory_space<vmem>>, vector<128x128xf32>
      tpu.vector_store %arg10[%c0_11, %c0_12], %12 {strides = array<i32>} : memref<128x128xf32, #tpu.memory_space<vmem>>, vector<128x128xf32>,
    } else {
    }
    %c0 = arith.constant 0 : index
    %c0_1 = arith.constant 0 : index
    %3 = vector.load %arg10[%c0, %c0_1] : memref<128x128xf32, #tpu.memory_space<vmem>>, vector<128x128xf32>
    %c0_2 = arith.constant 0 : index
    %c0_3 = arith.constant 0 : index
    %4 = vector.load %arg3[%c0_2, %c0_3] : memref<128x128xbf16, #tpu.memory_space<vmem>>, vector<128x128xbf16>
    %c0_4 = arith.constant 0 : index
    %c0_5 = arith.constant 0 : index
    %5 = vector.load %arg4[%c0_4, %c0_5] : memref<128x128xbf16, #tpu.memory_space<vmem>>, vector<128x128xbf16>
    %cst = arith.constant dense<0.000000e+00> : vector<128x128xf32>
    %6 = tpu.matmul %4, %5, %cst {dimension_numbers = #tpu.dot_dimension_numbers<[1], [0], [0], [1], [0, 0, 1, 1], [], []>} : vector<128x128xbf16>, vector<128x128xbf16>, vector<128x128xf32> -> vector<128x128xf32>
    %7 = arith.addf %3, %6 : vector<128x128xf32>
    %c0_6 = arith.constant 0 : index
    %c0_7 = arith.constant 0 : index
    %8 = vector.load %arg10[%c0_6, %c0_7] : memref<128x128xf32, #tpu.memory_space<vmem>>, vector<128x128xf32>
    tpu.vector_store %arg10[%c0_6, %c0_7], %7 {strides = array<i32>} : memref<128x128xf32, #tpu.memory_space<vmem>>, vector<128x128xf32>,
    %c0_i32_8 = arith.constant 0 : i32
    %9 = arith.cmpi eq, %arg2, %c0_i32_8 : i32
    %10 = arith.extui %9 : i1 to i32
    %c0_i32_9 = arith.constant 0 : i32
    %11 = arith.cmpi ne, %10, %c0_i32_9 : i32
    scf.if %11 {
      %c0_10 = arith.constant 0 : index
      %c0_11 = arith.constant 0 : index
      %12 = vector.load %arg10[%c0_10, %c0_11] : memref<128x128xf32, #tpu.memory_space<vmem>>, vector<128x128xf32>
      %c0_12 = arith.constant 0 : index
      %c0_13 = arith.constant 0 : index
      %13 = vector.load %arg5[%c0_12, %c0_13] : memref<128x128xf32, #tpu.memory_space<vmem>>, vector<128x128xf32>
      %14 = arith.addf %13, %12 : vector<128x128xf32>
      %cst_14 = arith.constant 7.500000e-01 : f32
      %15 = vector.broadcast %cst_14 : f32 to vector<128x128xf32>
      %16 = arith.cmpf ogt, %14, %15 : vector<128x128xf32>
      %cst_15 = arith.constant 0.000000e+00 : f32
      %17 = vector.broadcast %cst_15 : f32 to vector<128x128xf32>
      %18 = arith.select %16, %14, %17 : vector<128x128xi1>, vector<128x128xf32>
      %19 = arith.subf %14, %18 : vector<128x128xf32>
      %cst_16 = arith.constant 0.899999976 : f32
      %20 = vector.broadcast %cst_16 : f32 to vector<128x128xf32>
      %21 = arith.mulf %19, %20 : vector<128x128xf32>
      %c0_17 = arith.constant 0 : index
      %c0_18 = arith.constant 0 : index
      %22 = vector.load %arg8[%c0_17, %c0_18] : memref<128x128xf32, #tpu.memory_space<vmem>>, vector<128x128xf32>
      tpu.vector_store %arg8[%c0_17, %c0_18], %21 {strides = array<i32>} : memref<128x128xf32, #tpu.memory_space<vmem>>, vector<128x128xf32>,
      %cst_19 = arith.constant 9.99999974E-6 : f32
      %23 = vector.broadcast %cst_19 : f32 to vector<128x128xf32>
      %24 = arith.cmpf ogt, %18, %23 : vector<128x128xf32>
      %25 = arith.extui %24 : vector<128x128xi1> to vector<128x128xi32>
      %26 = arith.sitofp %25 : vector<128x128xi32> to vector<128x128xf32>
      %27 = arith.truncf %26 : vector<128x128xf32> to vector<128x128xbf16>
      %c0_20 = arith.constant 0 : index
      %c0_21 = arith.constant 0 : index
      %28 = vector.load %arg7[%c0_20, %c0_21] : memref<128x128xbf16, #tpu.memory_space<vmem>>, vector<128x128xbf16>
      tpu.vector_store %arg7[%c0_20, %c0_21], %27 {strides = array<i32>} : memref<128x128xbf16, #tpu.memory_space<vmem>>, vector<128x128xbf16>,
      %c0_22 = arith.constant 0 : index
      %c0_23 = arith.constant 0 : index
      %29 = vector.load %arg6[%c0_22, %c0_23] : memref<128x128xf32, #tpu.memory_space<vmem>>, vector<128x128xf32>
      %30 = arith.addf %29, %12 : vector<128x128xf32>
      %c0_24 = arith.constant 0 : index
      %c0_25 = arith.constant 0 : index
      %31 = vector.load %arg9[%c0_24, %c0_25] : memref<128x128xf32, #tpu.memory_space<vmem>>, vector<128x128xf32>
      tpu.vector_store %arg9[%c0_24, %c0_25], %30 {strides = array<i32>} : memref<128x128xf32, #tpu.memory_space<vmem>>, vector<128x128xf32>,
    } else {
    }
    return
  }
  func.func @transform_0(%arg0: i32, %arg1: i32, %arg2: i32) -> (i32, i32) {
    %c0_i32 = arith.constant 0 : i32
    return %arg0, %arg2 : i32, i32
  }
  func.func @transform_1(%arg0: i32, %arg1: i32, %arg2: i32) -> (i32, i32) {
    %c0_i32 = arith.constant 0 : i32
    return %arg2, %arg1 : i32, i32
  }
  func.func @transform_2(%arg0: i32, %arg1: i32, %arg2: i32) -> (i32, i32) {
    %c0_i32 = arith.constant 0 : i32
    return %arg0, %arg1 : i32, i32
  }
  func.func @transform_3(%arg0: i32, %arg1: i32, %arg2: i32) -> (i32, i32) {
    %c0_i32 = arith.constant 0 : i32
    return %arg0, %arg1 : i32, i32
  }
  func.func @transform_4(%arg0: i32, %arg1: i32, %arg2: i32) -> (i32, i32) {
    %c0_i32 = arith.constant 0 : i32
    return %arg0, %arg1 : i32, i32
  }
  func.func @transform_5(%arg0: i32, %arg1: i32, %arg2: i32) -> (i32, i32) {
    %c0_i32 = arith.constant 0 : i32
    return %arg0, %arg1 : i32, i32
  }
  func.func @transform_6(%arg0: i32, %arg1: i32, %arg2: i32) -> (i32, i32) {
    %c0_i32 = arith.constant 0 : i32
    return %arg0, %arg1 : i32, i32
  }
}

module attributes {stable_mosaic.version = 11 : i64} {
  func.func @_gemm_lif_kernel(%arg0: i32, %arg1: i32, %arg2: i32, %arg3: memref<32x128xbf16, #tpu.memory_space<vmem>>, %arg4: memref<128x128xbf16, #tpu.memory_space<vmem>>, %arg5: memref<32x128xf32, #tpu.memory_space<vmem>>, %arg6: memref<32x128xf32, #tpu.memory_space<vmem>>, %arg7: memref<32x128xbf16, #tpu.memory_space<vmem>>, %arg8: memref<32x128xf32, #tpu.memory_space<vmem>>, %arg9: memref<32x128xf32, #tpu.memory_space<vmem>>, %arg10: memref<32x128xf32, #tpu.memory_space<vmem>>) attributes {dimension_semantics = [#tpu.dimension_semantics<parallel>, #tpu.dimension_semantics<parallel>, #tpu.dimension_semantics<arbitrary>], iteration_bounds = array<i64: 1, 1, 5>, scalar_prefetch = 0 : i64, scratch_operands = 1 : i64, tpu.core_type = #tpu.core_type<tc>, window_params = [{transform_indices = @transform_0, window_bounds = array<i64: 32, 128>}, {transform_indices = @transform_1, window_bounds = array<i64: 128, 128>}, {transform_indices = @transform_2, window_bounds = array<i64: 32, 128>}, {transform_indices = @transform_3, window_bounds = array<i64: 32, 128>}, {transform_indices = @transform_4, window_bounds = array<i64: 32, 128>}, {transform_indices = @transform_5, window_bounds = array<i64: 32, 128>}, {transform_indices = @transform_6, window_bounds = array<i64: 32, 128>}]} {
    %c0_i32 = arith.constant 0 : i32
    %0 = arith.cmpi eq, %arg2, %c0_i32 : i32
    %1 = arith.extui %0 : i1 to i32
    %c0_i32_0 = arith.constant 0 : i32
    %2 = arith.cmpi ne, %1, %c0_i32_0 : i32
    scf.if %2 {
      %cst_9 = arith.constant 0.000000e+00 : f32
      %12 = vector.broadcast %cst_9 : f32 to vector<32x128xf32>
      %c0_10 = arith.constant 0 : index
      %c0_11 = arith.constant 0 : index
      %13 = vector.load %arg10[%c0_10, %c0_11] : memref<32x128xf32, #tpu.memory_space<vmem>>, vector<32x128xf32>
      tpu.vector_store %arg10[%c0_10, %c0_11], %12 {strides = array<i32>} : memref<32x128xf32, #tpu.memory_space<vmem>>, vector<32x128xf32>,
    } else {
    }
    %c0 = arith.constant 0 : index
    %c0_1 = arith.constant 0 : index
    %3 = vector.load %arg10[%c0, %c0_1] : memref<32x128xf32, #tpu.memory_space<vmem>>, vector<32x128xf32>
    %c0_2 = arith.constant 0 : index
    %c0_3 = arith.constant 0 : index
    %4 = vector.load %arg3[%c0_2, %c0_3] : memref<32x128xbf16, #tpu.memory_space<vmem>>, vector<32x128xbf16>
    %c0_4 = arith.constant 0 : index
    %c0_5 = arith.constant 0 : index
    %5 = vector.load %arg4[%c0_4, %c0_5] : memref<128x128xbf16, #tpu.memory_space<vmem>>, vector<128x128xbf16>
    %cst = arith.constant dense<0.000000e+00> : vector<32x128xf32>
    %6 = tpu.matmul %4, %5, %cst {dimension_numbers = #tpu.dot_dimension_numbers<[1], [0], [0], [1], [0, 0, 1, 1], [], []>} : vector<32x128xbf16>, vector<128x128xbf16>, vector<32x128xf32> -> vector<32x128xf32>
    %7 = arith.addf %3, %6 : vector<32x128xf32>
    %c0_6 = arith.constant 0 : index
    %c0_7 = arith.constant 0 : index
    %8 = vector.load %arg10[%c0_6, %c0_7] : memref<32x128xf32, #tpu.memory_space<vmem>>, vector<32x128xf32>
    tpu.vector_store %arg10[%c0_6, %c0_7], %7 {strides = array<i32>} : memref<32x128xf32, #tpu.memory_space<vmem>>, vector<32x128xf32>,
    %c4_i32 = arith.constant 4 : i32
    %9 = arith.cmpi eq, %arg2, %c4_i32 : i32
    %10 = arith.extui %9 : i1 to i32
    %c0_i32_8 = arith.constant 0 : i32
    %11 = arith.cmpi ne, %10, %c0_i32_8 : i32
    scf.if %11 {
      %c0_9 = arith.constant 0 : index
      %c0_10 = arith.constant 0 : index
      %12 = vector.load %arg10[%c0_9, %c0_10] : memref<32x128xf32, #tpu.memory_space<vmem>>, vector<32x128xf32>
      %c0_11 = arith.constant 0 : index
      %c0_12 = arith.constant 0 : index
      %13 = vector.load %arg5[%c0_11, %c0_12] : memref<32x128xf32, #tpu.memory_space<vmem>>, vector<32x128xf32>
      %14 = arith.addf %13, %12 : vector<32x128xf32>
      %cst_13 = arith.constant 7.500000e-01 : f32
      %15 = vector.broadcast %cst_13 : f32 to vector<32x128xf32>
      %16 = arith.cmpf ogt, %14, %15 : vector<32x128xf32>
      %cst_14 = arith.constant 0.000000e+00 : f32
      %17 = vector.broadcast %cst_14 : f32 to vector<32x128xf32>
      %18 = arith.select %16, %14, %17 : vector<32x128xi1>, vector<32x128xf32>
      %19 = arith.subf %14, %18 : vector<32x128xf32>
      %cst_15 = arith.constant 0.899999976 : f32
      %20 = vector.broadcast %cst_15 : f32 to vector<32x128xf32>
      %21 = arith.mulf %19, %20 : vector<32x128xf32>
      %c0_16 = arith.constant 0 : index
      %c0_17 = arith.constant 0 : index
      %22 = vector.load %arg8[%c0_16, %c0_17] : memref<32x128xf32, #tpu.memory_space<vmem>>, vector<32x128xf32>
      tpu.vector_store %arg8[%c0_16, %c0_17], %21 {strides = array<i32>} : memref<32x128xf32, #tpu.memory_space<vmem>>, vector<32x128xf32>,
      %cst_18 = arith.constant 9.99999974E-6 : f32
      %23 = vector.broadcast %cst_18 : f32 to vector<32x128xf32>
      %24 = arith.cmpf ogt, %18, %23 : vector<32x128xf32>
      %25 = arith.extui %24 : vector<32x128xi1> to vector<32x128xi32>
      %26 = arith.sitofp %25 : vector<32x128xi32> to vector<32x128xf32>
      %27 = arith.truncf %26 : vector<32x128xf32> to vector<32x128xbf16>
      %c0_19 = arith.constant 0 : index
      %c0_20 = arith.constant 0 : index
      %28 = vector.load %arg7[%c0_19, %c0_20] : memref<32x128xbf16, #tpu.memory_space<vmem>>, vector<32x128xbf16>
      tpu.vector_store %arg7[%c0_19, %c0_20], %27 {strides = array<i32>} : memref<32x128xbf16, #tpu.memory_space<vmem>>, vector<32x128xbf16>,
      %c0_21 = arith.constant 0 : index
      %c0_22 = arith.constant 0 : index
      %29 = vector.load %arg6[%c0_21, %c0_22] : memref<32x128xf32, #tpu.memory_space<vmem>>, vector<32x128xf32>
      %30 = arith.addf %29, %12 : vector<32x128xf32>
      %c0_23 = arith.constant 0 : index
      %c0_24 = arith.constant 0 : index
      %31 = vector.load %arg9[%c0_23, %c0_24] : memref<32x128xf32, #tpu.memory_space<vmem>>, vector<32x128xf32>
      tpu.vector_store %arg9[%c0_23, %c0_24], %30 {strides = array<i32>} : memref<32x128xf32, #tpu.memory_space<vmem>>, vector<32x128xf32>,
    } else {
    }
    return
  }
  func.func @transform_0(%arg0: i32, %arg1: i32, %arg2: i32) -> (i32, i32) {
    %c0_i32 = arith.constant 0 : i32
    return %arg0, %arg2 : i32, i32
  }
  func.func @transform_1(%arg0: i32, %arg1: i32, %arg2: i32) -> (i32, i32) {
    %c0_i32 = arith.constant 0 : i32
    return %arg2, %arg1 : i32, i32
  }
  func.func @transform_2(%arg0: i32, %arg1: i32, %arg2: i32) -> (i32, i32) {
    %c0_i32 = arith.constant 0 : i32
    return %arg0, %arg1 : i32, i32
  }
  func.func @transform_3(%arg0: i32, %arg1: i32, %arg2: i32) -> (i32, i32) {
    %c0_i32 = arith.constant 0 : i32
    return %arg0, %arg1 : i32, i32
  }
  func.func @transform_4(%arg0: i32, %arg1: i32, %arg2: i32) -> (i32, i32) {
    %c0_i32 = arith.constant 0 : i32
    return %arg0, %arg1 : i32, i32
  }
  func.func @transform_5(%arg0: i32, %arg1: i32, %arg2: i32) -> (i32, i32) {
    %c0_i32 = arith.constant 0 : i32
    return %arg0, %arg1 : i32, i32
  }
  func.func @transform_6(%arg0: i32, %arg1: i32, %arg2: i32) -> (i32, i32) {
    %c0_i32 = arith.constant 0 : i32
    return %arg0, %arg1 : i32, i32
  }
}

module attributes {stable_mosaic.version = 11 : i64} {
  func.func @_gemm_lif_kernel(%arg0: i32, %arg1: i32, %arg2: i32, %arg3: memref<8x128xbf16, #tpu.memory_space<vmem>>, %arg4: memref<128x256xbf16, #tpu.memory_space<vmem>>, %arg5: memref<8x256xf32, #tpu.memory_space<vmem>>, %arg6: memref<8x256xf32, #tpu.memory_space<vmem>>, %arg7: memref<8x256xbf16, #tpu.memory_space<vmem>>, %arg8: memref<8x256xf32, #tpu.memory_space<vmem>>, %arg9: memref<8x256xf32, #tpu.memory_space<vmem>>, %arg10: memref<8x256xf32, #tpu.memory_space<vmem>>) attributes {dimension_semantics = [#tpu.dimension_semantics<parallel>, #tpu.dimension_semantics<parallel>, #tpu.dimension_semantics<arbitrary>], iteration_bounds = array<i64: 1, 1, 9>, scalar_prefetch = 0 : i64, scratch_operands = 1 : i64, tpu.core_type = #tpu.core_type<tc>, window_params = [{transform_indices = @transform_0, window_bounds = array<i64: 8, 128>}, {transform_indices = @transform_1, window_bounds = array<i64: 128, 256>}, {transform_indices = @transform_2, window_bounds = array<i64: 8, 256>}, {transform_indices = @transform_3, window_bounds = array<i64: 8, 256>}, {transform_indices = @transform_4, window_bounds = array<i64: 8, 256>}, {transform_indices = @transform_5, window_bounds = array<i64: 8, 256>}, {transform_indices = @transform_6, window_bounds = array<i64: 8, 256>}]} {
    %c0_i32 = arith.constant 0 : i32
    %0 = arith.cmpi eq, %arg2, %c0_i32 : i32
    %1 = arith.extui %0 : i1 to i32
    %c0_i32_0 = arith.constant 0 : i32
    %2 = arith.cmpi ne, %1, %c0_i32_0 : i32
    scf.if %2 {
      %cst_9 = arith.constant 0.000000e+00 : f32
      %12 = vector.broadcast %cst_9 : f32 to vector<8x256xf32>
      %c0_10 = arith.constant 0 : index
      %c0_11 = arith.constant 0 : index
      %13 = vector.load %arg10[%c0_10, %c0_11] : memref<8x256xf32, #tpu.memory_space<vmem>>, vector<8x256xf32>
      tpu.vector_store %arg10[%c0_10, %c0_11], %12 {strides = array<i32>} : memref<8x256xf32, #tpu.memory_space<vmem>>, vector<8x256xf32>,
    } else {
    }
    %c0 = arith.constant 0 : index
    %c0_1 = arith.constant 0 : index
    %3 = vector.load %arg10[%c0, %c0_1] : memref<8x256xf32, #tpu.memory_space<vmem>>, vector<8x256xf32>
    %c0_2 = arith.constant 0 : index
    %c0_3 = arith.constant 0 : index
    %4 = vector.load %arg3[%c0_2, %c0_3] : memref<8x128xbf16, #tpu.memory_space<vmem>>, vector<8x128xbf16>
    %c0_4 = arith.constant 0 : index
    %c0_5 = arith.constant 0 : index
    %5 = vector.load %arg4[%c0_4, %c0_5] : memref<128x256xbf16, #tpu.memory_space<vmem>>, vector<128x256xbf16>
    %cst = arith.constant dense<0.000000e+00> : vector<8x256xf32>
    %6 = tpu.matmul %4, %5, %cst {dimension_numbers = #tpu.dot_dimension_numbers<[1], [0], [0], [1], [0, 0, 1, 1], [], []>} : vector<8x128xbf16>, vector<128x256xbf16>, vector<8x256xf32> -> vector<8x256xf32>
    %7 = arith.addf %3, %6 : vector<8x256xf32>
    %c0_6 = arith.constant 0 : index
    %c0_7 = arith.constant 0 : index
    %8 = vector.load %arg10[%c0_6, %c0_7] : memref<8x256xf32, #tpu.memory_space<vmem>>, vector<8x256xf32>
    tpu.vector_store %arg10[%c0_6, %c0_7], %7 {strides = array<i32>} : memref<8x256xf32, #tpu.memory_space<vmem>>, vector<8x256xf32>,
    %c8_i32 = arith.constant 8 : i32
    %9 = arith.cmpi eq, %arg2, %c8_i32 : i32
    %10 = arith.extui %9 : i1 to i32
    %c0_i32_8 = arith.constant 0 : i32
    %11 = arith.cmpi ne, %10, %c0_i32_8 : i32
    scf.if %11 {
      %c0_9 = arith.constant 0 : index
      %c0_10 = arith.constant 0 : index
      %12 = vector.load %arg10[%c0_9, %c0_10] : memref<8x256xf32, #tpu.memory_space<vmem>>, vector<8x256xf32>
      %c0_11 = arith.constant 0 : index
      %c0_12 = arith.constant 0 : index
      %13 = vector.load %arg5[%c0_11, %c0_12] : memref<8x256xf32, #tpu.memory_space<vmem>>, vector<8x256xf32>
      %14 = arith.addf %13, %12 : vector<8x256xf32>
      %cst_13 = arith.constant 7.500000e-01 : f32
      %15 = vector.broadcast %cst_13 : f32 to vector<8x256xf32>
      %16 = arith.cmpf ogt, %14, %15 : vector<8x256xf32>
      %cst_14 = arith.constant 0.000000e+00 : f32
      %17 = vector.broadcast %cst_14 : f32 to vector<8x256xf32>
      %18 = arith.select %16, %14, %17 : vector<8x256xi1>, vector<8x256xf32>
      %19 = arith.subf %14, %18 : vector<8x256xf32>
      %cst_15 = arith.constant 0.899999976 : f32
      %20 = vector.broadcast %cst_15 : f32 to vector<8x256xf32>
      %21 = arith.mulf %19, %20 : vector<8x256xf32>
      %c0_16 = arith.constant 0 : index
      %c0_17 = arith.constant 0 : index
      %22 = vector.load %arg8[%c0_16, %c0_17] : memref<8x256xf32, #tpu.memory_space<vmem>>, vector<8x256xf32>
      tpu.vector_store %arg8[%c0_16, %c0_17], %21 {strides = array<i32>} : memref<8x256xf32, #tpu.memory_space<vmem>>, vector<8x256xf32>,
      %cst_18 = arith.constant 9.99999974E-6 : f32
      %23 = vector.broadcast %cst_18 : f32 to vector<8x256xf32>
      %24 = arith.cmpf ogt, %18, %23 : vector<8x256xf32>
      %25 = arith.extui %24 : vector<8x256xi1> to vector<8x256xi32>
      %26 = arith.sitofp %25 : vector<8x256xi32> to vector<8x256xf32>
      %27 = arith.truncf %26 : vector<8x256xf32> to vector<8x256xbf16>
      %c0_19 = arith.constant 0 : index
      %c0_20 = arith.constant 0 : index
      %28 = vector.load %arg7[%c0_19, %c0_20] : memref<8x256xbf16, #tpu.memory_space<vmem>>, vector<8x256xbf16>
      tpu.vector_store %arg7[%c0_19, %c0_20], %27 {strides = array<i32>} : memref<8x256xbf16, #tpu.memory_space<vmem>>, vector<8x256xbf16>,
      %c0_21 = arith.constant 0 : index
      %c0_22 = arith.constant 0 : index
      %29 = vector.load %arg6[%c0_21, %c0_22] : memref<8x256xf32, #tpu.memory_space<vmem>>, vector<8x256xf32>
      %30 = arith.addf %29, %12 : vector<8x256xf32>
      %c0_23 = arith.constant 0 : index
      %c0_24 = arith.constant 0 : index
      %31 = vector.load %arg9[%c0_23, %c0_24] : memref<8x256xf32, #tpu.memory_space<vmem>>, vector<8x256xf32>
      tpu.vector_store %arg9[%c0_23, %c0_24], %30 {strides = array<i32>} : memref<8x256xf32, #tpu.memory_space<vmem>>, vector<8x256xf32>,
    } else {
    }
    return
  }
  func.func @transform_0(%arg0: i32, %arg1: i32, %arg2: i32) -> (i32, i32) {
    %c0_i32 = arith.constant 0 : i32
    return %arg0, %arg2 : i32, i32
  }
  func.func @transform_1(%arg0: i32, %arg1: i32, %arg2: i32) -> (i32, i32) {
    %c0_i32 = arith.constant 0 : i32
    return %arg2, %arg1 : i32, i32
  }
  func.func @transform_2(%arg0: i32, %arg1: i32, %arg2: i32) -> (i32, i32) {
    %c0_i32 = arith.constant 0 : i32
    return %arg0, %arg1 : i32, i32
  }
  func.func @transform_3(%arg0: i32, %arg1: i32, %arg2: i32) -> (i32, i32) {
    %c0_i32 = arith.constant 0 : i32
    return %arg0, %arg1 : i32, i32
  }
  func.func @transform_4(%arg0: i32, %arg1: i32, %arg2: i32) -> (i32, i32) {
    %c0_i32 = arith.constant 0 : i32
    return %arg0, %arg1 : i32, i32
  }
  func.func @transform_5(%arg0: i32, %arg1: i32, %arg2: i32) -> (i32, i32) {
    %c0_i32 = arith.constant 0 : i32
    return %arg0, %arg1 : i32, i32
  }
  func.func @transform_6(%arg0: i32, %arg1: i32, %arg2: i32) -> (i32, i32) {
    %c0_i32 = arith.constant 0 : i32
    return %arg0, %arg1 : i32, i32
  }
}

module attributes {stable_mosaic.version = 11 : i64} {
  func.func @_gemm_lif_kernel(%arg0: i32, %arg1: i32, %arg2: i32, %arg3: memref<8x256xbf16, #tpu.memory_space<vmem>>, %arg4: memref<256x256xbf16, #tpu.memory_space<vmem>>, %arg5: memref<8x256xf32, #tpu.memory_space<vmem>>, %arg6: memref<8x256xf32, #tpu.memory_space<vmem>>, %arg7: memref<8x256xbf16, #tpu.memory_space<vmem>>, %arg8: memref<8x256xf32, #tpu.memory_space<vmem>>, %arg9: memref<8x256xf32, #tpu.memory_space<vmem>>, %arg10: memref<8x256xf32, #tpu.memory_space<vmem>>) attributes {dimension_semantics = [#tpu.dimension_semantics<parallel>, #tpu.dimension_semantics<parallel>, #tpu.dimension_semantics<arbitrary>], iteration_bounds = array<i64: 1, 2, 9>, scalar_prefetch = 0 : i64, scratch_operands = 1 : i64, tpu.core_type = #tpu.core_type<tc>, window_params = [{transform_indices = @transform_0, window_bounds = array<i64: 8, 256>}, {transform_indices = @transform_1, window_bounds = array<i64: 256, 256>}, {transform_indices = @transform_2, window_bounds = array<i64: 8, 256>}, {transform_indices = @transform_3, window_bounds = array<i64: 8, 256>}, {transform_indices = @transform_4, window_bounds = array<i64: 8, 256>}, {transform_indices = @transform_5, window_bounds = array<i64: 8, 256>}, {transform_indices = @transform_6, window_bounds = array<i64: 8, 256>}]} {
    %c0_i32 = arith.constant 0 : i32
    %0 = arith.cmpi eq, %arg2, %c0_i32 : i32
    %1 = arith.extui %0 : i1 to i32
    %c0_i32_0 = arith.constant 0 : i32
    %2 = arith.cmpi ne, %1, %c0_i32_0 : i32
    scf.if %2 {
      %cst_9 = arith.constant 0.000000e+00 : f32
      %12 = vector.broadcast %cst_9 : f32 to vector<8x256xf32>
      %c0_10 = arith.constant 0 : index
      %c0_11 = arith.constant 0 : index
      %13 = vector.load %arg10[%c0_10, %c0_11] : memref<8x256xf32, #tpu.memory_space<vmem>>, vector<8x256xf32>
      tpu.vector_store %arg10[%c0_10, %c0_11], %12 {strides = array<i32>} : memref<8x256xf32, #tpu.memory_space<vmem>>, vector<8x256xf32>,
    } else {
    }
    %c0 = arith.constant 0 : index
    %c0_1 = arith.constant 0 : index
    %3 = vector.load %arg10[%c0, %c0_1] : memref<8x256xf32, #tpu.memory_space<vmem>>, vector<8x256xf32>
    %c0_2 = arith.constant 0 : index
    %c0_3 = arith.constant 0 : index
    %4 = vector.load %arg3[%c0_2, %c0_3] : memref<8x256xbf16, #tpu.memory_space<vmem>>, vector<8x256xbf16>
    %c0_4 = arith.constant 0 : index
    %c0_5 = arith.constant 0 : index
    %5 = vector.load %arg4[%c0_4, %c0_5] : memref<256x256xbf16, #tpu.memory_space<vmem>>, vector<256x256xbf16>
    %cst = arith.constant dense<0.000000e+00> : vector<8x256xf32>
    %6 = tpu.matmul %4, %5, %cst {dimension_numbers = #tpu.dot_dimension_numbers<[1], [0], [0], [1], [0, 0, 1, 1], [], []>} : vector<8x256xbf16>, vector<256x256xbf16>, vector<8x256xf32> -> vector<8x256xf32>
    %7 = arith.addf %3, %6 : vector<8x256xf32>
    %c0_6 = arith.constant 0 : index
    %c0_7 = arith.constant 0 : index
    %8 = vector.load %arg10[%c0_6, %c0_7] : memref<8x256xf32, #tpu.memory_space<vmem>>, vector<8x256xf32>
    tpu.vector_store %arg10[%c0_6, %c0_7], %7 {strides = array<i32>} : memref<8x256xf32, #tpu.memory_space<vmem>>, vector<8x256xf32>,
    %c8_i32 = arith.constant 8 : i32
    %9 = arith.cmpi eq, %arg2, %c8_i32 : i32
    %10 = arith.extui %9 : i1 to i32
    %c0_i32_8 = arith.constant 0 : i32
    %11 = arith.cmpi ne, %10, %c0_i32_8 : i32
    scf.if %11 {
      %c0_9 = arith.constant 0 : index
      %c0_10 = arith.constant 0 : index
      %12 = vector.load %arg10[%c0_9, %c0_10] : memref<8x256xf32, #tpu.memory_space<vmem>>, vector<8x256xf32>
      %c0_11 = arith.constant 0 : index
      %c0_12 = arith.constant 0 : index
      %13 = vector.load %arg5[%c0_11, %c0_12] : memref<8x256xf32, #tpu.memory_space<vmem>>, vector<8x256xf32>
      %14 = arith.addf %13, %12 : vector<8x256xf32>
      %cst_13 = arith.constant 7.500000e-01 : f32
      %15 = vector.broadcast %cst_13 : f32 to vector<8x256xf32>
      %16 = arith.cmpf ogt, %14, %15 : vector<8x256xf32>
      %cst_14 = arith.constant 0.000000e+00 : f32
      %17 = vector.broadcast %cst_14 : f32 to vector<8x256xf32>
      %18 = arith.select %16, %14, %17 : vector<8x256xi1>, vector<8x256xf32>
      %19 = arith.subf %14, %18 : vector<8x256xf32>
      %cst_15 = arith.constant 0.899999976 : f32
      %20 = vector.broadcast %cst_15 : f32 to vector<8x256xf32>
      %21 = arith.mulf %19, %20 : vector<8x256xf32>
      %c0_16 = arith.constant 0 : index
      %c0_17 = arith.constant 0 : index
      %22 = vector.load %arg8[%c0_16, %c0_17] : memref<8x256xf32, #tpu.memory_space<vmem>>, vector<8x256xf32>
      tpu.vector_store %arg8[%c0_16, %c0_17], %21 {strides = array<i32>} : memref<8x256xf32, #tpu.memory_space<vmem>>, vector<8x256xf32>,
      %cst_18 = arith.constant 9.99999974E-6 : f32
      %23 = vector.broadcast %cst_18 : f32 to vector<8x256xf32>
      %24 = arith.cmpf ogt, %18, %23 : vector<8x256xf32>
      %25 = arith.extui %24 : vector<8x256xi1> to vector<8x256xi32>
      %26 = arith.sitofp %25 : vector<8x256xi32> to vector<8x256xf32>
      %27 = arith.truncf %26 : vector<8x256xf32> to vector<8x256xbf16>
      %c0_19 = arith.constant 0 : index
      %c0_20 = arith.constant 0 : index
      %28 = vector.load %arg7[%c0_19, %c0_20] : memref<8x256xbf16, #tpu.memory_space<vmem>>, vector<8x256xbf16>
      tpu.vector_store %arg7[%c0_19, %c0_20], %27 {strides = array<i32>} : memref<8x256xbf16, #tpu.memory_space<vmem>>, vector<8x256xbf16>,
      %c0_21 = arith.constant 0 : index
      %c0_22 = arith.constant 0 : index
      %29 = vector.load %arg6[%c0_21, %c0_22] : memref<8x256xf32, #tpu.memory_space<vmem>>, vector<8x256xf32>
      %30 = arith.addf %29, %12 : vector<8x256xf32>
      %c0_23 = arith.constant 0 : index
      %c0_24 = arith.constant 0 : index
      %31 = vector.load %arg9[%c0_23, %c0_24] : memref<8x256xf32, #tpu.memory_space<vmem>>, vector<8x256xf32>
      tpu.vector_store %arg9[%c0_23, %c0_24], %30 {strides = array<i32>} : memref<8x256xf32, #tpu.memory_space<vmem>>, vector<8x256xf32>,
    } else {
    }
    return
  }
  func.func @transform_0(%arg0: i32, %arg1: i32, %arg2: i32) -> (i32, i32) {
    %c0_i32 = arith.constant 0 : i32
    return %arg0, %arg2 : i32, i32
  }
  func.func @transform_1(%arg0: i32, %arg1: i32, %arg2: i32) -> (i32, i32) {
    %c0_i32 = arith.constant 0 : i32
    return %arg2, %arg1 : i32, i32
  }
  func.func @transform_2(%arg0: i32, %arg1: i32, %arg2: i32) -> (i32, i32) {
    %c0_i32 = arith.constant 0 : i32
    return %arg0, %arg1 : i32, i32
  }
  func.func @transform_3(%arg0: i32, %arg1: i32, %arg2: i32) -> (i32, i32) {
    %c0_i32 = arith.constant 0 : i32
    return %arg0, %arg1 : i32, i32
  }
  func.func @transform_4(%arg0: i32, %arg1: i32, %arg2: i32) -> (i32, i32) {
    %c0_i32 = arith.constant 0 : i32
    return %arg0, %arg1 : i32, i32
  }
  func.func @transform_5(%arg0: i32, %arg1: i32, %arg2: i32) -> (i32, i32) {
    %c0_i32 = arith.constant 0 : i32
    return %arg0, %arg1 : i32, i32
  }
  func.func @transform_6(%arg0: i32, %arg1: i32, %arg2: i32) -> (i32, i32) {
    %c0_i32 = arith.constant 0 : i32
    return %arg0, %arg1 : i32, i32
  }
}

module attributes {stable_mosaic.version = 11 : i64} {
  func.func @_gemm_epilogue_kernel(%arg0: i32, %arg1: i32, %arg2: i32, %arg3: memref<8x512xbf16, #tpu.memory_space<vmem>>, %arg4: memref<512x256xbf16, #tpu.memory_space<vmem>>, %arg5: memref<1x256xf32, #tpu.memory_space<vmem>>, %arg6: memref<8x256xf32, #tpu.memory_space<vmem>>, %arg7: memref<8x256xf32, #tpu.memory_space<vmem>>) attributes {dimension_semantics = [#tpu.dimension_semantics<parallel>, #tpu.dimension_semantics<parallel>, #tpu.dimension_semantics<arbitrary>], iteration_bounds = array<i64: 1, 2, 9>, scalar_prefetch = 0 : i64, scratch_operands = 1 : i64, tpu.core_type = #tpu.core_type<tc>, window_params = [{transform_indices = @transform_0, window_bounds = array<i64: 8, 512>}, {transform_indices = @transform_1, window_bounds = array<i64: 512, 256>}, {transform_indices = @transform_2, window_bounds = array<i64: 1, 256>}, {transform_indices = @transform_3, window_bounds = array<i64: 8, 256>}]} {
    %c0_i32 = arith.constant 0 : i32
    %0 = arith.cmpi eq, %arg2, %c0_i32 : i32
    %1 = arith.extui %0 : i1 to i32
    %c0_i32_0 = arith.constant 0 : i32
    %2 = arith.cmpi ne, %1, %c0_i32_0 : i32
    scf.if %2 {
      %cst_9 = arith.constant 0.000000e+00 : f32
      %12 = vector.broadcast %cst_9 : f32 to vector<8x256xf32>
      %c0_10 = arith.constant 0 : index
      %c0_11 = arith.constant 0 : index
      %13 = vector.load %arg7[%c0_10, %c0_11] : memref<8x256xf32, #tpu.memory_space<vmem>>, vector<8x256xf32>
      tpu.vector_store %arg7[%c0_10, %c0_11], %12 {strides = array<i32>} : memref<8x256xf32, #tpu.memory_space<vmem>>, vector<8x256xf32>,
    } else {
    }
    %c0 = arith.constant 0 : index
    %c0_1 = arith.constant 0 : index
    %3 = vector.load %arg7[%c0, %c0_1] : memref<8x256xf32, #tpu.memory_space<vmem>>, vector<8x256xf32>
    %c0_2 = arith.constant 0 : index
    %c0_3 = arith.constant 0 : index
    %4 = vector.load %arg3[%c0_2, %c0_3] : memref<8x512xbf16, #tpu.memory_space<vmem>>, vector<8x512xbf16>
    %c0_4 = arith.constant 0 : index
    %c0_5 = arith.constant 0 : index
    %5 = vector.load %arg4[%c0_4, %c0_5] : memref<512x256xbf16, #tpu.memory_space<vmem>>, vector<512x256xbf16>
    %cst = arith.constant dense<0.000000e+00> : vector<8x256xf32>
    %6 = tpu.matmul %4, %5, %cst {dimension_numbers = #tpu.dot_dimension_numbers<[1], [0], [0], [1], [0, 0, 1, 1], [], []>} : vector<8x512xbf16>, vector<512x256xbf16>, vector<8x256xf32> -> vector<8x256xf32>
    %7 = arith.addf %3, %6 : vector<8x256xf32>
    %c0_6 = arith.constant 0 : index
    %c0_7 = arith.constant 0 : index
    %8 = vector.load %arg7[%c0_6, %c0_7] : memref<8x256xf32, #tpu.memory_space<vmem>>, vector<8x256xf32>
    tpu.vector_store %arg7[%c0_6, %c0_7], %7 {strides = array<i32>} : memref<8x256xf32, #tpu.memory_space<vmem>>, vector<8x256xf32>,
    %c8_i32 = arith.constant 8 : i32
    %9 = arith.cmpi eq, %arg2, %c8_i32 : i32
    %10 = arith.extui %9 : i1 to i32
    %c0_i32_8 = arith.constant 0 : i32
    %11 = arith.cmpi ne, %10, %c0_i32_8 : i32
    scf.if %11 {
      %c0_9 = arith.constant 0 : index
      %c0_10 = arith.constant 0 : index
      %12 = vector.load %arg7[%c0_9, %c0_10] : memref<8x256xf32, #tpu.memory_space<vmem>>, vector<8x256xf32>
      %c0_11 = arith.constant 0 : index
      %c0_12 = arith.constant 0 : index
      %13 = vector.load %arg5[%c0_11, %c0_12] : memref<1x256xf32, #tpu.memory_space<vmem>>, vector<1x256xf32>
      %14 = vector.broadcast %13 : vector<1x256xf32> to vector<8x256xf32>
      %15 = arith.addf %12, %14 : vector<8x256xf32>
      %cst_13 = arith.constant 0.000000e+00 : f32
      %16 = vector.broadcast %cst_13 : f32 to vector<8x256xf32>
      %17 = arith.cmpf oge, %15, %16 : vector<8x256xf32>
      %cst_14 = arith.constant 1.000000e-01 : f32
      %18 = vector.broadcast %cst_14 : f32 to vector<8x256xf32>
      %19 = arith.mulf %15, %18 : vector<8x256xf32>
      %20 = arith.select %17, %15, %19 : vector<8x256xi1>, vector<8x256xf32>
      %c0_15 = arith.constant 0 : index
      %c0_16 = arith.constant 0 : index
      %21 = vector.load %arg6[%c0_15, %c0_16] : memref<8x256xf32, #tpu.memory_space<vmem>>, vector<8x256xf32>
      tpu.vector_store %arg6[%c0_15, %c0_16], %20 {strides = array<i32>} : memref<8x256xf32, #tpu.memory_space<vmem>>, vector<8x256xf32>,
    } else {
    }
    return
  }
  func.func @transform_0(%arg0: i32, %arg1: i32, %arg2: i32) -> (i32, i32) {
    %c0_i32 = arith.constant 0 : i32
    return %arg0, %arg2 : i32, i32
  }
  func.func @transform_1(%arg0: i32, %arg1: i32, %arg2: i32) -> (i32, i32) {
    %c0_i32 = arith.constant 0 : i32
    return %arg2, %arg1 : i32, i32
  }
  func.func @transform_2(%arg0: i32, %arg1: i32, %arg2: i32) -> (i32, i32) {
    %c0_i32 = arith.constant 0 : i32
    %c0_i32_0 = arith.constant 0 : i32
    return %c0_i32, %arg1 : i32, i32
  }
  func.func @transform_3(%arg0: i32, %arg1: i32, %arg2: i32) -> (i32, i32) {
    %c0_i32 = arith.constant 0 : i32
    return %arg0, %arg1 : i32, i32
  }
}

module attributes {stable_mosaic.version = 11 : i64} {
  func.func @_gemm_epilogue_kernel(%arg0: i32, %arg1: i32, %arg2: i32, %arg3: i32, %arg4: memref<1x8x512xbf16, #tpu.memory_space<vmem>>, %arg5: memref<1x512x128xbf16, #tpu.memory_space<vmem>>, %arg6: memref<1x128xf32, #tpu.memory_space<vmem>>, %arg7: memref<1x8x128xf32, #tpu.memory_space<vmem>>, %arg8: memref<8x128xf32, #tpu.memory_space<vmem>>) attributes {dimension_semantics = [#tpu.dimension_semantics<parallel>, #tpu.dimension_semantics<parallel>, #tpu.dimension_semantics<parallel>, #tpu.dimension_semantics<arbitrary>], iteration_bounds = array<i64: 4, 1, 1, 4>, scalar_prefetch = 0 : i64, scratch_operands = 1 : i64, tpu.core_type = #tpu.core_type<tc>, window_params = [{transform_indices = @transform_0, window_bounds = array<i64: 1, 8, 512>}, {transform_indices = @transform_1, window_bounds = array<i64: 1, 512, 128>}, {transform_indices = @transform_2, window_bounds = array<i64: 1, 128>}, {transform_indices = @transform_3, window_bounds = array<i64: 1, 8, 128>}]} {
    %c0_i32 = arith.constant 0 : i32
    %0 = arith.cmpi eq, %arg3, %c0_i32 : i32
    %1 = arith.extui %0 : i1 to i32
    %c0_i32_0 = arith.constant 0 : i32
    %2 = arith.cmpi ne, %1, %c0_i32_0 : i32
    scf.if %2 {
      %cst_11 = arith.constant 0.000000e+00 : f32
      %14 = vector.broadcast %cst_11 : f32 to vector<8x128xf32>
      %c0_12 = arith.constant 0 : index
      %c0_13 = arith.constant 0 : index
      %15 = vector.load %arg8[%c0_12, %c0_13] : memref<8x128xf32, #tpu.memory_space<vmem>>, vector<8x128xf32>
      tpu.vector_store %arg8[%c0_12, %c0_13], %14 {strides = array<i32>} : memref<8x128xf32, #tpu.memory_space<vmem>>, vector<8x128xf32>,
    } else {
    }
    %c0 = arith.constant 0 : index
    %c0_1 = arith.constant 0 : index
    %3 = vector.load %arg8[%c0, %c0_1] : memref<8x128xf32, #tpu.memory_space<vmem>>, vector<8x128xf32>
    %c0_2 = arith.constant 0 : index
    %c0_3 = arith.constant 0 : index
    %c0_4 = arith.constant 0 : index
    %4 = vector.load %arg4[%c0_2, %c0_3, %c0_4] : memref<1x8x512xbf16, #tpu.memory_space<vmem>>, vector<1x8x512xbf16>
    %5 = vector.shape_cast %4 : vector<1x8x512xbf16> to vector<8x512xbf16>
    %c0_5 = arith.constant 0 : index
    %c0_6 = arith.constant 0 : index
    %c0_7 = arith.constant 0 : index
    %6 = vector.load %arg5[%c0_5, %c0_6, %c0_7] : memref<1x512x128xbf16, #tpu.memory_space<vmem>>, vector<1x512x128xbf16>
    %7 = vector.shape_cast %6 : vector<1x512x128xbf16> to vector<512x128xbf16>
    %cst = arith.constant dense<0.000000e+00> : vector<8x128xf32>
    %8 = tpu.matmul %5, %7, %cst {dimension_numbers = #tpu.dot_dimension_numbers<[1], [0], [0], [1], [0, 0, 1, 1], [], []>} : vector<8x512xbf16>, vector<512x128xbf16>, vector<8x128xf32> -> vector<8x128xf32>
    %9 = arith.addf %3, %8 : vector<8x128xf32>
    %c0_8 = arith.constant 0 : index
    %c0_9 = arith.constant 0 : index
    %10 = vector.load %arg8[%c0_8, %c0_9] : memref<8x128xf32, #tpu.memory_space<vmem>>, vector<8x128xf32>
    tpu.vector_store %arg8[%c0_8, %c0_9], %9 {strides = array<i32>} : memref<8x128xf32, #tpu.memory_space<vmem>>, vector<8x128xf32>,
    %c3_i32 = arith.constant 3 : i32
    %11 = arith.cmpi eq, %arg3, %c3_i32 : i32
    %12 = arith.extui %11 : i1 to i32
    %c0_i32_10 = arith.constant 0 : i32
    %13 = arith.cmpi ne, %12, %c0_i32_10 : i32
    scf.if %13 {
      %c0_11 = arith.constant 0 : index
      %c0_12 = arith.constant 0 : index
      %14 = vector.load %arg8[%c0_11, %c0_12] : memref<8x128xf32, #tpu.memory_space<vmem>>, vector<8x128xf32>
      %c0_13 = arith.constant 0 : index
      %c0_14 = arith.constant 0 : index
      %15 = vector.load %arg6[%c0_13, %c0_14] : memref<1x128xf32, #tpu.memory_space<vmem>>, vector<1x128xf32>
      %16 = vector.broadcast %15 : vector<1x128xf32> to vector<8x128xf32>
      %17 = arith.addf %14, %16 : vector<8x128xf32>
      %cst_15 = arith.constant 0.000000e+00 : f32
      %18 = vector.broadcast %cst_15 : f32 to vector<8x128xf32>
      %19 = arith.cmpf oge, %17, %18 : vector<8x128xf32>
      %cst_16 = arith.constant 1.000000e-01 : f32
      %20 = vector.broadcast %cst_16 : f32 to vector<8x128xf32>
      %21 = arith.mulf %17, %20 : vector<8x128xf32>
      %22 = arith.select %19, %17, %21 : vector<8x128xi1>, vector<8x128xf32>
      %c0_17 = arith.constant 0 : index
      %c0_18 = arith.constant 0 : index
      %c0_19 = arith.constant 0 : index
      %23 = vector.load %arg7[%c0_17, %c0_18, %c0_19] : memref<1x8x128xf32, #tpu.memory_space<vmem>>, vector<1x8x128xf32>
      %24 = vector.shape_cast %23 : vector<1x8x128xf32> to vector<8x128xf32>
      %25 = vector.shape_cast %22 : vector<8x128xf32> to vector<1x8x128xf32>
      tpu.vector_store %arg7[%c0_17, %c0_18, %c0_19], %25 {strides = array<i32>} : memref<1x8x128xf32, #tpu.memory_space<vmem>>, vector<1x8x128xf32>,
    } else {
    }
    return
  }
  func.func @transform_0(%arg0: i32, %arg1: i32, %arg2: i32, %arg3: i32) -> (i32, i32, i32) {
    %c0_i32 = arith.constant 0 : i32
    return %arg0, %arg1, %arg3 : i32, i32, i32
  }
  func.func @transform_1(%arg0: i32, %arg1: i32, %arg2: i32, %arg3: i32) -> (i32, i32, i32) {
    %c0_i32 = arith.constant 0 : i32
    return %arg0, %arg3, %arg2 : i32, i32, i32
  }
  func.func @transform_2(%arg0: i32, %arg1: i32, %arg2: i32, %arg3: i32) -> (i32, i32) {
    %c0_i32 = arith.constant 0 : i32
    %c0_i32_0 = arith.constant 0 : i32
    return %c0_i32, %arg2 : i32, i32
  }
  func.func @transform_3(%arg0: i32, %arg1: i32, %arg2: i32, %arg3: i32) -> (i32, i32, i32) {
    %c0_i32 = arith.constant 0 : i32
    return %arg0, %arg1, %arg2 : i32, i32, i32
  }
}

module attributes {stable_mosaic.version = 11 : i64} {
  func.func @_gemm_epilogue_kernel(%arg0: i32, %arg1: i32, %arg2: i32, %arg3: i32, %arg4: memref<1x8x512xbf16, #tpu.memory_space<vmem>>, %arg5: memref<1x512x128xbf16, #tpu.memory_space<vmem>>, %arg6: memref<1x8x128xf32, #tpu.memory_space<vmem>>, %arg7: memref<8x128xf32, #tpu.memory_space<vmem>>) attributes {dimension_semantics = [#tpu.dimension_semantics<parallel>, #tpu.dimension_semantics<parallel>, #tpu.dimension_semantics<parallel>, #tpu.dimension_semantics<arbitrary>], iteration_bounds = array<i64: 4, 1, 1, 4>, scalar_prefetch = 0 : i64, scratch_operands = 1 : i64, tpu.core_type = #tpu.core_type<tc>, window_params = [{transform_indices = @transform_0, window_bounds = array<i64: 1, 8, 512>}, {transform_indices = @transform_1, window_bounds = array<i64: 1, 512, 128>}, {transform_indices = @transform_2, window_bounds = array<i64: 1, 8, 128>}]} {
    %c0_i32 = arith.constant 0 : i32
    %0 = arith.cmpi eq, %arg3, %c0_i32 : i32
    %1 = arith.extui %0 : i1 to i32
    %c0_i32_0 = arith.constant 0 : i32
    %2 = arith.cmpi ne, %1, %c0_i32_0 : i32
    scf.if %2 {
      %cst_11 = arith.constant 0.000000e+00 : f32
      %14 = vector.broadcast %cst_11 : f32 to vector<8x128xf32>
      %c0_12 = arith.constant 0 : index
      %c0_13 = arith.constant 0 : index
      %15 = vector.load %arg7[%c0_12, %c0_13] : memref<8x128xf32, #tpu.memory_space<vmem>>, vector<8x128xf32>
      tpu.vector_store %arg7[%c0_12, %c0_13], %14 {strides = array<i32>} : memref<8x128xf32, #tpu.memory_space<vmem>>, vector<8x128xf32>,
    } else {
    }
    %c0 = arith.constant 0 : index
    %c0_1 = arith.constant 0 : index
    %3 = vector.load %arg7[%c0, %c0_1] : memref<8x128xf32, #tpu.memory_space<vmem>>, vector<8x128xf32>
    %c0_2 = arith.constant 0 : index
    %c0_3 = arith.constant 0 : index
    %c0_4 = arith.constant 0 : index
    %4 = vector.load %arg4[%c0_2, %c0_3, %c0_4] : memref<1x8x512xbf16, #tpu.memory_space<vmem>>, vector<1x8x512xbf16>
    %5 = vector.shape_cast %4 : vector<1x8x512xbf16> to vector<8x512xbf16>
    %c0_5 = arith.constant 0 : index
    %c0_6 = arith.constant 0 : index
    %c0_7 = arith.constant 0 : index
    %6 = vector.load %arg5[%c0_5, %c0_6, %c0_7] : memref<1x512x128xbf16, #tpu.memory_space<vmem>>, vector<1x512x128xbf16>
    %7 = vector.shape_cast %6 : vector<1x512x128xbf16> to vector<512x128xbf16>
    %cst = arith.constant dense<0.000000e+00> : vector<8x128xf32>
    %8 = tpu.matmul %5, %7, %cst {dimension_numbers = #tpu.dot_dimension_numbers<[1], [0], [0], [1], [0, 0, 1, 1], [], []>} : vector<8x512xbf16>, vector<512x128xbf16>, vector<8x128xf32> -> vector<8x128xf32>
    %9 = arith.addf %3, %8 : vector<8x128xf32>
    %c0_8 = arith.constant 0 : index
    %c0_9 = arith.constant 0 : index
    %10 = vector.load %arg7[%c0_8, %c0_9] : memref<8x128xf32, #tpu.memory_space<vmem>>, vector<8x128xf32>
    tpu.vector_store %arg7[%c0_8, %c0_9], %9 {strides = array<i32>} : memref<8x128xf32, #tpu.memory_space<vmem>>, vector<8x128xf32>,
    %c3_i32 = arith.constant 3 : i32
    %11 = arith.cmpi eq, %arg3, %c3_i32 : i32
    %12 = arith.extui %11 : i1 to i32
    %c0_i32_10 = arith.constant 0 : i32
    %13 = arith.cmpi ne, %12, %c0_i32_10 : i32
    scf.if %13 {
      %c0_11 = arith.constant 0 : index
      %c0_12 = arith.constant 0 : index
      %14 = vector.load %arg7[%c0_11, %c0_12] : memref<8x128xf32, #tpu.memory_space<vmem>>, vector<8x128xf32>
      %c0_13 = arith.constant 0 : index
      %c0_14 = arith.constant 0 : index
      %c0_15 = arith.constant 0 : index
      %15 = vector.load %arg6[%c0_13, %c0_14, %c0_15] : memref<1x8x128xf32, #tpu.memory_space<vmem>>, vector<1x8x128xf32>
      %16 = vector.shape_cast %15 : vector<1x8x128xf32> to vector<8x128xf32>
      %17 = vector.shape_cast %14 : vector<8x128xf32> to vector<1x8x128xf32>
      tpu.vector_store %arg6[%c0_13, %c0_14, %c0_15], %17 {strides = array<i32>} : memref<1x8x128xf32, #tpu.memory_space<vmem>>, vector<1x8x128xf32>,
    } else {
    }
    return
  }
  func.func @transform_0(%arg0: i32, %arg1: i32, %arg2: i32, %arg3: i32) -> (i32, i32, i32) {
    %c0_i32 = arith.constant 0 : i32
    return %arg0, %arg1, %arg3 : i32, i32, i32
  }
  func.func @transform_1(%arg0: i32, %arg1: i32, %arg2: i32, %arg3: i32) -> (i32, i32, i32) {
    %c0_i32 = arith.constant 0 : i32
    return %arg0, %arg3, %arg2 : i32, i32, i32
  }
  func.func @transform_2(%arg0: i32, %arg1: i32, %arg2: i32, %arg3: i32) -> (i32, i32, i32) {
    %c0_i32 = arith.constant 0 : i32
    return %arg0, %arg1, %arg2 : i32, i32, i32
  }
}

module attributes {stable_mosaic.version = 11 : i64} {
  func.func @_gemm_epilogue_kernel(%arg0: i32, %arg1: i32, %arg2: i32, %arg3: i32, %arg4: memref<1x8x128xbf16, #tpu.memory_space<vmem>>, %arg5: memref<1x128x128xbf16, #tpu.memory_space<vmem>>, %arg6: memref<1x128xf32, #tpu.memory_space<vmem>>, %arg7: memref<1x8x128xf32, #tpu.memory_space<vmem>>, %arg8: memref<8x128xf32, #tpu.memory_space<vmem>>) attributes {dimension_semantics = [#tpu.dimension_semantics<parallel>, #tpu.dimension_semantics<parallel>, #tpu.dimension_semantics<parallel>, #tpu.dimension_semantics<arbitrary>], iteration_bounds = array<i64: 4, 1, 1, 13>, scalar_prefetch = 0 : i64, scratch_operands = 1 : i64, tpu.core_type = #tpu.core_type<tc>, window_params = [{transform_indices = @transform_0, window_bounds = array<i64: 1, 8, 128>}, {transform_indices = @transform_1, window_bounds = array<i64: 1, 128, 128>}, {transform_indices = @transform_2, window_bounds = array<i64: 1, 128>}, {transform_indices = @transform_3, window_bounds = array<i64: 1, 8, 128>}]} {
    %c0_i32 = arith.constant 0 : i32
    %0 = arith.cmpi eq, %arg3, %c0_i32 : i32
    %1 = arith.extui %0 : i1 to i32
    %c0_i32_0 = arith.constant 0 : i32
    %2 = arith.cmpi ne, %1, %c0_i32_0 : i32
    scf.if %2 {
      %cst_11 = arith.constant 0.000000e+00 : f32
      %14 = vector.broadcast %cst_11 : f32 to vector<8x128xf32>
      %c0_12 = arith.constant 0 : index
      %c0_13 = arith.constant 0 : index
      %15 = vector.load %arg8[%c0_12, %c0_13] : memref<8x128xf32, #tpu.memory_space<vmem>>, vector<8x128xf32>
      tpu.vector_store %arg8[%c0_12, %c0_13], %14 {strides = array<i32>} : memref<8x128xf32, #tpu.memory_space<vmem>>, vector<8x128xf32>,
    } else {
    }
    %c0 = arith.constant 0 : index
    %c0_1 = arith.constant 0 : index
    %3 = vector.load %arg8[%c0, %c0_1] : memref<8x128xf32, #tpu.memory_space<vmem>>, vector<8x128xf32>
    %c0_2 = arith.constant 0 : index
    %c0_3 = arith.constant 0 : index
    %c0_4 = arith.constant 0 : index
    %4 = vector.load %arg4[%c0_2, %c0_3, %c0_4] : memref<1x8x128xbf16, #tpu.memory_space<vmem>>, vector<1x8x128xbf16>
    %5 = vector.shape_cast %4 : vector<1x8x128xbf16> to vector<8x128xbf16>
    %c0_5 = arith.constant 0 : index
    %c0_6 = arith.constant 0 : index
    %c0_7 = arith.constant 0 : index
    %6 = vector.load %arg5[%c0_5, %c0_6, %c0_7] : memref<1x128x128xbf16, #tpu.memory_space<vmem>>, vector<1x128x128xbf16>
    %7 = vector.shape_cast %6 : vector<1x128x128xbf16> to vector<128x128xbf16>
    %cst = arith.constant dense<0.000000e+00> : vector<8x128xf32>
    %8 = tpu.matmul %5, %7, %cst {dimension_numbers = #tpu.dot_dimension_numbers<[1], [0], [0], [1], [0, 0, 1, 1], [], []>} : vector<8x128xbf16>, vector<128x128xbf16>, vector<8x128xf32> -> vector<8x128xf32>
    %9 = arith.addf %3, %8 : vector<8x128xf32>
    %c0_8 = arith.constant 0 : index
    %c0_9 = arith.constant 0 : index
    %10 = vector.load %arg8[%c0_8, %c0_9] : memref<8x128xf32, #tpu.memory_space<vmem>>, vector<8x128xf32>
    tpu.vector_store %arg8[%c0_8, %c0_9], %9 {strides = array<i32>} : memref<8x128xf32, #tpu.memory_space<vmem>>, vector<8x128xf32>,
    %c12_i32 = arith.constant 12 : i32
    %11 = arith.cmpi eq, %arg3, %c12_i32 : i32
    %12 = arith.extui %11 : i1 to i32
    %c0_i32_10 = arith.constant 0 : i32
    %13 = arith.cmpi ne, %12, %c0_i32_10 : i32
    scf.if %13 {
      %c0_11 = arith.constant 0 : index
      %c0_12 = arith.constant 0 : index
      %14 = vector.load %arg8[%c0_11, %c0_12] : memref<8x128xf32, #tpu.memory_space<vmem>>, vector<8x128xf32>
      %c0_13 = arith.constant 0 : index
      %c0_14 = arith.constant 0 : index
      %15 = vector.load %arg6[%c0_13, %c0_14] : memref<1x128xf32, #tpu.memory_space<vmem>>, vector<1x128xf32>
      %16 = vector.broadcast %15 : vector<1x128xf32> to vector<8x128xf32>
      %17 = arith.addf %14, %16 : vector<8x128xf32>
      %cst_15 = arith.constant 0.000000e+00 : f32
      %18 = vector.broadcast %cst_15 : f32 to vector<8x128xf32>
      %19 = arith.cmpf oge, %17, %18 : vector<8x128xf32>
      %cst_16 = arith.constant 1.000000e-01 : f32
      %20 = vector.broadcast %cst_16 : f32 to vector<8x128xf32>
      %21 = arith.mulf %17, %20 : vector<8x128xf32>
      %22 = arith.select %19, %17, %21 : vector<8x128xi1>, vector<8x128xf32>
      %c0_17 = arith.constant 0 : index
      %c0_18 = arith.constant 0 : index
      %c0_19 = arith.constant 0 : index
      %23 = vector.load %arg7[%c0_17, %c0_18, %c0_19] : memref<1x8x128xf32, #tpu.memory_space<vmem>>, vector<1x8x128xf32>
      %24 = vector.shape_cast %23 : vector<1x8x128xf32> to vector<8x128xf32>
      %25 = vector.shape_cast %22 : vector<8x128xf32> to vector<1x8x128xf32>
      tpu.vector_store %arg7[%c0_17, %c0_18, %c0_19], %25 {strides = array<i32>} : memref<1x8x128xf32, #tpu.memory_space<vmem>>, vector<1x8x128xf32>,
    } else {
    }
    return
  }
  func.func @transform_0(%arg0: i32, %arg1: i32, %arg2: i32, %arg3: i32) -> (i32, i32, i32) {
    %c0_i32 = arith.constant 0 : i32
    return %arg0, %arg1, %arg3 : i32, i32, i32
  }
  func.func @transform_1(%arg0: i32, %arg1: i32, %arg2: i32, %arg3: i32) -> (i32, i32, i32) {
    %c0_i32 = arith.constant 0 : i32
    return %arg0, %arg3, %arg2 : i32, i32, i32
  }
  func.func @transform_2(%arg0: i32, %arg1: i32, %arg2: i32, %arg3: i32) -> (i32, i32) {
    %c0_i32 = arith.constant 0 : i32
    %c0_i32_0 = arith.constant 0 : i32
    return %c0_i32, %arg2 : i32, i32
  }
  func.func @transform_3(%arg0: i32, %arg1: i32, %arg2: i32, %arg3: i32) -> (i32, i32, i32) {
    %c0_i32 = arith.constant 0 : i32
    return %arg0, %arg1, %arg2 : i32, i32, i32
  }
}

module attributes {stable_mosaic.version = 11 : i64} {
  func.func @_gemm_epilogue_kernel(%arg0: i32, %arg1: i32, %arg2: i32, %arg3: i32, %arg4: memref<1x8x128xbf16, #tpu.memory_space<vmem>>, %arg5: memref<1x128x128xbf16, #tpu.memory_space<vmem>>, %arg6: memref<1x8x128xf32, #tpu.memory_space<vmem>>, %arg7: memref<8x128xf32, #tpu.memory_space<vmem>>) attributes {dimension_semantics = [#tpu.dimension_semantics<parallel>, #tpu.dimension_semantics<parallel>, #tpu.dimension_semantics<parallel>, #tpu.dimension_semantics<arbitrary>], iteration_bounds = array<i64: 4, 1, 1, 13>, scalar_prefetch = 0 : i64, scratch_operands = 1 : i64, tpu.core_type = #tpu.core_type<tc>, window_params = [{transform_indices = @transform_0, window_bounds = array<i64: 1, 8, 128>}, {transform_indices = @transform_1, window_bounds = array<i64: 1, 128, 128>}, {transform_indices = @transform_2, window_bounds = array<i64: 1, 8, 128>}]} {
    %c0_i32 = arith.constant 0 : i32
    %0 = arith.cmpi eq, %arg3, %c0_i32 : i32
    %1 = arith.extui %0 : i1 to i32
    %c0_i32_0 = arith.constant 0 : i32
    %2 = arith.cmpi ne, %1, %c0_i32_0 : i32
    scf.if %2 {
      %cst_11 = arith.constant 0.000000e+00 : f32
      %14 = vector.broadcast %cst_11 : f32 to vector<8x128xf32>
      %c0_12 = arith.constant 0 : index
      %c0_13 = arith.constant 0 : index
      %15 = vector.load %arg7[%c0_12, %c0_13] : memref<8x128xf32, #tpu.memory_space<vmem>>, vector<8x128xf32>
      tpu.vector_store %arg7[%c0_12, %c0_13], %14 {strides = array<i32>} : memref<8x128xf32, #tpu.memory_space<vmem>>, vector<8x128xf32>,
    } else {
    }
    %c0 = arith.constant 0 : index
    %c0_1 = arith.constant 0 : index
    %3 = vector.load %arg7[%c0, %c0_1] : memref<8x128xf32, #tpu.memory_space<vmem>>, vector<8x128xf32>
    %c0_2 = arith.constant 0 : index
    %c0_3 = arith.constant 0 : index
    %c0_4 = arith.constant 0 : index
    %4 = vector.load %arg4[%c0_2, %c0_3, %c0_4] : memref<1x8x128xbf16, #tpu.memory_space<vmem>>, vector<1x8x128xbf16>
    %5 = vector.shape_cast %4 : vector<1x8x128xbf16> to vector<8x128xbf16>
    %c0_5 = arith.constant 0 : index
    %c0_6 = arith.constant 0 : index
    %c0_7 = arith.constant 0 : index
    %6 = vector.load %arg5[%c0_5, %c0_6, %c0_7] : memref<1x128x128xbf16, #tpu.memory_space<vmem>>, vector<1x128x128xbf16>
    %7 = vector.shape_cast %6 : vector<1x128x128xbf16> to vector<128x128xbf16>
    %cst = arith.constant dense<0.000000e+00> : vector<8x128xf32>
    %8 = tpu.matmul %5, %7, %cst {dimension_numbers = #tpu.dot_dimension_numbers<[1], [0], [0], [1], [0, 0, 1, 1], [], []>} : vector<8x128xbf16>, vector<128x128xbf16>, vector<8x128xf32> -> vector<8x128xf32>
    %9 = arith.addf %3, %8 : vector<8x128xf32>
    %c0_8 = arith.constant 0 : index
    %c0_9 = arith.constant 0 : index
    %10 = vector.load %arg7[%c0_8, %c0_9] : memref<8x128xf32, #tpu.memory_space<vmem>>, vector<8x128xf32>
    tpu.vector_store %arg7[%c0_8, %c0_9], %9 {strides = array<i32>} : memref<8x128xf32, #tpu.memory_space<vmem>>, vector<8x128xf32>,
    %c12_i32 = arith.constant 12 : i32
    %11 = arith.cmpi eq, %arg3, %c12_i32 : i32
    %12 = arith.extui %11 : i1 to i32
    %c0_i32_10 = arith.constant 0 : i32
    %13 = arith.cmpi ne, %12, %c0_i32_10 : i32
    scf.if %13 {
      %c0_11 = arith.constant 0 : index
      %c0_12 = arith.constant 0 : index
      %14 = vector.load %arg7[%c0_11, %c0_12] : memref<8x128xf32, #tpu.memory_space<vmem>>, vector<8x128xf32>
      %c0_13 = arith.constant 0 : index
      %c0_14 = arith.constant 0 : index
      %c0_15 = arith.constant 0 : index
      %15 = vector.load %arg6[%c0_13, %c0_14, %c0_15] : memref<1x8x128xf32, #tpu.memory_space<vmem>>, vector<1x8x128xf32>
      %16 = vector.shape_cast %15 : vector<1x8x128xf32> to vector<8x128xf32>
      %17 = vector.shape_cast %14 : vector<8x128xf32> to vector<1x8x128xf32>
      tpu.vector_store %arg6[%c0_13, %c0_14, %c0_15], %17 {strides = array<i32>} : memref<1x8x128xf32, #tpu.memory_space<vmem>>, vector<1x8x128xf32>,
    } else {
    }
    return
  }
  func.func @transform_0(%arg0: i32, %arg1: i32, %arg2: i32, %arg3: i32) -> (i32, i32, i32) {
    %c0_i32 = arith.constant 0 : i32
    return %arg0, %arg1, %arg3 : i32, i32, i32
  }
  func.func @transform_1(%arg0: i32, %arg1: i32, %arg2: i32, %arg3: i32) -> (i32, i32, i32) {
    %c0_i32 = arith.constant 0 : i32
    return %arg0, %arg3, %arg2 : i32, i32, i32
  }
  func.func @transform_2(%arg0: i32, %arg1: i32, %arg2: i32, %arg3: i32) -> (i32, i32, i32) {
    %c0_i32 = arith.constant 0 : i32
    return %arg0, %arg1, %arg2 : i32, i32, i32
  }
}

module attributes {stable_mosaic.version = 11 : i64} {
  func.func @_gemm_epilogue_kernel(%arg0: i32, %arg1: i32, %arg2: i32, %arg3: i32, %arg4: memref<1x32x128xbf16, #tpu.memory_space<vmem>>, %arg5: memref<1x128x128xbf16, #tpu.memory_space<vmem>>, %arg6: memref<1x128xf32, #tpu.memory_space<vmem>>, %arg7: memref<1x32x128xf32, #tpu.memory_space<vmem>>, %arg8: memref<32x128xf32, #tpu.memory_space<vmem>>) attributes {dimension_semantics = [#tpu.dimension_semantics<parallel>, #tpu.dimension_semantics<parallel>, #tpu.dimension_semantics<parallel>, #tpu.dimension_semantics<arbitrary>], iteration_bounds = array<i64: 4, 1, 1, 7>, scalar_prefetch = 0 : i64, scratch_operands = 1 : i64, tpu.core_type = #tpu.core_type<tc>, window_params = [{transform_indices = @transform_0, window_bounds = array<i64: 1, 32, 128>}, {transform_indices = @transform_1, window_bounds = array<i64: 1, 128, 128>}, {transform_indices = @transform_2, window_bounds = array<i64: 1, 128>}, {transform_indices = @transform_3, window_bounds = array<i64: 1, 32, 128>}]} {
    %c0_i32 = arith.constant 0 : i32
    %0 = arith.cmpi eq, %arg3, %c0_i32 : i32
    %1 = arith.extui %0 : i1 to i32
    %c0_i32_0 = arith.constant 0 : i32
    %2 = arith.cmpi ne, %1, %c0_i32_0 : i32
    scf.if %2 {
      %cst_11 = arith.constant 0.000000e+00 : f32
      %14 = vector.broadcast %cst_11 : f32 to vector<32x128xf32>
      %c0_12 = arith.constant 0 : index
      %c0_13 = arith.constant 0 : index
      %15 = vector.load %arg8[%c0_12, %c0_13] : memref<32x128xf32, #tpu.memory_space<vmem>>, vector<32x128xf32>
      tpu.vector_store %arg8[%c0_12, %c0_13], %14 {strides = array<i32>} : memref<32x128xf32, #tpu.memory_space<vmem>>, vector<32x128xf32>,
    } else {
    }
    %c0 = arith.constant 0 : index
    %c0_1 = arith.constant 0 : index
    %3 = vector.load %arg8[%c0, %c0_1] : memref<32x128xf32, #tpu.memory_space<vmem>>, vector<32x128xf32>
    %c0_2 = arith.constant 0 : index
    %c0_3 = arith.constant 0 : index
    %c0_4 = arith.constant 0 : index
    %4 = vector.load %arg4[%c0_2, %c0_3, %c0_4] : memref<1x32x128xbf16, #tpu.memory_space<vmem>>, vector<1x32x128xbf16>
    %5 = vector.shape_cast %4 : vector<1x32x128xbf16> to vector<32x128xbf16>
    %c0_5 = arith.constant 0 : index
    %c0_6 = arith.constant 0 : index
    %c0_7 = arith.constant 0 : index
    %6 = vector.load %arg5[%c0_5, %c0_6, %c0_7] : memref<1x128x128xbf16, #tpu.memory_space<vmem>>, vector<1x128x128xbf16>
    %7 = vector.shape_cast %6 : vector<1x128x128xbf16> to vector<128x128xbf16>
    %cst = arith.constant dense<0.000000e+00> : vector<32x128xf32>
    %8 = tpu.matmul %5, %7, %cst {dimension_numbers = #tpu.dot_dimension_numbers<[1], [0], [0], [1], [0, 0, 1, 1], [], []>} : vector<32x128xbf16>, vector<128x128xbf16>, vector<32x128xf32> -> vector<32x128xf32>
    %9 = arith.addf %3, %8 : vector<32x128xf32>
    %c0_8 = arith.constant 0 : index
    %c0_9 = arith.constant 0 : index
    %10 = vector.load %arg8[%c0_8, %c0_9] : memref<32x128xf32, #tpu.memory_space<vmem>>, vector<32x128xf32>
    tpu.vector_store %arg8[%c0_8, %c0_9], %9 {strides = array<i32>} : memref<32x128xf32, #tpu.memory_space<vmem>>, vector<32x128xf32>,
    %c6_i32 = arith.constant 6 : i32
    %11 = arith.cmpi eq, %arg3, %c6_i32 : i32
    %12 = arith.extui %11 : i1 to i32
    %c0_i32_10 = arith.constant 0 : i32
    %13 = arith.cmpi ne, %12, %c0_i32_10 : i32
    scf.if %13 {
      %c0_11 = arith.constant 0 : index
      %c0_12 = arith.constant 0 : index
      %14 = vector.load %arg8[%c0_11, %c0_12] : memref<32x128xf32, #tpu.memory_space<vmem>>, vector<32x128xf32>
      %c0_13 = arith.constant 0 : index
      %c0_14 = arith.constant 0 : index
      %15 = vector.load %arg6[%c0_13, %c0_14] : memref<1x128xf32, #tpu.memory_space<vmem>>, vector<1x128xf32>
      %16 = vector.broadcast %15 : vector<1x128xf32> to vector<32x128xf32>
      %17 = arith.addf %14, %16 : vector<32x128xf32>
      %cst_15 = arith.constant 0.000000e+00 : f32
      %18 = vector.broadcast %cst_15 : f32 to vector<32x128xf32>
      %19 = arith.cmpf oge, %17, %18 : vector<32x128xf32>
      %cst_16 = arith.constant 1.000000e-01 : f32
      %20 = vector.broadcast %cst_16 : f32 to vector<32x128xf32>
      %21 = arith.mulf %17, %20 : vector<32x128xf32>
      %22 = arith.select %19, %17, %21 : vector<32x128xi1>, vector<32x128xf32>
      %c0_17 = arith.constant 0 : index
      %c0_18 = arith.constant 0 : index
      %c0_19 = arith.constant 0 : index
      %23 = vector.load %arg7[%c0_17, %c0_18, %c0_19] : memref<1x32x128xf32, #tpu.memory_space<vmem>>, vector<1x32x128xf32>
      %24 = vector.shape_cast %23 : vector<1x32x128xf32> to vector<32x128xf32>
      %25 = vector.shape_cast %22 : vector<32x128xf32> to vector<1x32x128xf32>
      tpu.vector_store %arg7[%c0_17, %c0_18, %c0_19], %25 {strides = array<i32>} : memref<1x32x128xf32, #tpu.memory_space<vmem>>, vector<1x32x128xf32>,
    } else {
    }
    return
  }
  func.func @transform_0(%arg0: i32, %arg1: i32, %arg2: i32, %arg3: i32) -> (i32, i32, i32) {
    %c0_i32 = arith.constant 0 : i32
    return %arg0, %arg1, %arg3 : i32, i32, i32
  }
  func.func @transform_1(%arg0: i32, %arg1: i32, %arg2: i32, %arg3: i32) -> (i32, i32, i32) {
    %c0_i32 = arith.constant 0 : i32
    return %arg0, %arg3, %arg2 : i32, i32, i32
  }
  func.func @transform_2(%arg0: i32, %arg1: i32, %arg2: i32, %arg3: i32) -> (i32, i32) {
    %c0_i32 = arith.constant 0 : i32
    %c0_i32_0 = arith.constant 0 : i32
    return %c0_i32, %arg2 : i32, i32
  }
  func.func @transform_3(%arg0: i32, %arg1: i32, %arg2: i32, %arg3: i32) -> (i32, i32, i32) {
    %c0_i32 = arith.constant 0 : i32
    return %arg0, %arg1, %arg2 : i32, i32, i32
  }
}

module attributes {stable_mosaic.version = 11 : i64} {
  func.func @_gemm_epilogue_kernel(%arg0: i32, %arg1: i32, %arg2: i32, %arg3: i32, %arg4: memref<1x32x128xbf16, #tpu.memory_space<vmem>>, %arg5: memref<1x128x128xbf16, #tpu.memory_space<vmem>>, %arg6: memref<1x32x128xf32, #tpu.memory_space<vmem>>, %arg7: memref<32x128xf32, #tpu.memory_space<vmem>>) attributes {dimension_semantics = [#tpu.dimension_semantics<parallel>, #tpu.dimension_semantics<parallel>, #tpu.dimension_semantics<parallel>, #tpu.dimension_semantics<arbitrary>], iteration_bounds = array<i64: 4, 1, 1, 7>, scalar_prefetch = 0 : i64, scratch_operands = 1 : i64, tpu.core_type = #tpu.core_type<tc>, window_params = [{transform_indices = @transform_0, window_bounds = array<i64: 1, 32, 128>}, {transform_indices = @transform_1, window_bounds = array<i64: 1, 128, 128>}, {transform_indices = @transform_2, window_bounds = array<i64: 1, 32, 128>}]} {
    %c0_i32 = arith.constant 0 : i32
    %0 = arith.cmpi eq, %arg3, %c0_i32 : i32
    %1 = arith.extui %0 : i1 to i32
    %c0_i32_0 = arith.constant 0 : i32
    %2 = arith.cmpi ne, %1, %c0_i32_0 : i32
    scf.if %2 {
      %cst_11 = arith.constant 0.000000e+00 : f32
      %14 = vector.broadcast %cst_11 : f32 to vector<32x128xf32>
      %c0_12 = arith.constant 0 : index
      %c0_13 = arith.constant 0 : index
      %15 = vector.load %arg7[%c0_12, %c0_13] : memref<32x128xf32, #tpu.memory_space<vmem>>, vector<32x128xf32>
      tpu.vector_store %arg7[%c0_12, %c0_13], %14 {strides = array<i32>} : memref<32x128xf32, #tpu.memory_space<vmem>>, vector<32x128xf32>,
    } else {
    }
    %c0 = arith.constant 0 : index
    %c0_1 = arith.constant 0 : index
    %3 = vector.load %arg7[%c0, %c0_1] : memref<32x128xf32, #tpu.memory_space<vmem>>, vector<32x128xf32>
    %c0_2 = arith.constant 0 : index
    %c0_3 = arith.constant 0 : index
    %c0_4 = arith.constant 0 : index
    %4 = vector.load %arg4[%c0_2, %c0_3, %c0_4] : memref<1x32x128xbf16, #tpu.memory_space<vmem>>, vector<1x32x128xbf16>
    %5 = vector.shape_cast %4 : vector<1x32x128xbf16> to vector<32x128xbf16>
    %c0_5 = arith.constant 0 : index
    %c0_6 = arith.constant 0 : index
    %c0_7 = arith.constant 0 : index
    %6 = vector.load %arg5[%c0_5, %c0_6, %c0_7] : memref<1x128x128xbf16, #tpu.memory_space<vmem>>, vector<1x128x128xbf16>
    %7 = vector.shape_cast %6 : vector<1x128x128xbf16> to vector<128x128xbf16>
    %cst = arith.constant dense<0.000000e+00> : vector<32x128xf32>
    %8 = tpu.matmul %5, %7, %cst {dimension_numbers = #tpu.dot_dimension_numbers<[1], [0], [0], [1], [0, 0, 1, 1], [], []>} : vector<32x128xbf16>, vector<128x128xbf16>, vector<32x128xf32> -> vector<32x128xf32>
    %9 = arith.addf %3, %8 : vector<32x128xf32>
    %c0_8 = arith.constant 0 : index
    %c0_9 = arith.constant 0 : index
    %10 = vector.load %arg7[%c0_8, %c0_9] : memref<32x128xf32, #tpu.memory_space<vmem>>, vector<32x128xf32>
    tpu.vector_store %arg7[%c0_8, %c0_9], %9 {strides = array<i32>} : memref<32x128xf32, #tpu.memory_space<vmem>>, vector<32x128xf32>,
    %c6_i32 = arith.constant 6 : i32
    %11 = arith.cmpi eq, %arg3, %c6_i32 : i32
    %12 = arith.extui %11 : i1 to i32
    %c0_i32_10 = arith.constant 0 : i32
    %13 = arith.cmpi ne, %12, %c0_i32_10 : i32
    scf.if %13 {
      %c0_11 = arith.constant 0 : index
      %c0_12 = arith.constant 0 : index
      %14 = vector.load %arg7[%c0_11, %c0_12] : memref<32x128xf32, #tpu.memory_space<vmem>>, vector<32x128xf32>
      %c0_13 = arith.constant 0 : index
      %c0_14 = arith.constant 0 : index
      %c0_15 = arith.constant 0 : index
      %15 = vector.load %arg6[%c0_13, %c0_14, %c0_15] : memref<1x32x128xf32, #tpu.memory_space<vmem>>, vector<1x32x128xf32>
      %16 = vector.shape_cast %15 : vector<1x32x128xf32> to vector<32x128xf32>
      %17 = vector.shape_cast %14 : vector<32x128xf32> to vector<1x32x128xf32>
      tpu.vector_store %arg6[%c0_13, %c0_14, %c0_15], %17 {strides = array<i32>} : memref<1x32x128xf32, #tpu.memory_space<vmem>>, vector<1x32x128xf32>,
    } else {
    }
    return
  }
  func.func @transform_0(%arg0: i32, %arg1: i32, %arg2: i32, %arg3: i32) -> (i32, i32, i32) {
    %c0_i32 = arith.constant 0 : i32
    return %arg0, %arg1, %arg3 : i32, i32, i32
  }
  func.func @transform_1(%arg0: i32, %arg1: i32, %arg2: i32, %arg3: i32) -> (i32, i32, i32) {
    %c0_i32 = arith.constant 0 : i32
    return %arg0, %arg3, %arg2 : i32, i32, i32
  }
  func.func @transform_2(%arg0: i32, %arg1: i32, %arg2: i32, %arg3: i32) -> (i32, i32, i32) {
    %c0_i32 = arith.constant 0 : i32
    return %arg0, %arg1, %arg2 : i32, i32, i32
  }
}

module attributes {stable_mosaic.version = 11 : i64} {
  func.func @_gemm_epilogue_kernel(%arg0: i32, %arg1: i32, %arg2: i32, %arg3: i32, %arg4: memref<1x128x128xbf16, #tpu.memory_space<vmem>>, %arg5: memref<1x128x128xbf16, #tpu.memory_space<vmem>>, %arg6: memref<1x128x128xf32, #tpu.memory_space<vmem>>, %arg7: memref<128x128xf32, #tpu.memory_space<vmem>>) attributes {dimension_semantics = [#tpu.dimension_semantics<parallel>, #tpu.dimension_semantics<parallel>, #tpu.dimension_semantics<parallel>, #tpu.dimension_semantics<arbitrary>], iteration_bounds = array<i64: 4, 1, 1, 3>, scalar_prefetch = 0 : i64, scratch_operands = 1 : i64, tpu.core_type = #tpu.core_type<tc>, window_params = [{transform_indices = @transform_0, window_bounds = array<i64: 1, 128, 128>}, {transform_indices = @transform_1, window_bounds = array<i64: 1, 128, 128>}, {transform_indices = @transform_2, window_bounds = array<i64: 1, 128, 128>}]} {
    %c0_i32 = arith.constant 0 : i32
    %0 = arith.cmpi eq, %arg3, %c0_i32 : i32
    %1 = arith.extui %0 : i1 to i32
    %c0_i32_0 = arith.constant 0 : i32
    %2 = arith.cmpi ne, %1, %c0_i32_0 : i32
    scf.if %2 {
      %cst_11 = arith.constant 0.000000e+00 : f32
      %14 = vector.broadcast %cst_11 : f32 to vector<128x128xf32>
      %c0_12 = arith.constant 0 : index
      %c0_13 = arith.constant 0 : index
      %15 = vector.load %arg7[%c0_12, %c0_13] : memref<128x128xf32, #tpu.memory_space<vmem>>, vector<128x128xf32>
      tpu.vector_store %arg7[%c0_12, %c0_13], %14 {strides = array<i32>} : memref<128x128xf32, #tpu.memory_space<vmem>>, vector<128x128xf32>,
    } else {
    }
    %c0 = arith.constant 0 : index
    %c0_1 = arith.constant 0 : index
    %3 = vector.load %arg7[%c0, %c0_1] : memref<128x128xf32, #tpu.memory_space<vmem>>, vector<128x128xf32>
    %c0_2 = arith.constant 0 : index
    %c0_3 = arith.constant 0 : index
    %c0_4 = arith.constant 0 : index
    %4 = vector.load %arg4[%c0_2, %c0_3, %c0_4] : memref<1x128x128xbf16, #tpu.memory_space<vmem>>, vector<1x128x128xbf16>
    %5 = vector.shape_cast %4 : vector<1x128x128xbf16> to vector<128x128xbf16>
    %c0_5 = arith.constant 0 : index
    %c0_6 = arith.constant 0 : index
    %c0_7 = arith.constant 0 : index
    %6 = vector.load %arg5[%c0_5, %c0_6, %c0_7] : memref<1x128x128xbf16, #tpu.memory_space<vmem>>, vector<1x128x128xbf16>
    %7 = vector.shape_cast %6 : vector<1x128x128xbf16> to vector<128x128xbf16>
    %cst = arith.constant dense<0.000000e+00> : vector<128x128xf32>
    %8 = tpu.matmul %5, %7, %cst {dimension_numbers = #tpu.dot_dimension_numbers<[1], [0], [0], [1], [0, 0, 1, 1], [], []>} : vector<128x128xbf16>, vector<128x128xbf16>, vector<128x128xf32> -> vector<128x128xf32>
    %9 = arith.addf %3, %8 : vector<128x128xf32>
    %c0_8 = arith.constant 0 : index
    %c0_9 = arith.constant 0 : index
    %10 = vector.load %arg7[%c0_8, %c0_9] : memref<128x128xf32, #tpu.memory_space<vmem>>, vector<128x128xf32>
    tpu.vector_store %arg7[%c0_8, %c0_9], %9 {strides = array<i32>} : memref<128x128xf32, #tpu.memory_space<vmem>>, vector<128x128xf32>,
    %c2_i32 = arith.constant 2 : i32
    %11 = arith.cmpi eq, %arg3, %c2_i32 : i32
    %12 = arith.extui %11 : i1 to i32
    %c0_i32_10 = arith.constant 0 : i32
    %13 = arith.cmpi ne, %12, %c0_i32_10 : i32
    scf.if %13 {
      %c0_11 = arith.constant 0 : index
      %c0_12 = arith.constant 0 : index
      %14 = vector.load %arg7[%c0_11, %c0_12] : memref<128x128xf32, #tpu.memory_space<vmem>>, vector<128x128xf32>
      %c0_13 = arith.constant 0 : index
      %c0_14 = arith.constant 0 : index
      %c0_15 = arith.constant 0 : index
      %15 = vector.load %arg6[%c0_13, %c0_14, %c0_15] : memref<1x128x128xf32, #tpu.memory_space<vmem>>, vector<1x128x128xf32>
      %16 = vector.shape_cast %15 : vector<1x128x128xf32> to vector<128x128xf32>
      %17 = vector.shape_cast %14 : vector<128x128xf32> to vector<1x128x128xf32>
      tpu.vector_store %arg6[%c0_13, %c0_14, %c0_15], %17 {strides = array<i32>} : memref<1x128x128xf32, #tpu.memory_space<vmem>>, vector<1x128x128xf32>,
    } else {
    }
    return
  }
  func.func @transform_0(%arg0: i32, %arg1: i32, %arg2: i32, %arg3: i32) -> (i32, i32, i32) {
    %c0_i32 = arith.constant 0 : i32
    return %arg0, %arg1, %arg3 : i32, i32, i32
  }
  func.func @transform_1(%arg0: i32, %arg1: i32, %arg2: i32, %arg3: i32) -> (i32, i32, i32) {
    %c0_i32 = arith.constant 0 : i32
    return %arg0, %arg3, %arg2 : i32, i32, i32
  }
  func.func @transform_2(%arg0: i32, %arg1: i32, %arg2: i32, %arg3: i32) -> (i32, i32, i32) {
    %c0_i32 = arith.constant 0 : i32
    return %arg0, %arg1, %arg2 : i32, i32, i32
  }
}

</mosaic_0001>

<bundles_post_ra>
// kernel: spiking_flownet_forward.27
= control target key start
LH: loop header
LB: loop body
LE: loop exit
PB: predicated region body
PF: predicated region fallthrough
CT: control target
= control target key end

     0   :  { %v809_v50 = vmov 0.0   ;;  %s1169_s1 = inlined_call_operand.vmem [shape: bf16[128,128], index: 1, kind: input, shape index: {}]   ;;  %s1170_s0 = inlined_call_operand.vmem [shape: bf16[128,128], index: 0, kind: input, shape index: {}]   ;;  %s1171_s2 = inlined_call_operand.vmem [shape: f32[128,128], index: 2, kind: input, shape index: {}, may-alias: {2,5}]   ;;  %s1172_s3 = inlined_call_operand.vmem [shape: f32[128,128], index: 3, kind: input, shape index: {}, may-alias: {3,6}]   ;;  %s1173_s6 = inlined_call_operand.vmem [shape: f32[128,128], index: 6, kind: output, shape index: {2}, may-alias: {3,6}]   ;;  %s1174_s5 = inlined_call_operand.vmem [shape: f32[128,128], index: 5, kind: output, shape index: {1}, may-alias: {2,5}]   ;;  %s1175_s4 = inlined_call_operand.vmem [shape: bf16[128,128], index: 4, kind: output, shape index: {0}]  }
   0x1   :  { %v793_v0 = vld [vmem:[%s1169_s1] sm:$0xff]   ;;  %v794_v1 = vld [vmem:[%s1169_s1 + $0x8] sm:$0xff]   ;;  %v795_v2 = vld [vmem:[%s1169_s1 + $0x10] sm:$0xff]  }
   0x2   :  { %744 = vmatprep.subr.bf16.mxu0 %v793_v0  ;;  %776 = vmatprep.subr.bf16.mxu1 %v793_v0  ;;  %v796_v3 = vld [vmem:[%s1169_s1 + $0x18] sm:$0xff]   ;;  %v801_v4 = vld [vmem:[%s1170_s0] sm:$0xff]   ;;  %v798_v7 = vld [vmem:[%s1169_s1 + $0x28] sm:$0xff]  }
   0x3   :  { %745 = vmatpush3.bf16.msra.mxu0 %v793_v0  ;;  %784 = vmatpush3.bf16.msra.mxu1 %v793_v0  ;;  %v802_v5 = vld [vmem:[%s1170_s0 + $0x20] sm:$0xff]   ;;  %v799_v8 = vld [vmem:[%s1169_s1 + $0x30] sm:$0xff]   ;;  %v800_v9 = vld [vmem:[%s1169_s1 + $0x38] sm:$0xff]  }
   0x4   :  { %746 = vmatprep.subr.bf16.mxu0 %v794_v1  ;;  %777 = vmatprep.subr.bf16.mxu1 %v794_v1  ;;  %v797_v6 = vld [vmem:[%s1169_s1 + $0x20] sm:$0xff]   ;;  %v803_v10 = vld [vmem:[%s1170_s0 + $0x8] sm:$0xff]   ;;  %v805_v12 = vld [vmem:[%s1170_s0 + $0x10] sm:$0xff]  }
   0x5   :  { %760 = vmatprep.mubr.bf16.mxu0 %v801_v4  ;;  %768 = vmatprep.mubr.bf16.mxu1 %v802_v5  ;;  %v804_v11 = vld [vmem:[%s1170_s0 + $0x28] sm:$0xff]   ;;  %v806_v13 = vld [vmem:[%s1170_s0 + $0x30] sm:$0xff]   ;;  %v807_v14 = vld [vmem:[%s1170_s0 + $0x18] sm:$0xff]  }
   0x6   :  { %v808_v15 = vld [vmem:[%s1170_s0 + $0x38] sm:$0xff]   ;;  %v335_v16 = vld [vmem:[%s1171_s2 + $0x10] sm:$0xff]  ;;  %v333_v20 = vld [vmem:[%s1171_s2] sm:$0xff] }
   0x7   :  { %747 = vmatpush3.bf16.msra.mxu0 %v794_v1  ;;  %785 = vmatpush3.bf16.msra.mxu1 %v794_v1  ;;  %v575_v17 = vld [vmem:[%s1172_s3 + $0x10] sm:$0xff]  ;;  %v573_v21 = vld [vmem:[%s1172_s3] sm:$0xff]  ;;  %v336_v26 = vld [vmem:[%s1171_s2 + $0x18] sm:$0xff] }
   0x8   :  { %748 = vmatprep.subr.bf16.mxu0 %v795_v2  ;;  %778 = vmatprep.subr.bf16.mxu1 %v795_v2  ;;  %v343_v18 = vld [vmem:[%s1171_s2 + $0x50] sm:$0xff]  ;;  %v341_v22 = vld [vmem:[%s1171_s2 + $0x40] sm:$0xff]  ;;  %v576_v27 = vld [vmem:[%s1172_s3 + $0x18] sm:$0xff] }
   0x9   :  { %v583_v19 = vld [vmem:[%s1172_s3 + $0x50] sm:$0xff]  ;;  %v581_v23 = vld [vmem:[%s1172_s3 + $0x40] sm:$0xff]  ;;  %v344_v48 = vld [vmem:[%s1171_s2 + $0x58] sm:$0xff] }
   0xa   :  { %v334_v55 = vld [vmem:[%s1171_s2 + $0x8] sm:$0xff] }
   0xb   :  { %749 = vmatpush3.bf16.msra.mxu0 %v795_v2  ;;  %786 = vmatpush3.bf16.msra.mxu1 %v795_v2  ;;  %v342_v60 = vld [vmem:[%s1171_s2 + $0x48] sm:$0xff] }
   0xc   :  { %750 = vmatprep.subr.bf16.mxu0 %v796_v3  ;;  %779 = vmatprep.subr.bf16.mxu1 %v796_v3 }
   0xf   :  { %751 = vmatpush3.bf16.msra.mxu0 %v796_v3  ;;  %787 = vmatpush3.bf16.msra.mxu1 %v796_v3 }
  0x10   :  { %752 = vmatprep.subr.bf16.mxu0 %v797_v6  ;;  %780 = vmatprep.subr.bf16.mxu1 %v797_v6 }
  0x13   :  { %753 = vmatpush3.bf16.msra.mxu0 %v797_v6  ;;  %788 = vmatpush3.bf16.msra.mxu1 %v797_v6 }
  0x14   :  { %754 = vmatprep.subr.bf16.mxu0 %v798_v7  ;;  %781 = vmatprep.subr.bf16.mxu1 %v798_v7 }
  0x17   :  { %755 = vmatpush3.bf16.msra.mxu0 %v798_v7  ;;  %789 = vmatpush3.bf16.msra.mxu1 %v798_v7 }
  0x18   :  { %756 = vmatprep.subr.bf16.mxu0 %v799_v8  ;;  %782 = vmatprep.subr.bf16.mxu1 %v799_v8 }
  0x1b   :  { %757 = vmatpush3.bf16.msra.mxu0 %v799_v8  ;;  %790 = vmatpush3.bf16.msra.mxu1 %v799_v8 }
  0x1c   :  { %758 = vmatprep.subr.bf16.mxu0 %v800_v9  ;;  %783 = vmatprep.subr.bf16.mxu1 %v800_v9 }
  0x1f   :  { %759 = vmatpush3.bf16.msra.mxu0 %v800_v9  ;;  %791 = vmatpush3.bf16.msra.mxu1 %v800_v9 }
  0x22   :  { %761 = vmatmul.mubr.bf16.vlgmr.msra.gmra.mrb[0].mxu0 %v803_v10  ;;  %769 = vmatmul.mubr.bf16.vlgmr.msra.gmra.mrb[0].mxu1 %v804_v11 }
  0x23   :  { %764 = vmatprep.mubr.bf16.mxu0 %v805_v12  ;;  %772 = vmatprep.mubr.bf16.mxu1 %v806_v13 }
  0x2a   :  { %765 = vmatmul.mubr.bf16.gmra.mrb[4].mxu0 %v807_v14  ;;  %773 = vmatmul.mubr.bf16.gmra.mrb[4].mxu1 %v808_v15 }
  0xf5   :  { %v762_v24 = vpop.f32.mrb[0].mxu0  ;;  %v770_v25 = vpop.f32.mrb[0].mxu1 }
  0xf6   :  { %v351_v28 = vadd.f32 %v762_v24, %v335_v16  ;;  %v591_v29 = vadd.f32 %v762_v24, %v575_v17  ;;  %v359_v30 = vadd.f32 %v770_v25, %v343_v18  ;;  %v599_v31 = vadd.f32 %v770_v25, %v583_v19  ;;  %v219_v32 = vpop.f32.mrb[1].mxu0  ;;  %v251_v33 = vpop.f32.mrb[1].mxu1 }
  0xf7   :  { %v349_v34 = vadd.f32 %v333_v20, %v219_v32  ;;  %v589_v35 = vadd.f32 %v573_v21, %v219_v32  ;;  %v357_v36 = vadd.f32 %v341_v22, %v251_v33  ;;  %v597_v37 = vadd.f32 %v581_v23, %v251_v33  ;;  %v763_v38 = vpop.f32.mrb[2].mxu0  ;;  %v771_v39 = vpop.f32.mrb[2].mxu1 }
  0xf8   :  { %vm367_vm0 = vcmp.gt.f32.partialorder %v351_v28, 0.75  ;;  %607 = vst [vmem:[%s1173_s6 + $0x10] sm:$0xff] %v591_v29  ;;  %vm375_vm1 = vcmp.gt.f32.partialorder %v359_v30, 0.75  ;;  %615 = vst [vmem:[%s1173_s6 + $0x50] sm:$0xff] %v599_v31  ;;  %v352_v40 = vadd.f32 %v763_v38, %v336_v26  ;;  %v592_v41 = vadd.f32 %v763_v38, %v576_v27  ;;  %v222_v42 = vpop.f32.mrb[3].mxu0  ;;  %v929_v43 = vpop.f32.mrb[3].mxu1 }
  0xf9   :  { %v383_v44 = vsel %vm367_vm0, %v351_v28, 0.0  ;;  %v391_v45 = vsel %vm375_vm1, %v359_v30, 0.0  ;;  %vm365_vm2 = vcmp.gt.f32.partialorder %v349_v34, 0.75  ;;  %605 = vst [vmem:[%s1173_s6] sm:$0xff] %v589_v35  ;;  %vm373_vm3 = vcmp.gt.f32.partialorder %v357_v36, 0.75  ;;  %613 = vst [vmem:[%s1173_s6 + $0x40] sm:$0xff] %v597_v37 }
  0xfa   :  { %v399_v46 = vsub.f32 %v351_v28, %v383_v44  ;;  %vm447_vm4 = vcmp.gt.f32.partialorder %v383_v44, 1e-05  ;;  %v407_v47 = vsub.f32 %v359_v30, %v391_v45  ;;  %vm455_vm5 = vcmp.gt.f32.partialorder %v391_v45, 1e-05  ;;  %608 = vst [vmem:[%s1173_s6 + $0x18] sm:$0xff] %v592_v41 }
  0xfb   :  { %v651_v51 = vsel %vm447_vm4, 1.0, %v809_v50  ;;  %v948_v52 = vsel %vm455_vm5, 1.0, %v809_v50  ;;  %v381_v53 = vsel %vm365_vm2, %v349_v34, 0.0  ;;  %v389_v54 = vsel %vm373_vm3, %v357_v36, 0.0 }
  0xfc   :  { %v415_v57 = vmul.f32 0.9, %v399_v46  ;;  %v423_v58 = vmul.f32 0.9, %v407_v47  ;;  %v397_v59 = vsub.f32 %v349_v34, %v381_v53  ;;  %vm445_vm6 = vcmp.gt.f32.partialorder %v381_v53, 1e-05 }
  0xfd   :  { %v960_v61 = vsel %vm445_vm6, 1.0, %v809_v50  ;;  %v405_v62 = vsub.f32 %v357_v36, %v389_v54  ;;  %vm453_vm7 = vcmp.gt.f32.partialorder %v389_v54, 1e-05  ;;  %vm368_vm8 = vcmp.gt.f32.partialorder %v352_v40, 0.75  ;;  %v766_v0 = vpop.f32.mrb[4].mxu0  ;;  %v965_v1 = vpop.f32.mrb[4].mxu1 }
  0xfe   :  { %431 = vst [vmem:[%s1174_s5 + $0x10] sm:$0xff] %v415_v57  ;;  %439 = vst [vmem:[%s1174_s5 + $0x50] sm:$0xff] %v423_v58  ;;  %v413_v2 = vmul.f32 0.9, %v397_v59  ;;  %v974_v3 = vsel %vm453_vm7, 1.0, %v809_v50  ;;  %v384_v4 = vsel %vm368_vm8, %v352_v40, 0.0  ;;  %v360_v5 = vadd.f32 %v771_v39, %v344_v48 }
  0xff   :  { %v976_v6 = vpop.f32.mrb[5].mxu0  ;;  %v978_v7 = vpop.f32.mrb[5].mxu1  ;;  %v421_v8 = vmul.f32 0.9, %v405_v62  ;;  %v400_v9 = vsub.f32 %v352_v40, %v384_v4  ;;  %vm448_vm9 = vcmp.gt.f32.partialorder %v384_v4, 1e-05  ;;  %v350_v14 = vadd.f32 %v334_v55, %v222_v42 }
 0x100   :  { %v980_v11 = vpop.f32.mrb[6].mxu0  ;;  %v982_v12 = vpop.f32.mrb[6].mxu1  ;;  %429 = vst [vmem:[%s1174_s5] sm:$0xff] %v413_v2  ;;  %v652_v13 = vsel %vm448_vm9, 1.0, %v809_v50  ;;  %vm376_vm10 = vcmp.gt.f32.partialorder %v360_v5, 0.75  ;;  %v358_v22 = vadd.f32 %v342_v60, %v929_v43 }
 0x101   :  { %v584_v49 = vld [vmem:[%s1172_s3 + $0x58] sm:$0xff]  ;;  %v574_v56 = vld [vmem:[%s1172_s3 + $0x8] sm:$0xff]  ;;  %v991_v17 = vpop.f32.mrb[7].mxu0  ;;  %v993_v18 = vpop.f32.mrb[7].mxu1  ;;  %v416_v19 = vmul.f32 0.9, %v400_v9  ;;  %v701_v20 = vpack.c.bf16 %v652_v13, %v651_v51 }
 0x102   :  { %v582_v63 = vld [vmem:[%s1172_s3 + $0x48] sm:$0xff]  ;;  %v600_v10 = vadd.f32 %v771_v39, %v584_v49  ;;  %v590_v15 = vadd.f32 %v574_v56, %v222_v42  ;;  %v392_v21 = vsel %vm376_vm10, %v360_v5, 0.0  ;;  %vm366_vm12 = vcmp.gt.f32.partialorder %v350_v14, 0.75 }
 0x103   :  { %v408_v23 = vsub.f32 %v360_v5, %v392_v21  ;;  %vm456_vm11 = vcmp.gt.f32.partialorder %v392_v21, 1e-05  ;;  %v598_v24 = vadd.f32 %v582_v63, %v929_v43  ;;  %721 = vst [vmem:[%s1175_s4 + $0x8] sm:$0xff] %v701_v20   ;;  %v382_v27 = vsel %vm366_vm12, %v350_v14, 0.0 }
 0x104   :  { %616 = vst [vmem:[%s1173_s6 + $0x58] sm:$0xff] %v600_v10  ;;  %606 = vst [vmem:[%s1173_s6 + $0x8] sm:$0xff] %v590_v15  ;;  %v660_v26 = vsel %vm456_vm11, 1.0, %v809_v50  ;;  %vm374_vm13 = vcmp.gt.f32.partialorder %v358_v22, 0.75  ;;  %v398_v31 = vsub.f32 %v350_v14, %v382_v27  ;;  %vm446_vm14 = vcmp.gt.f32.partialorder %v382_v27, 1e-05 }
 0x105   :  { %v424_v29 = vmul.f32 0.9, %v408_v23  ;;  %v713_v30 = vpack.c.bf16 %v660_v26, %v948_v52  ;;  %v650_v34 = vsel %vm446_vm14, 1.0, %v809_v50  ;;  %v390_v35 = vsel %vm374_vm13, %v358_v22, 0.0 }
 0x106   :  { %v414_v37 = vmul.f32 0.9, %v398_v31  ;;  %v698_v38 = vpack.c.bf16 %v650_v34, %v960_v61  ;;  %v406_v39 = vsub.f32 %v358_v22, %v390_v35  ;;  %vm454_vm0 = vcmp.gt.f32.partialorder %v390_v35, 1e-05 }
 0x107   :  { %v339_v16 = vld [vmem:[%s1171_s2 + $0x30] sm:$0xff]  ;;  %725 = vst [vmem:[%s1175_s4 + $0x28] sm:$0xff] %v713_v30   ;;  %v658_v42 = vsel %vm454_vm0, 1.0, %v809_v50 }
 0x108   :  { %437 = vst [vmem:[%s1174_s5 + $0x40] sm:$0xff] %v421_v8  ;;  %432 = vst [vmem:[%s1174_s5 + $0x18] sm:$0xff] %v416_v19  ;;  %v355_v28 = vadd.f32 %v766_v0, %v339_v16  ;;  %v422_v48 = vmul.f32 0.9, %v406_v39  ;;  %v710_v49 = vpack.c.bf16 %v658_v42, %v974_v3 }
 0x109   :  { %699 = vst [vmem:[%s1175_s4] sm:$0xff] %v698_v38  }
 0x10a   :  { %vm371_vm15 = vcmp.gt.f32.partialorder %v355_v28, 0.75  ;;  %724 = vst [vmem:[%s1175_s4 + $0x20] sm:$0xff] %v710_v49  }
 0x10b   :  { %v579_v25 = vld [vmem:[%s1172_s3 + $0x30] sm:$0xff]  ;;  %v387_v43 = vsel %vm371_vm15, %v355_v28, 0.0 }
 0x10c   :  { %614 = vst [vmem:[%s1173_s6 + $0x48] sm:$0xff] %v598_v24  ;;  %v595_v36 = vadd.f32 %v766_v0, %v579_v25  ;;  %v403_v51 = vsub.f32 %v355_v28, %v387_v43  ;;  %vm451_vm1 = vcmp.gt.f32.partialorder %v387_v43, 1e-05 }
 0x10d   :  { %v655_v5 = vsel %vm451_vm1, 1.0, %v809_v50 }
 0x10e   :  { %v419_v56 = vmul.f32 0.9, %v403_v51 }
 0x10f   :  { %v347_v32 = vld [vmem:[%s1171_s2 + $0x70] sm:$0xff] }
 0x110   :  { %440 = vst [vmem:[%s1174_s5 + $0x58] sm:$0xff] %v424_v29  ;;  %v363_v44 = vadd.f32 %v965_v1, %v347_v32 }
 0x112   :  { %vm379_vm2 = vcmp.gt.f32.partialorder %v363_v44, 0.75 }
 0x113   :  { %v587_v33 = vld [vmem:[%s1172_s3 + $0x70] sm:$0xff]  ;;  %v577_v41 = vld [vmem:[%s1172_s3 + $0x20] sm:$0xff]  ;;  %v395_v57 = vsel %vm379_vm2, %v363_v44, 0.0 }
 0x114   :  { %611 = vst [vmem:[%s1173_s6 + $0x30] sm:$0xff] %v595_v36  ;;  %v603_v45 = vadd.f32 %v965_v1, %v587_v33  ;;  %v593_v54 = vadd.f32 %v577_v41, %v976_v6  ;;  %v411_v60 = vsub.f32 %v363_v44, %v395_v57  ;;  %vm459_vm3 = vcmp.gt.f32.partialorder %v395_v57, 1e-05 }
 0x116   :  { %v427_v1 = vmul.f32 0.9, %v411_v60 }
 0x117   :  { %v337_v40 = vld [vmem:[%s1171_s2 + $0x20] sm:$0xff] }
 0x118   :  { %v345_v46 = vld [vmem:[%s1171_s2 + $0x60] sm:$0xff]  ;;  %v353_v53 = vadd.f32 %v337_v40, %v976_v6  ;;  %v663_v6 = vsel %vm459_vm3, 1.0, %v809_v50 }
 0x119   :  { %430 = vst [vmem:[%s1174_s5 + $0x8] sm:$0xff] %v414_v37  ;;  %v361_v58 = vadd.f32 %v345_v46, %v978_v7 }
 0x11a   :  { %vm369_vm4 = vcmp.gt.f32.partialorder %v353_v53, 0.75 }
 0x11b   :  { %v585_v47 = vld [vmem:[%s1172_s3 + $0x60] sm:$0xff]  ;;  %v385_v62 = vsel %vm369_vm4, %v353_v53, 0.0  ;;  %vm377_vm5 = vcmp.gt.f32.partialorder %v361_v58, 0.75 }
 0x11c   :  { %619 = vst [vmem:[%s1173_s6 + $0x70] sm:$0xff] %v603_v45  ;;  %v601_v59 = vadd.f32 %v585_v47, %v978_v7  ;;  %v401_v2 = vsub.f32 %v353_v53, %v385_v62  ;;  %v393_v3 = vsel %vm377_vm5, %v361_v58, 0.0  ;;  %vm449_vm7 = vcmp.gt.f32.partialorder %v385_v62, 1e-05 }
 0x11d   :  { %v409_v7 = vsub.f32 %v361_v58, %v393_v3  ;;  %vm457_vm12 = vcmp.gt.f32.partialorder %v393_v3, 1e-05 }
 0x11e   :  { %v417_v10 = vmul.f32 0.9, %v401_v2  ;;  %v661_v38 = vsel %vm457_vm12, 1.0, %v809_v50 }
 0x11f   :  { %v425_v15 = vmul.f32 0.9, %v409_v7 }
 0x120   :  { %v340_v52 = vld [vmem:[%s1171_s2 + $0x38] sm:$0xff] }
 0x121   :  { %438 = vst [vmem:[%s1174_s5 + $0x48] sm:$0xff] %v422_v48  ;;  %v356_v61 = vadd.f32 %v980_v11, %v340_v52  ;;  %435 = vst [vmem:[%s1174_s5 + $0x30] sm:$0xff] %v419_v56 }
 0x123   :  { %v580_v55 = vld [vmem:[%s1172_s3 + $0x38] sm:$0xff]  ;;  %vm372_vm6 = vcmp.gt.f32.partialorder %v356_v61, 0.75 }
 0x124   :  { %609 = vst [vmem:[%s1173_s6 + $0x20] sm:$0xff] %v593_v54  ;;  %617 = vst [vmem:[%s1173_s6 + $0x60] sm:$0xff] %v601_v59  ;;  %v596_v63 = vadd.f32 %v980_v11, %v580_v55  ;;  %v388_v11 = vsel %vm372_vm6, %v356_v61, 0.0 }
 0x125   :  { %v404_v16 = vsub.f32 %v356_v61, %v388_v11  ;;  %vm452_vm8 = vcmp.gt.f32.partialorder %v388_v11, 1e-05 }
 0x126   :  { %v656_v21 = vsel %vm452_vm8, 1.0, %v809_v50 }
 0x127   :  { %v707_v24 = vpack.c.bf16 %v656_v21, %v655_v5 }
 0x128   :  { %v348_v0 = vld [vmem:[%s1171_s2 + $0x78] sm:$0xff]  ;;  %v338_v8 = vld [vmem:[%s1171_s2 + $0x28] sm:$0xff] }
 0x129   :  { %443 = vst [vmem:[%s1174_s5 + $0x70] sm:$0xff] %v427_v1  ;;  %v364_v13 = vadd.f32 %v982_v12, %v348_v0  ;;  %v354_v22 = vadd.f32 %v338_v8, %v991_v17  ;;  %723 = vst [vmem:[%s1175_s4 + $0x18] sm:$0xff] %v707_v24  }
 0x12b   :  { %v588_v4 = vld [vmem:[%s1172_s3 + $0x78] sm:$0xff]  ;;  %vm380_vm9 = vcmp.gt.f32.partialorder %v364_v13, 0.75  ;;  %vm370_vm11 = vcmp.gt.f32.partialorder %v354_v22, 0.75 }
 0x12c   :  { %612 = vst [vmem:[%s1173_s6 + $0x38] sm:$0xff] %v596_v63  ;;  %v604_v19 = vadd.f32 %v982_v12, %v588_v4  ;;  %v420_v12 = vmul.f32 0.9, %v404_v16  ;;  %v396_v25 = vsel %vm380_vm9, %v364_v13, 0.0  ;;  %v386_v29 = vsel %vm370_vm11, %v354_v22, 0.0 }
 0x12d   :  { %v412_v27 = vsub.f32 %v364_v13, %v396_v25  ;;  %vm460_vm10 = vcmp.gt.f32.partialorder %v396_v25, 1e-05  ;;  %v402_v32 = vsub.f32 %v354_v22, %v386_v29  ;;  %vm450_vm14 = vcmp.gt.f32.partialorder %v386_v29, 1e-05 }
 0x12e   :  { %v664_v28 = vsel %vm460_vm10, 1.0, %v809_v50  ;;  %v654_v33 = vsel %vm450_vm14, 1.0, %v809_v50 }
 0x12f   :  { %v428_v30 = vmul.f32 0.9, %v412_v27  ;;  %v719_v31 = vpack.c.bf16 %v664_v28, %v663_v6  ;;  %v418_v35 = vmul.f32 0.9, %v402_v32 }
 0x130   :  { %v346_v14 = vld [vmem:[%s1171_s2 + $0x68] sm:$0xff] }
 0x131   :  { %433 = vst [vmem:[%s1174_s5 + $0x20] sm:$0xff] %v417_v10  ;;  %441 = vst [vmem:[%s1174_s5 + $0x60] sm:$0xff] %v425_v15  ;;  %v362_v26 = vadd.f32 %v346_v14, %v993_v18 }
 0x132   :  { %436 = vst [vmem:[%s1174_s5 + $0x38] sm:$0xff] %v420_v12  ;;  %444 = vst [vmem:[%s1174_s5 + $0x78] sm:$0xff] %v428_v30 }
 0x133   :  { %v578_v9 = vld [vmem:[%s1172_s3 + $0x28] sm:$0xff]  ;;  %vm378_vm13 = vcmp.gt.f32.partialorder %v362_v26, 0.75  ;;  %727 = vst [vmem:[%s1175_s4 + $0x38] sm:$0xff] %v719_v31   ;;  %434 = vst [vmem:[%s1174_s5 + $0x28] sm:$0xff] %v418_v35 }
 0x134   :  { %v586_v20 = vld [vmem:[%s1172_s3 + $0x68] sm:$0xff]  ;;  %v594_v23 = vadd.f32 %v578_v9, %v991_v17  ;;  %v394_v34 = vsel %vm378_vm13, %v362_v26, 0.0 }
 0x135   :  { %620 = vst [vmem:[%s1173_s6 + $0x78] sm:$0xff] %v604_v19  ;;  %v602_v17 = vadd.f32 %v586_v20, %v993_v18  ;;  %v653_v18 = vsel %vm449_vm7, 1.0, %v809_v50  ;;  %v410_v37 = vsub.f32 %v362_v26, %v394_v34  ;;  %vm458_vm15 = vcmp.gt.f32.partialorder %v394_v34, 1e-05 }
 0x136   :  { %610 = vst [vmem:[%s1173_s6 + $0x28] sm:$0xff] %v594_v23  ;;  %v704_v36 = vpack.c.bf16 %v654_v33, %v653_v18  ;;  %v662_v39 = vsel %vm458_vm15, 1.0, %v809_v50 }
 0x137   :  { %618 = vst [vmem:[%s1173_s6 + $0x68] sm:$0xff] %v602_v17  ;;  %v426_v40 = vmul.f32 0.9, %v410_v37  ;;  %v716_v41 = vpack.c.bf16 %v662_v39, %v661_v38 }
 0x138   :  { %722 = vst [vmem:[%s1175_s4 + $0x10] sm:$0xff] %v704_v36  }
 0x139   :  { %442 = vst [vmem:[%s1174_s5 + $0x68] sm:$0xff] %v426_v40  ;;  %726 = vst [vmem:[%s1175_s4 + $0x30] sm:$0xff] %v716_v41  }

// kernel: spiking_flownet_forward.28
= control target key start
LH: loop header
LB: loop body
LE: loop exit
PB: predicated region body
PF: predicated region fallthrough
CT: control target
= control target key end

     0   :  { %s1136_s21 = smov 0   ;;  %s1138_s22 = smov 0   ;;  %s1274_s0 = inlined_call_operand.vmem [shape: bf16[32,640], index: 0, kind: input, shape index: {}]   ;;  %s1275_s1 = inlined_call_operand.vmem [shape: bf16[640,128], index: 1, kind: input, shape index: {}]   ;;  %s1276_s2 = inlined_call_operand.vmem [shape: f32[32,128], index: 2, kind: input, shape index: {}, may-alias: {2,5}]   ;;  %s1277_s3 = inlined_call_operand.vmem [shape: f32[32,128], index: 3, kind: input, shape index: {}, may-alias: {3,6}]   ;;  %s1278_s4 = inlined_call_operand.vmem [shape: bf16[32,128], index: 4, kind: output, shape index: {0}]   ;;  %s1279_s5 = inlined_call_operand.vmem [shape: f32[32,128], index: 5, kind: output, shape index: {1}, may-alias: {2,5}]   ;;  %s1280_s6 = inlined_call_operand.vmem [shape: f32[32,128], index: 6, kind: output, shape index: {2}, may-alias: {3,6}]  }
   0x1   :  { %s1140_s23 = smov 0   ;;  %s1142_s24 = smov 0  }
   0x2   :  { %s1144_s25 = smov 0  }
   0x3 LB: > { %s29_s26 = sadd.s32 1, %s1093_s24  ;;  %p52_p1 = scmp.ne.s32.totalorder %s1085_s22, %s1081_s21  ;;  %s1097_s25 = sphi %s1144_s25, %s17_s25   ;;  %s1093_s24 = sphi %s1142_s24, %s1284_s24   ;;  %s1089_s23 = sphi %s1140_s23, %s1283_s23   ;;  %s1085_s22 = sphi %s1138_s22, %s1282_s22   ;;  %s1081_s21 = sphi %s1136_s21, %s1281_s21  }
   0x4   : > { %p30_p0 = scmp.ge.s32.totalorder %s29_s26, 5  ;;  %p53_p2 = scmp.eq.s32.totalorder %s1097_s25, 0 }
   0x5   : > { %s45_s28 = sadd.s32 1, %s1085_s22  ;;  %p931_p5 = scmp.ge.s32.totalorder %s1097_s25, 5 }
   0x6   : > { %s1286_s26 = smov (%p30_p0, %s29_s26), 0  ;;  %p54_p3 = por %p53_p2, %p52_p1 }
   0x7   : > { %s41_s27 = ssub.s32 %s1093_s24, %s1286_s26  ;;  %270 = sbr.rel (%p931_p5) target bundleno = 21 (0x15), region = 24 }
   0x8   : > { %p43_p4 = scmp.eq.s32.totalorder %s41_s27, 0 }
   0xa   : > { %s1171_s29 = scalar_select %p43_p4, %s1085_s22, %s45_s28  }
   0xe   : > { %273 = sbr.rel (!%p54_p3) target bundleno = 21 (0x15), region = 28  ;;  %s275_s30 = sand.u32 (%p54_p3), 1, %s1085_s22  }
   0xf   : > { %s933_s7 = sshll.u32 (%p54_p3), %s1093_s24, 2  ;;  %s932_s8 = sshll.u32 (%p54_p3), %s275_s30, 4 }
  0x10   : > { %s282_s11 = scalar_lea.vmem (%p54_p3), %s1274_s0, %s933_s7  ;;  %s277_s12 = scalar_lea.vmem (%p54_p3), [#allocation3], %s932_s8 }
  0x11   : > { %v298_v0 = vld [vmem:[%s282_s11] sm:$0xf] (%p54_p3)  ;;  %v300_v1 = vld [vmem:[%s282_s11 + $0x14] sm:$0xf] (%p54_p3)  ;;  %v302_v2 = vld [vmem:[%s282_s11 + $0x28] sm:$0xf] (%p54_p3) }
  0x12   : > { %299 = vst [vmem:[%s277_s12] sm:$0xf] (%p54_p3), %v298_v0  ;;  %301 = vst [vmem:[%s277_s12 + $0x4] sm:$0xf] (%p54_p3), %v300_v1  ;;  %v304_v3 = vld [vmem:[%s282_s11 + $0x3c] sm:$0xf] (%p54_p3) }
  0x13   : > { %303 = vst [vmem:[%s277_s12 + $0x8] sm:$0xf] (%p54_p3), %v302_v2  ;;  %305 = vst [vmem:[%s277_s12 + $0xc] sm:$0xf] (%p54_p3), %v304_v3 }
  0x15 PF: > { %p934_p6 = scmp.ge.s32.totalorder %s1097_s25, 1  ;;  %p347_p7 = scmp.lt.s32.totalorder %s1097_s25, 6 }
  0x17   : > { %p348_p8 = pnand %p934_p6, %p347_p7 }
  0x18   : > { %s354_s13 = sand.u32 (!%p348_p8), 1, %s1081_s21   ;;  %s936_s14 = sshll.u32 (!%p348_p8), %s1089_s23, 4 }
  0x19   : > { %351 = sbr.rel (%p348_p8) target bundleno = 316 (0x13c), region = 73  ;;  %s1183_s15 = sshll.u32 (!%p348_p8), %s354_s13, 4 }
  0x1a   : > { %p428_p9 = scmp.lt.s32.totalorder (!%p348_p8), %s936_s14, 79  ;;  %s356_s20 = scalar_lea.vmem (!%p348_p8), [#allocation3], %s1183_s15 }
  0x1b   : > { %p938_p10 = scmp.ne.s32.totalorder (!%p348_p8), %s1089_s23, 0 }
  0x20   : > { %s1288_s14 = smov (!%p428_p9, %s936_s14), 79  ;;  %485 = sbr.rel (%p938_p10) target bundleno = 39 (0x27), region = 81 }
  0x21   : > { %s937_s16 = sshll.u32 %s1288_s14, 2  ;;  %v1099_v4 = vmov (!%p938_p10), 0.0  }
  0x22   : > { %s1188_s19 = scalar_lea.vmem %s1275_s1, %s937_s16  ;;  %486 = vst [vmem:[#allocation2] sm:$0xff] (!%p938_p10), %v1099_v4  ;;  %487 = vst [vmem:[#allocation2 + $0x8] sm:$0xff] (!%p938_p10), %v1099_v4 }
  0x23   : > { %488 = vst [vmem:[#allocation2 + $0x10] sm:$0xff] (!%p938_p10), %v1099_v4  ;;  %489 = vst [vmem:[#allocation2 + $0x18] sm:$0xff] (!%p938_p10), %v1099_v4 }
  0x27 PF: > { %v1049_v5 = vld [vmem:[%s1188_s19] sm:$0xff]   ;;  %v1050_v6 = vld [vmem:[%s1188_s19 + $0x8] sm:$0xff]   ;;  %v1051_v7 = vld [vmem:[%s1188_s19 + $0x10] sm:$0xff]   ;;  %p949_p11 = scmp.ne.s32.totalorder %s1089_s23, 4 }
  0x28   : > { %987 = vmatprep.subr.bf16.mxu0 %v1049_v5  ;;  %v1052_v8 = vld [vmem:[%s1188_s19 + $0x18] sm:$0xff]   ;;  %v1057_v9 = vld [vmem:[%s356_s20] sm:$0xff]   ;;  %v1054_v11 = vld [vmem:[%s1188_s19 + $0x28] sm:$0xff]   ;;  %v1100_v53 = vmov (!%p949_p11), 0.0  }
  0x29   : > { %988 = vmatpush3.bf16.msra.mxu0 %v1049_v5  ;;  %1003 = vmatprep.mubr.bf16.mxu0 %v1057_v9  ;;  %v1053_v10 = vld [vmem:[%s1188_s19 + $0x20] sm:$0xff]   ;;  %v1055_v12 = vld [vmem:[%s1188_s19 + $0x30] sm:$0xff]   ;;  %v1056_v13 = vld [vmem:[%s1188_s19 + $0x38] sm:$0xff]  }
  0x2a   : > { %989 = vmatprep.subr.bf16.mxu0 %v1050_v6  ;;  %v1058_v14 = vld [vmem:[%s356_s20 + $0x8] sm:$0xff]   ;;  %v492_v15 = vld [vmem:[#allocation2 + $0x10] sm:$0xff]  ;;  %v490_v16 = vld [vmem:[#allocation2] sm:$0xff] }
  0x2b   : > { %v493_v18 = vld [vmem:[#allocation2 + $0x18] sm:$0xff]  ;;  %v491_v21 = vld [vmem:[#allocation2 + $0x8] sm:$0xff]  ;;  %v639_v28 = vld [vmem:[%s1276_s2] sm:$0xff] (!%p949_p11) }
  0x2c   : > { %v640_v31 = vld [vmem:[%s1276_s2 + $0x8] sm:$0xff] (!%p949_p11)  ;;  %v641_v33 = vld [vmem:[%s1276_s2 + $0x10] sm:$0xff] (!%p949_p11)  ;;  %v642_v37 = vld [vmem:[%s1276_s2 + $0x18] sm:$0xff] (!%p949_p11) }
  0x2d   : > { %990 = vmatpush3.bf16.msra.mxu0 %v1050_v6  ;;  %v699_v38 = vld [vmem:[%s1277_s3] sm:$0xff] (!%p949_p11)  ;;  %v700_v41 = vld [vmem:[%s1277_s3 + $0x8] sm:$0xff] (!%p949_p11) }
  0x2e   : > { %991 = vmatprep.subr.bf16.mxu0 %v1051_v7 }
  0x31   : > { %992 = vmatpush3.bf16.msra.mxu0 %v1051_v7 }
  0x32   : > { %993 = vmatprep.subr.bf16.mxu0 %v1052_v8 }
  0x35   : > { %994 = vmatpush3.bf16.msra.mxu0 %v1052_v8 }
  0x36   : > { %995 = vmatprep.subr.bf16.mxu0 %v1053_v10 }
  0x39   : > { %996 = vmatpush3.bf16.msra.mxu0 %v1053_v10 }
  0x3a   : > { %997 = vmatprep.subr.bf16.mxu0 %v1054_v11 }
  0x3d   : > { %998 = vmatpush3.bf16.msra.mxu0 %v1054_v11 }
  0x3e   : > { %999 = vmatprep.subr.bf16.mxu0 %v1055_v12 }
  0x41   : > { %1000 = vmatpush3.bf16.msra.mxu0 %v1055_v12 }
  0x42   : > { %1001 = vmatprep.subr.bf16.mxu0 %v1056_v13 }
  0x45   : > { %1002 = vmatpush3.bf16.msra.mxu0 %v1056_v13 }
  0x48   : > { %1004 = vmatmul.mubr.bf16.vlgmr.msra.gmra.mrb[0].mxu0 %v1058_v14 }
 0x11b   : > { %v1005_v17 = vpop.f32.mrb[0].mxu0  ;;  %634 = sbr.rel (%p949_p11) target bundleno = 316 (0x13c), region = 85 }
 0x11c   : > { %v625_v19 = vadd.f32 %v1005_v17, %v492_v15  ;;  %v608_v20 = vpop.f32.mrb[1].mxu0 }
 0x11d   : > { %v623_v22 = vadd.f32 %v608_v20, %v490_v16  ;;  %v1006_v23 = vpop.f32.mrb[2].mxu0 }
 0x11e   : > { %629 = vst [vmem:[#allocation2 + $0x10] sm:$0xff] %v625_v19  ;;  %v626_v24 = vadd.f32 %v1006_v23, %v493_v18  ;;  %v611_v25 = vpop.f32.mrb[3].mxu0 }
 0x11f   : > { %627 = vst [vmem:[#allocation2] sm:$0xff] %v623_v22  ;;  %v624_v26 = vadd.f32 %v611_v25, %v491_v21 }
 0x120   : > { %630 = vst [vmem:[#allocation2 + $0x18] sm:$0xff] %v626_v24 }
 0x121   : > { %628 = vst [vmem:[#allocation2 + $0x8] sm:$0xff] %v624_v26 }
 0x125   : > { %v637_v32 = vld [vmem:[#allocation2 + $0x10] sm:$0xff] }
 0x126   : > { %v635_v27 = vld [vmem:[#allocation2] sm:$0xff]  ;;  %v645_v35 = vadd.f32 %v641_v33, %v637_v32 }
 0x127   : > { %v643_v30 = vadd.f32 %v639_v28, %v635_v27  ;;  %v638_v36 = vld [vmem:[#allocation2 + $0x18] sm:$0xff]  ;;  %v703_v40 = vadd.f32 %v699_v38, %v635_v27 }
 0x128   : > { %v636_v29 = vld [vmem:[#allocation2 + $0x8] sm:$0xff]  ;;  %v646_v39 = vadd.f32 %v642_v37, %v638_v36  ;;  %vm649_vm2 = vcmp.gt.f32.partialorder %v645_v35, 0.75 }
 0x129   : > { %v644_v34 = vadd.f32 %v640_v31, %v636_v29  ;;  %vm647_vm0 = vcmp.gt.f32.partialorder %v643_v30, 0.75  ;;  %v704_v43 = vadd.f32 %v700_v41, %v636_v29  ;;  %v653_v46 = vsel %vm649_vm2, %v645_v35, 0.0  ;;  %707 = vst [vmem:[%s1280_s6] sm:$0xff] %v703_v40 }
 0x12a   : > { %v651_v42 = vsel %vm647_vm0, %v643_v30, 0.0  ;;  %vm650_vm3 = vcmp.gt.f32.partialorder %v646_v39, 0.75  ;;  %v657_v49 = vsub.f32 %v645_v35, %v653_v46  ;;  %vm669_vm6 = vcmp.gt.f32.partialorder %v653_v46, 1e-05 }
 0x12b   : > { %vm648_vm1 = vcmp.gt.f32.partialorder %v644_v34, 0.75  ;;  %v655_v44 = vsub.f32 %v643_v30, %v651_v42  ;;  %v654_v50 = vsel %vm650_vm3, %v646_v39, 0.0  ;;  %vm667_vm4 = vcmp.gt.f32.partialorder %v651_v42, 1e-05 }
 0x12c   : > { %v652_v45 = vsel %vm648_vm1, %v644_v34, 0.0  ;;  %v658_v52 = vsub.f32 %v646_v39, %v654_v50  ;;  %v950_v54 = vsel %vm667_vm4, 1.0, %v1100_v53  ;;  %v661_v57 = vmul.f32 0.9, %v657_v49 }
 0x12d   : > { %v656_v48 = vsub.f32 %v644_v34, %v652_v45  ;;  %v659_v51 = vmul.f32 0.9, %v655_v44  ;;  %vm668_vm5 = vcmp.gt.f32.partialorder %v652_v45, 1e-05  ;;  %vm670_vm7 = vcmp.gt.f32.partialorder %v654_v50, 1e-05 }
 0x12e   : > { %v951_v58 = vsel %vm668_vm5, 1.0, %v1100_v53  ;;  %v662_v60 = vmul.f32 0.9, %v658_v52  ;;  %665 = vst [vmem:[%s1279_s5 + $0x10] sm:$0xff] %v661_v57  ;;  %v952_v62 = vsel %vm669_vm6, 1.0, %v1100_v53  ;;  %v953_v63 = vsel %vm670_vm7, 1.0, %v1100_v53 }
 0x12f   : > { %v660_v56 = vmul.f32 0.9, %v656_v48  ;;  %663 = vst [vmem:[%s1279_s5] sm:$0xff] %v659_v51  ;;  %v971_v61 = vpack.c.bf16 %v951_v58, %v950_v54  ;;  %v974_v1 = vpack.c.bf16 %v953_v63, %v952_v62 }
 0x130   : > { %v701_v47 = vld [vmem:[%s1277_s3 + $0x10] sm:$0xff]  ;;  %666 = vst [vmem:[%s1279_s5 + $0x18] sm:$0xff] %v662_v60 }
 0x131   : > { %708 = vst [vmem:[%s1280_s6 + $0x8] sm:$0xff] %v704_v43  ;;  %v705_v59 = vadd.f32 %v701_v47, %v637_v32  ;;  %664 = vst [vmem:[%s1279_s5 + $0x8] sm:$0xff] %v660_v56 }
 0x132   : > { %972 = vst [vmem:[%s1278_s4] sm:$0xff] %v971_v61   ;;  %976 = vst [vmem:[%s1278_s4 + $0x8] sm:$0xff] %v974_v1  }
 0x138   : > { %v702_v55 = vld [vmem:[%s1277_s3 + $0x18] sm:$0xff] }
 0x139   : > { %709 = vst [vmem:[%s1280_s6 + $0x10] sm:$0xff] %v705_v59  ;;  %v706_v0 = vadd.f32 %v702_v55, %v638_v36 }
 0x13b   : > { %710 = vst [vmem:[%s1280_s6 + $0x18] sm:$0xff] %v706_v0 }
 0x13c PF: > { %s17_s25 = sadd.s32 1, %s1097_s25   ;;  %s1281_s21 = smov %s1085_s22 }
 0x13d   : > { %p14_p12 = scmp.ge.s32.totalorder %s17_s25, 7   ;;  %s1282_s22 = smov %s1171_s29 }
 0x13e   : > { %s1283_s23 = smov %s1093_s24  ;;  %s1284_s24 = smov %s1286_s26 }
 0x13f   :  { %16 = sbr.rel (!%p14_p12) target bundleno = 3 (0x3), region = 153 }

// kernel: spiking_flownet_forward.29
= control target key start
LH: loop header
LB: loop body
LE: loop exit
PB: predicated region body
PF: predicated region fallthrough
CT: control target
= control target key end

     0   :  { %s1040_s21 = smov 0   ;;  %s1042_s22 = smov 0   ;;  %s1128_s0 = inlined_call_operand.vmem [shape: bf16[8,1152], index: 0, kind: input, shape index: {}]   ;;  %s1129_s1 = inlined_call_operand.vmem [shape: bf16[1152,256], index: 1, kind: input, shape index: {}]   ;;  %s1130_s2 = inlined_call_operand.vmem [shape: f32[8,256], index: 2, kind: input, shape index: {}, may-alias: {2,5}]   ;;  %s1131_s3 = inlined_call_operand.vmem [shape: f32[8,256], index: 3, kind: input, shape index: {}, may-alias: {3,6}]   ;;  %s1132_s4 = inlined_call_operand.vmem [shape: bf16[8,256], index: 4, kind: output, shape index: {0}]   ;;  %s1133_s5 = inlined_call_operand.vmem [shape: f32[8,256], index: 5, kind: output, shape index: {1}, may-alias: {2,5}]   ;;  %s1134_s6 = inlined_call_operand.vmem [shape: f32[8,256], index: 6, kind: output, shape index: {2}, may-alias: {3,6}]  }
   0x1   :  { %s1044_s23 = smov 0  }
   0x2 LB: > { %s29_s24 = sadd.s32 1, %s996_s22  ;;  %p891_p0 = scmp.ge.s32.totalorder %s1000_s23, 1  ;;  %s1000_s23 = sphi %s1044_s23, %s17_s23   ;;  %s996_s22 = sphi %s1042_s22, %s1136_s22   ;;  %s992_s21 = sphi %s1040_s21, %s1135_s21  }
   0x3   : > { %p30_p1 = scmp.ge.s32.totalorder %s29_s24, 9  ;;  %p300_p2 = scmp.lt.s32.totalorder %s1000_s23, 10 }
   0x5   : > { %s1138_s24 = smov (%p30_p1, %s29_s24), 0  ;;  %p301_p3 = pnand %p891_p0, %p300_p2 }
   0x6   : > { %p385_p4 = scmp.lt.s32.totalorder (!%p301_p3), %s992_s21, 8  ;;  %s893_s25 = sshll.u32 (!%p301_p3), %s992_s21, 4 }
   0x7   : > { %304 = sbr.rel (%p301_p3) target bundleno = 287 (0x11f), region = 36  ;;  %p393_p5 = scmp.lt.s32.totalorder (!%p301_p3), %s893_s25, 143 }
   0x8   : > { %p896_p6 = scmp.ne.s32.totalorder (!%p301_p3), %s992_s21, 0 }
   0xe   : > { %s386_s26 = scalar_select %p385_p4, %s992_s21, 8 }
   0xf   : > { %s1140_s25 = smov (!%p393_p5, %s893_s25), 143  ;;  %457 = sbr.rel (%p896_p6) target bundleno = 22 (0x16), region = 40 }
  0x10   : > { %s892_s27 = sshll.u32 %s386_s26, 2  ;;  %s925_s7 = sshll.u32 %s1140_s25, 3  ;;  %v1002_v0 = vmov (!%p896_p6), 0.0  }
  0x11   : > { %s1066_s30 = scalar_lea.vmem %s1128_s0, %s892_s27  ;;  %s1071_s10 = scalar_lea.vmem %s1129_s1, %s925_s7  ;;  %458 = vst [vmem:[#allocation2] sm:$0xff] (!%p896_p6), %v1002_v0  ;;  %459 = vst [vmem:[#allocation2 + $0x8] sm:$0xff] (!%p896_p6), %v1002_v0 }
  0x16 PF: > { %v954_v1 = vld [vmem:[%s1071_s10 + $0x4] ss:$8 sps:$4 sm:$0xff]   ;;  %v956_v2 = vld [vmem:[%s1071_s10] ss:$8 sps:$4 sm:$0xff]   ;;  %v1003_v3 = vmov 0   ;;  %p913_p7 = scmp.ne.s32.totalorder %s992_s21, 8 }
  0x17   : > { %591 = vmatprep.mubr.bf16.mxu0 %v1003_v3  ;;  %559 = vmatprep.subr.bf16.mxu0 %v954_v1  ;;  %v957_v4 = vld [vmem:[%s1071_s10 + $0x14] ss:$8 sps:$4 sm:$0xff]   ;;  %v959_v5 = vld [vmem:[%s1071_s10 + $0x10] ss:$8 sps:$4 sm:$0xff]   ;;  %v960_v6 = vld [vmem:[%s1071_s10 + $0x24] ss:$8 sps:$4 sm:$0xff]  }
  0x18   : > { %560 = vmatpush1.bf16.msra.mxu0 %v956_v2  ;;  %v962_v7 = vld [vmem:[%s1071_s10 + $0x20] ss:$8 sps:$4 sm:$0xff]   ;;  %v963_v8 = vld [vmem:[%s1071_s10 + $0x34] ss:$8 sps:$4 sm:$0xff]   ;;  %v965_v9 = vld [vmem:[%s1071_s10 + $0x30] ss:$8 sps:$4 sm:$0xff]  }
  0x19   : > { %561 = vmatprep.subr.bf16.mxu0 %v957_v4  ;;  %v966_v10 = vld [vmem:[%s1071_s10 + $0x44] ss:$8 sps:$4 sm:$0xff]   ;;  %v968_v11 = vld [vmem:[%s1071_s10 + $0x40] ss:$8 sps:$4 sm:$0xff]   ;;  %v969_v12 = vld [vmem:[%s1071_s10 + $0x54] ss:$8 sps:$4 sm:$0xff]  }
  0x1a   : > { %v971_v13 = vld [vmem:[%s1071_s10 + $0x50] ss:$8 sps:$4 sm:$0xff]   ;;  %v972_v14 = vld [vmem:[%s1071_s10 + $0x64] ss:$8 sps:$4 sm:$0xff]   ;;  %v974_v15 = vld [vmem:[%s1071_s10 + $0x60] ss:$8 sps:$4 sm:$0xff]  }
  0x1b   : > { %v975_v16 = vld [vmem:[%s1071_s10 + $0x74] ss:$8 sps:$4 sm:$0xff]   ;;  %v977_v17 = vld [vmem:[%s1071_s10 + $0x70] ss:$8 sps:$4 sm:$0xff]   ;;  %v462_v18 = vld [vmem:[%s1066_s30] sm:$0xf] }
  0x1c   : > { %562 = vmatpush1.bf16.msra.mxu0 %v959_v5  ;;  %v460_v19 = vld [vmem:[#allocation2] sm:$0xff]  ;;  %v461_v20 = vld [vmem:[#allocation2 + $0x8] sm:$0xff]  ;;  %v1004_v41 = vmov (!%p913_p7), 0.0  }
  0x1d   : > { %563 = vmatprep.subr.bf16.mxu0 %v960_v6  ;;  %v610_v28 = vld [vmem:[%s1130_s2] sm:$0xff] (!%p913_p7)  ;;  %v611_v31 = vld [vmem:[%s1130_s2 + $0x8] sm:$0xff] (!%p913_p7) }
  0x1e   : > { %v639_v32 = vld [vmem:[%s1131_s3] sm:$0xff] (!%p913_p7)  ;;  %v640_v33 = vld [vmem:[%s1131_s3 + $0x8] sm:$0xff] (!%p913_p7) }
  0x20   : > { %564 = vmatpush1.bf16.msra.mxu0 %v962_v7 }
  0x21   : > { %565 = vmatprep.subr.bf16.mxu0 %v963_v8 }
  0x24   : > { %566 = vmatpush1.bf16.msra.mxu0 %v965_v9 }
  0x25   : > { %567 = vmatprep.subr.bf16.mxu0 %v966_v10 }
  0x28   : > { %568 = vmatpush1.bf16.msra.mxu0 %v968_v11 }
  0x29   : > { %569 = vmatprep.subr.bf16.mxu0 %v969_v12 }
  0x2c   : > { %570 = vmatpush1.bf16.msra.mxu0 %v971_v13 }
  0x2d   : > { %571 = vmatprep.subr.bf16.mxu0 %v972_v14 }
  0x30   : > { %572 = vmatpush1.bf16.msra.mxu0 %v974_v15 }
  0x31   : > { %573 = vmatprep.subr.bf16.mxu0 %v975_v16 }
  0x34   : > { %574 = vmatpush1.bf16.msra.mxu0 %v977_v17 }
  0x37   : > { %592 = vmatmul.mubr.bf16.vlgmr.msra.gmra.mrb[0].mxu0 %v462_v18 }
 0x108   : > { %607 = sbr.rel (%p913_p7) target bundleno = 287 (0x11f), region = 44 }
 0x10a   : > { %v593_v21 = vpop.f32.mrb[0].mxu0 }
 0x10b   : > { %v600_v22 = vadd.f32 %v593_v21, %v460_v19  ;;  %v595_v23 = vpop.f32.mrb[1].mxu0 }
 0x10c   : > { %v601_v24 = vadd.f32 %v595_v23, %v461_v20  ;;  %v597_v25 = vpop.f32.mrb[2].mxu0 }
 0x10d   : > { %602 = vst [vmem:[#allocation2] sm:$0xff] %v600_v22  ;;  %v598_v26 = vpop.f32.mrb[3].mxu0 }
 0x10e   : > { %603 = vst [vmem:[#allocation2 + $0x8] sm:$0xff] %v601_v24 }
 0x114   : > { %v608_v27 = vld [vmem:[#allocation2] sm:$0xff] }
 0x115   : > { %v609_v29 = vld [vmem:[#allocation2 + $0x8] sm:$0xff]  ;;  %v612_v30 = vadd.f32 %v610_v28, %v608_v27  ;;  %v641_v35 = vadd.f32 %v639_v32, %v608_v27 }
 0x116   : > { %v613_v34 = vadd.f32 %v611_v31, %v609_v29  ;;  %v642_v36 = vadd.f32 %v640_v33, %v609_v29 }
 0x117   : > { %vm614_vm0 = vcmp.gt.f32.partialorder %v612_v30, 0.75  ;;  %643 = vst [vmem:[%s1134_s6] sm:$0xff] %v641_v35 }
 0x118   : > { %v616_v37 = vsel %vm614_vm0, %v612_v30, 0.0  ;;  %vm615_vm1 = vcmp.gt.f32.partialorder %v613_v34, 0.75  ;;  %644 = vst [vmem:[%s1134_s6 + $0x8] sm:$0xff] %v642_v36 }
 0x119   : > { %v618_v38 = vsub.f32 %v612_v30, %v616_v37  ;;  %v617_v39 = vsel %vm615_vm1, %v613_v34, 0.0  ;;  %vm624_vm2 = vcmp.gt.f32.partialorder %v616_v37, 1e-05 }
 0x11a   : > { %v619_v40 = vsub.f32 %v613_v34, %v617_v39  ;;  %vm625_vm3 = vcmp.gt.f32.partialorder %v617_v39, 1e-05  ;;  %v914_v42 = vsel %vm624_vm2, 1.0, %v1004_v41 }
 0x11b   : > { %v620_v43 = vmul.f32 0.9, %v618_v38  ;;  %v915_v44 = vsel %vm625_vm3, 1.0, %v1004_v41 }
 0x11c   : > { %v621_v45 = vmul.f32 0.9, %v619_v40  ;;  %v926_v46 = vpack.c.bf16 %v915_v44, %v914_v42 }
 0x11d   : > { %622 = vst [vmem:[%s1133_s5] sm:$0xff] %v620_v43 }
 0x11e   : > { %623 = vst [vmem:[%s1133_s5 + $0x8] sm:$0xff] %v621_v45  ;;  %638 = vst [vmem:[%s1132_s4] sm:$0xff] %v926_v46 }
 0x11f PF: > { %s17_s23 = sadd.s32 1, %s1000_s23   ;;  %s1135_s21 = smov %s996_s22 }
 0x120   : > { %p14_p8 = scmp.ge.s32.totalorder %s17_s23, 11   ;;  %s1136_s22 = smov %s1138_s24 }
 0x122   :  { %16 = sbr.rel (!%p14_p8) target bundleno = 2 (0x2), region = 107 }

// kernel: spiking_flownet_forward.30
= control target key start
LH: loop header
LB: loop body
LE: loop exit
PB: predicated region body
PF: predicated region fallthrough
CT: control target
= control target key end

     0   :  { %s1812_s0 = inlined_call_operand.vmem [shape: bf16[8,2304], index: 0, kind: input, shape index: {}]   ;;  %s1813_s1 = inlined_call_operand.vmem [shape: bf16[2304,512], index: 1, kind: input, shape index: {}]   ;;  %s1814_s2 = inlined_call_operand.vmem [shape: f32[8,512], index: 2, kind: input, shape index: {}, may-alias: {2,5}]   ;;  %s1815_s3 = inlined_call_operand.vmem [shape: f32[8,512], index: 3, kind: input, shape index: {}, may-alias: {3,6}]   ;;  %s1816_s4 = inlined_call_operand.hbm [shape: bf16[8,512], index: 4, kind: output, shape index: {0}]   ;;  %s1817_s5 = inlined_call_operand.vmem [shape: f32[8,512], index: 5, kind: output, shape index: {1}, may-alias: {2,5}]   ;;  %s1818_s6 = inlined_call_operand.vmem [shape: f32[8,512], index: 6, kind: output, shape index: {2}, may-alias: {3,6}]  }
   0x1   :  { %1826 = sst [smem:[#allocation15_spill]] %s1813_s1 }
   0x2   :  { %12 = vsyncpa [#allocation5], 0 }
   0x3   :  { %14 = vsyncpa [#allocation5 + $0x1], 0  ;;  %s1501_s21 = smov 0   ;;  %s1503_s22 = smov 0  }
   0x4   :  { %s1505_s23 = smov 0   ;;  %s1507_s24 = smov 0  }
   0x5   :  { %s1509_s25 = smov 0   ;;  %s1511_s26 = smov 0  }
   0x6   :  { %s1513_s27 = smov 0   ;;  %s1515_s28 = smov 0  }
   0x7   :  { %s1517_s29 = smov 0   ;;  %s1519_s30 = smov 0  }
   0x8 LB: > { %1827 = sst [smem:[#allocation7_spill]] %s1433_s23  ;;  %s1143_s7 = sadd.s32 4294967295, %s1461_s30   ;;  %s1461_s30 = sphi %s1519_s30, %s20_s30   ;;  %s1457_s29 = sphi %s1517_s29, %s1850_s29   ;;  %s1453_s28 = sphi %s1515_s28, %s1846_s28   ;;  %s1449_s27 = sphi %s1513_s27, %s1845_s27   ;;  %s1445_s26 = sphi %s1511_s26, %s1844_s26   ;;  %s1441_s25 = sphi %s1509_s25, %s1843_s25   ;;  %s1437_s24 = sphi %s1507_s24, %s1842_s24   ;;  %s1433_s23 = sphi %s1505_s23, %s1841_s23   ;;  %s1429_s22 = sphi %s1503_s22, %s1849_s22   ;;  %s1425_s21 = sphi %s1501_s21, %s1848_s21  }
   0x9   : > { %1828 = sst [smem:[#allocation8_spill]] %s1441_s25  ;;  %s1144_s8 = sadd.s32 4294967294, %s1461_s30  }
   0xa   : > { %1829 = sst [smem:[#allocation9_spill]] %s1453_s28  ;;  %s32_s9 = sadd.s32 1, %s1453_s28 }
   0xb   : > { %1830 = sst [smem:[#allocation10_spill]] %s1457_s29  ;;  %s35_s10 = sadd.s32 1, %s1457_s29 }
   0xc   : > { %p33_p0 = scmp.ge.s32.totalorder %s32_s9, 9  ;;  %s76_s11 = sadd.s32 1, %s1441_s25 }
   0xd   : > { %p83_p1 = scmp.ne.s32.totalorder %s1441_s25, %s1437_s24  ;;  %p84_p2 = scmp.eq.s32.totalorder %s1461_s30, 0 }
   0xe   : > { %s1852_s9 = smov (%p33_p0, %s32_s9), 0  ;;  %s1854_s10 = smov (!%p33_p0, %s35_s10), %s1457_s29 }
   0xf   : > { %1831 = sst [smem:[#allocation11_spill]] %s1852_s9  ;;  %s71_s12 = ssub.s32 %s1453_s28, %s1852_s9 }
  0x10   : > { %p1564_p3 = por %p84_p2, %p83_p1  ;;  %p37_p4 = scmp.ge.s32.totalorder %s1854_s10, 2 }
  0x11   : > { %s160_s14 = sadd.s32 1, %s1433_s23  ;;  %p170_p5 = scmp.ne.s32.totalorder %s1433_s23, %s1429_s22 }
  0x12   : > { %p171_p6 = scmp.eq.s32.totalorder %s1143_s7, 17  ;;  %s1856_s10 = smov (%p37_p4, %s1854_s10), 0 }
  0x13   : > { %1833 = sst [smem:[#allocation12_spill]] %s1856_s10  ;;  %p176_p8 = scmp.ne.s32.totalorder %s1429_s22, %s1425_s21 }
  0x14   : > { %p1573_p7 = por %p171_p6, %p170_p5  ;;  %s72_s16 = ssub.s32 %s1457_s29, %s1856_s10 }
  0x15   : > { %p177_p9 = scmp.eq.s32.totalorder %s1144_s8, 17  ;;  %s73_s17 = sor.u32 %s72_s16, %s71_s12 }
  0x16   : > { %p158_p10 = scmp.eq.s32.totalorder %s72_s16, 0  ;;  %p74_p11 = scmp.eq.s32.totalorder %s73_s17, 0 }
  0x17   : > { %p1581_p12 = por %p177_p9, %p176_p8  ;;  %p1146_p13 = scmp.ge.s32.totalorder %s1461_s30, 18 }
  0x18   : > { %s1586_s19 = scalar_select %p158_p10, %s1433_s23, %s160_s14  }
  0x19   : > { %s1589_s20 = scalar_select %p74_p11, %s1441_s25, %s76_s11  }
  0x1a   : > { %1836 = sst [smem:[#allocation13_spill]] %s1586_s19  ;;  %249 = sbr.rel (%p1146_p13) target bundleno = 59 (0x3b), region = 16 }
  0x1b   : > { %1837 = sst [smem:[#allocation14_spill]] %s1589_s20 }
  0x21   : > { %265 = sbr.rel (!%p1564_p3) target bundleno = 59 (0x3b), region = 24  ;;  %s267_s7 = sand.u32 (%p1564_p3), 1, %s1441_s25  }
  0x22   : > { %s1149_s8 = sshll.u32 (%p1564_p3), %s1457_s29, 1  ;;  %s1147_s12 = sshll.u32 (%p1564_p3), %s267_s7, 8 }
  0x23   : > { %s1209_s16 = sshll.u32 (%p1564_p3), %s1453_s28, 7  ;;  %s1838_s1 = sld [smem:[#allocation15_spill]] (%p1564_p3) }
  0x24   : > { %s273_s17 = sadd.s32 (%p1564_p3), %s1209_s16, %s1149_s8  ;;  %s1605_s13 = scalar_lea.vmem (%p1564_p3), [#allocation3], %s1147_s12 }
  0x25   : > { %s1151_s10 = sshll.u32 (%p1564_p3), %s273_s17, 2 }
  0x29   : > { %s1600_s11 = scalar_lea.vmem %s1838_s1, %s1151_s10 }
  0x2a   : > { %v365_v0 = vld [vmem:[%s1600_s11] sm:$0xff]  ;;  %v367_v1 = vld [vmem:[%s1600_s11 + $0x10] sm:$0xff] }
  0x2b   : > { %v369_v2 = vld [vmem:[%s1600_s11 + $0x20] sm:$0xff]  ;;  %366 = vst [vmem:[%s1605_s13] sm:$0xff] %v365_v0  ;;  %368 = vst [vmem:[%s1605_s13 + $0x8] sm:$0xff] %v367_v1  ;;  %v371_v3 = vld [vmem:[%s1600_s11 + $0x30] sm:$0xff] }
  0x2c   : > { %370 = vst [vmem:[%s1605_s13 + $0x10] sm:$0xff] %v369_v2  ;;  %v373_v4 = vld [vmem:[%s1600_s11 + $0x40] sm:$0xff]  ;;  %v375_v5 = vld [vmem:[%s1600_s11 + $0x50] sm:$0xff]  ;;  %372 = vst [vmem:[%s1605_s13 + $0x18] sm:$0xff] %v371_v3 }
  0x2d   : > { %374 = vst [vmem:[%s1605_s13 + $0x20] sm:$0xff] %v373_v4  ;;  %376 = vst [vmem:[%s1605_s13 + $0x28] sm:$0xff] %v375_v5  ;;  %v377_v6 = vld [vmem:[%s1600_s11 + $0x60] sm:$0xff]  ;;  %v379_v7 = vld [vmem:[%s1600_s11 + $0x70] sm:$0xff] }
  0x2e   : > { %v381_v8 = vld [vmem:[%s1600_s11 + $0x80] sm:$0xff]  ;;  %378 = vst [vmem:[%s1605_s13 + $0x30] sm:$0xff] %v377_v6  ;;  %380 = vst [vmem:[%s1605_s13 + $0x38] sm:$0xff] %v379_v7  ;;  %v383_v9 = vld [vmem:[%s1600_s11 + $0x90] sm:$0xff] }
  0x2f   : > { %382 = vst [vmem:[%s1605_s13 + $0x40] sm:$0xff] %v381_v8  ;;  %v385_v10 = vld [vmem:[%s1600_s11 + $0xa0] sm:$0xff]  ;;  %v387_v11 = vld [vmem:[%s1600_s11 + $0xb0] sm:$0xff]  ;;  %384 = vst [vmem:[%s1605_s13 + $0x48] sm:$0xff] %v383_v9 }
  0x30   : > { %386 = vst [vmem:[%s1605_s13 + $0x50] sm:$0xff] %v385_v10  ;;  %388 = vst [vmem:[%s1605_s13 + $0x58] sm:$0xff] %v387_v11  ;;  %v389_v12 = vld [vmem:[%s1600_s11 + $0xc0] sm:$0xff]  ;;  %v391_v13 = vld [vmem:[%s1600_s11 + $0xd0] sm:$0xff] }
  0x31   : > { %v393_v14 = vld [vmem:[%s1600_s11 + $0xe0] sm:$0xff]  ;;  %390 = vst [vmem:[%s1605_s13 + $0x60] sm:$0xff] %v389_v12  ;;  %392 = vst [vmem:[%s1605_s13 + $0x68] sm:$0xff] %v391_v13  ;;  %v395_v15 = vld [vmem:[%s1600_s11 + $0xf0] sm:$0xff] }
  0x32   : > { %394 = vst [vmem:[%s1605_s13 + $0x70] sm:$0xff] %v393_v14  ;;  %v397_v16 = vld [vmem:[%s1600_s11 + $0x100] sm:$0xff]  ;;  %v399_v17 = vld [vmem:[%s1600_s11 + $0x110] sm:$0xff]  ;;  %396 = vst [vmem:[%s1605_s13 + $0x78] sm:$0xff] %v395_v15 }
  0x33   : > { %398 = vst [vmem:[%s1605_s13 + $0x80] sm:$0xff] %v397_v16  ;;  %400 = vst [vmem:[%s1605_s13 + $0x88] sm:$0xff] %v399_v17  ;;  %v401_v18 = vld [vmem:[%s1600_s11 + $0x120] sm:$0xff]  ;;  %v403_v19 = vld [vmem:[%s1600_s11 + $0x130] sm:$0xff] }
  0x34   : > { %v405_v20 = vld [vmem:[%s1600_s11 + $0x140] sm:$0xff]  ;;  %402 = vst [vmem:[%s1605_s13 + $0x90] sm:$0xff] %v401_v18  ;;  %404 = vst [vmem:[%s1605_s13 + $0x98] sm:$0xff] %v403_v19  ;;  %v407_v21 = vld [vmem:[%s1600_s11 + $0x150] sm:$0xff] }
  0x35   : > { %406 = vst [vmem:[%s1605_s13 + $0xa0] sm:$0xff] %v405_v20  ;;  %v409_v22 = vld [vmem:[%s1600_s11 + $0x160] sm:$0xff]  ;;  %v411_v23 = vld [vmem:[%s1600_s11 + $0x170] sm:$0xff]  ;;  %408 = vst [vmem:[%s1605_s13 + $0xa8] sm:$0xff] %v407_v21 }
  0x36   : > { %410 = vst [vmem:[%s1605_s13 + $0xb0] sm:$0xff] %v409_v22  ;;  %412 = vst [vmem:[%s1605_s13 + $0xb8] sm:$0xff] %v411_v23  ;;  %v413_v24 = vld [vmem:[%s1600_s11 + $0x180] sm:$0xff]  ;;  %v415_v25 = vld [vmem:[%s1600_s11 + $0x190] sm:$0xff] }
  0x37   : > { %v417_v26 = vld [vmem:[%s1600_s11 + $0x1a0] sm:$0xff]  ;;  %414 = vst [vmem:[%s1605_s13 + $0xc0] sm:$0xff] %v413_v24  ;;  %416 = vst [vmem:[%s1605_s13 + $0xc8] sm:$0xff] %v415_v25  ;;  %v419_v27 = vld [vmem:[%s1600_s11 + $0x1b0] sm:$0xff] }
  0x38   : > { %418 = vst [vmem:[%s1605_s13 + $0xd0] sm:$0xff] %v417_v26  ;;  %v421_v28 = vld [vmem:[%s1600_s11 + $0x1c0] sm:$0xff]  ;;  %v423_v29 = vld [vmem:[%s1600_s11 + $0x1d0] sm:$0xff]  ;;  %420 = vst [vmem:[%s1605_s13 + $0xd8] sm:$0xff] %v419_v27 }
  0x39   : > { %422 = vst [vmem:[%s1605_s13 + $0xe0] sm:$0xff] %v421_v28  ;;  %424 = vst [vmem:[%s1605_s13 + $0xe8] sm:$0xff] %v423_v29  ;;  %v425_v30 = vld [vmem:[%s1600_s11 + $0x1e0] sm:$0xff]  ;;  %v427_v31 = vld [vmem:[%s1600_s11 + $0x1f0] sm:$0xff] }
  0x3a   : > { %426 = vst [vmem:[%s1605_s13 + $0xf0] sm:$0xff] %v425_v30  ;;  %428 = vst [vmem:[%s1605_s13 + $0xf8] sm:$0xff] %v427_v31 }
  0x3b PF: > { %p1152_p0 = scmp.ge.s32.totalorder %s1461_s30, 1  ;;  %p459_p1 = scmp.lt.s32.totalorder %s1461_s30, 19 }
  0x3d   : > { %p460_p2 = pnand %p1152_p0, %p459_p1 }
  0x3e   : > { %s466_s9 = sand.u32 (!%p460_p2), 1, %s1437_s24   ;;  %s1822_s10 = sand.u32 (!%p460_p2), 1, %s1429_s22  }
  0x3f   : > { %463 = sbr.rel (%p460_p2) target bundleno = 404 (0x194), region = 70  ;;  %s1153_s7 = sshll.u32 (!%p460_p2), %s466_s9, 8 }
  0x40   : > { %s1674_s8 = sshll.u32 (!%p460_p2), %s1822_s10, 3  ;;  %s1155_s12 = sshll.u32 (!%p460_p2), %s1445_s26, 1 }
  0x41   : > { %s1157_s16 = sshll.u32 (!%p460_p2), %s1449_s27, 1  ;;  %p543_p3 = scmp.lt.s32.totalorder (!%p460_p2), %s1155_s12, 17 }
  0x42   : > { %p555_p4 = scmp.lt.s32.totalorder (!%p460_p2), %s1157_s16, 3  ;;  %s517_s29 = scalar_lea.vmem (!%p460_p2), [#allocation4], %s1674_s8 }
  0x43   : > { %p1165_p5 = scmp.ne.s32.totalorder (!%p460_p2), %s1445_s26, 0 }
  0x46   : > { %s1858_s12 = smov (!%p543_p3, %s1155_s12), 17  ;;  %s1860_s16 = smov (!%p555_p4, %s1157_s16), 3 }
  0x47   : > { %s1156_s17 = sshll.u32 %s1858_s12, 2  ;;  %s1158_s1 = sshll.u32 %s1860_s16, 3  ;;  %v1463_v32 = vmov (!%p1165_p5), 0.0  }
  0x48   : > { %s1681_s13 = scalar_lea.vmem %s1812_s0, %s1156_s17  ;;  %s1686_s9 = scalar_lea.vmem %s1814_s2, %s1158_s1  ;;  %597 = vst [vmem:[#allocation2] sm:$0xff] (!%p1165_p5), %v1463_v32  ;;  %598 = vst [vmem:[#allocation2 + $0x8] sm:$0xff] (!%p1165_p5), %v1463_v32 }
  0x49   : > { %s1691_s20 = scalar_lea.vmem %s1815_s3, %s1158_s1  ;;  %s1696_s12 = scalar_lea.vmem %s1817_s5, %s1158_s1 }
  0x4a   : > { %s1701_s17 = scalar_lea.vmem %s1818_s6, %s1158_s1  ;;  %s1703_s16 = scalar_lea.vmem [#allocation3], %s1153_s7 }
  0x4b   : > { %596 = sbr.rel (%p1165_p5) target bundleno = 82 (0x52), region = 78 }
  0x52 PF: > { %v1301_v33 = vld [vmem:[%s1703_s16 + $0x4] ss:$8 sps:$4 sm:$0xff]   ;;  %v1303_v34 = vld [vmem:[%s1703_s16] ss:$8 sps:$4 sm:$0xff]   ;;  %v1304_v35 = vld [vmem:[%s1703_s16 + $0x14] ss:$8 sps:$4 sm:$0xff]  }
  0x53   : > { %801 = vmatprep.subr.bf16.mxu0 %v1301_v33  ;;  %v1306_v36 = vld [vmem:[%s1703_s16 + $0x10] ss:$8 sps:$4 sm:$0xff]   ;;  %v1307_v37 = vld [vmem:[%s1703_s16 + $0x24] ss:$8 sps:$4 sm:$0xff]   ;;  %v1309_v38 = vld [vmem:[%s1703_s16 + $0x20] ss:$8 sps:$4 sm:$0xff]  }
  0x54   : > { %802 = vmatpush1.bf16.msra.mxu0 %v1303_v34  ;;  %v1310_v39 = vld [vmem:[%s1703_s16 + $0x34] ss:$8 sps:$4 sm:$0xff]   ;;  %v1312_v40 = vld [vmem:[%s1703_s16 + $0x30] ss:$8 sps:$4 sm:$0xff]   ;;  %v1313_v41 = vld [vmem:[%s1703_s16 + $0x44] ss:$8 sps:$4 sm:$0xff]  }
  0x55   : > { %803 = vmatprep.subr.bf16.mxu0 %v1304_v35  ;;  %v1315_v42 = vld [vmem:[%s1703_s16 + $0x40] ss:$8 sps:$4 sm:$0xff]   ;;  %v1316_v43 = vld [vmem:[%s1703_s16 + $0x54] ss:$8 sps:$4 sm:$0xff]   ;;  %v1318_v44 = vld [vmem:[%s1703_s16 + $0x50] ss:$8 sps:$4 sm:$0xff]  }
  0x56   : > { %v1319_v45 = vld [vmem:[%s1703_s16 + $0x64] ss:$8 sps:$4 sm:$0xff]   ;;  %v601_v46 = vld [vmem:[%s1681_s13] sm:$0xff]  ;;  %v1321_v48 = vld [vmem:[%s1703_s16 + $0x60] ss:$8 sps:$4 sm:$0xff]   ;;  %p1200_p6 = scmp.ne.s32.totalorder %s1445_s26, 8 }
  0x57   : > { %v1167_v47 = vcombine.high %v601_v46, %v601_v46  ;;  %v1322_v49 = vld [vmem:[%s1703_s16 + $0x74] ss:$8 sps:$4 sm:$0xff]   ;;  %v1324_v50 = vld [vmem:[%s1703_s16 + $0x70] ss:$8 sps:$4 sm:$0xff]   ;;  %v1325_v51 = vld [vmem:[%s1703_s16 + $0x84] ss:$8 sps:$4 sm:$0xff]   ;;  %v1166_v3 = vcombine.low %v601_v46, %v601_v46 }
  0x58   : > { %804 = vmatpush1.bf16.msra.mxu0 %v1306_v36  ;;  %v1327_v52 = vld [vmem:[%s1703_s16 + $0x80] ss:$8 sps:$4 sm:$0xff]   ;;  %v1328_v53 = vld [vmem:[%s1703_s16 + $0x94] ss:$8 sps:$4 sm:$0xff]   ;;  %v1330_v54 = vld [vmem:[%s1703_s16 + $0x90] ss:$8 sps:$4 sm:$0xff]  }
  0x59   : > { %805 = vmatprep.subr.bf16.mxu0 %v1307_v37  ;;  %833 = vmatprep.mubr.bf16.mxu0 %v1167_v47  ;;  %v1331_v55 = vld [vmem:[%s1703_s16 + $0xa4] ss:$8 sps:$4 sm:$0xff]   ;;  %v1333_v56 = vld [vmem:[%s1703_s16 + $0xa0] ss:$8 sps:$4 sm:$0xff]   ;;  %v1334_v57 = vld [vmem:[%s1703_s16 + $0xb4] ss:$8 sps:$4 sm:$0xff]  }
  0x5a   : > { %v1336_v58 = vld [vmem:[%s1703_s16 + $0xb0] ss:$8 sps:$4 sm:$0xff]   ;;  %v1337_v59 = vld [vmem:[%s1703_s16 + $0xc4] ss:$8 sps:$4 sm:$0xff]   ;;  %v1339_v60 = vld [vmem:[%s1703_s16 + $0xc0] ss:$8 sps:$4 sm:$0xff]  }
  0x5b   : > { %v1340_v61 = vld [vmem:[%s1703_s16 + $0xd4] ss:$8 sps:$4 sm:$0xff]   ;;  %v1342_v62 = vld [vmem:[%s1703_s16 + $0xd0] ss:$8 sps:$4 sm:$0xff]   ;;  %v1343_v63 = vld [vmem:[%s1703_s16 + $0xe4] ss:$8 sps:$4 sm:$0xff]  }
  0x5c   : > { %806 = vmatpush1.bf16.msra.mxu0 %v1309_v38  ;;  %v1345_v0 = vld [vmem:[%s1703_s16 + $0xe0] ss:$8 sps:$4 sm:$0xff]   ;;  %v1346_v1 = vld [vmem:[%s1703_s16 + $0xf4] ss:$8 sps:$4 sm:$0xff]   ;;  %v1348_v2 = vld [vmem:[%s1703_s16 + $0xf0] ss:$8 sps:$4 sm:$0xff]  }
  0x5d   : > { %807 = vmatprep.subr.bf16.mxu0 %v1310_v39  ;;  %v599_v4 = vld [vmem:[#allocation2] sm:$0xff]  ;;  %v600_v5 = vld [vmem:[#allocation2 + $0x8] sm:$0xff]  ;;  %v1464_v26 = vmov (!%p1200_p6), 0.0  }
  0x5e   : > { %v852_v14 = vld [vmem:[%s1686_s9] sm:$0xff] (!%p1200_p6)  ;;  %v853_v15 = vld [vmem:[%s1686_s9 + $0x8] sm:$0xff] (!%p1200_p6) }
  0x5f   : > { %v881_v17 = vld [vmem:[%s1691_s20] sm:$0xff] (!%p1200_p6)  ;;  %v882_v18 = vld [vmem:[%s1691_s20 + $0x8] sm:$0xff] (!%p1200_p6) }
  0x60   : > { %808 = vmatpush1.bf16.msra.mxu0 %v1312_v40 }
  0x61   : > { %809 = vmatprep.subr.bf16.mxu0 %v1313_v41 }
  0x64   : > { %810 = vmatpush1.bf16.msra.mxu0 %v1315_v42 }
  0x65   : > { %811 = vmatprep.subr.bf16.mxu0 %v1316_v43 }
  0x68   : > { %812 = vmatpush1.bf16.msra.mxu0 %v1318_v44 }
  0x69   : > { %813 = vmatprep.subr.bf16.mxu0 %v1319_v45 }
  0x6c   : > { %814 = vmatpush1.bf16.msra.mxu0 %v1321_v48 }
  0x6d   : > { %815 = vmatprep.subr.bf16.mxu0 %v1322_v49 }
  0x70   : > { %816 = vmatpush1.bf16.msra.mxu0 %v1324_v50 }
  0x71   : > { %817 = vmatprep.subr.bf16.mxu0 %v1325_v51 }
  0x74   : > { %818 = vmatpush1.bf16.msra.mxu0 %v1327_v52 }
  0x75   : > { %819 = vmatprep.subr.bf16.mxu0 %v1328_v53 }
  0x78   : > { %820 = vmatpush1.bf16.msra.mxu0 %v1330_v54 }
  0x79   : > { %821 = vmatprep.subr.bf16.mxu0 %v1331_v55 }
  0x7c   : > { %822 = vmatpush1.bf16.msra.mxu0 %v1333_v56 }
  0x7d   : > { %823 = vmatprep.subr.bf16.mxu0 %v1334_v57 }
  0x80   : > { %824 = vmatpush1.bf16.msra.mxu0 %v1336_v58 }
  0x81   : > { %825 = vmatprep.subr.bf16.mxu0 %v1337_v59 }
  0x84   : > { %826 = vmatpush1.bf16.msra.mxu0 %v1339_v60 }
  0x85   : > { %827 = vmatprep.subr.bf16.mxu0 %v1340_v61 }
  0x88   : > { %828 = vmatpush1.bf16.msra.mxu0 %v1342_v62 }
  0x89   : > { %829 = vmatprep.subr.bf16.mxu0 %v1343_v63 }
  0x8c   : > { %830 = vmatpush1.bf16.msra.mxu0 %v1345_v0 }
  0x8d   : > { %831 = vmatprep.subr.bf16.mxu0 %v1346_v1 }
  0x90   : > { %832 = vmatpush1.bf16.msra.mxu0 %v1348_v2 }
  0x93   : > { %834 = vmatmul.mubr.bf16.vlgmr.msra.gmra.mrb[0].mxu0 %v1166_v3 }
 0x164   : > { %849 = sbr.rel (%p1200_p6) target bundleno = 379 (0x17b), region = 82 }
 0x166   : > { %v835_v6 = vpop.f32.mrb[0].mxu0 }
 0x167   : > { %v842_v7 = vadd.f32 %v835_v6, %v599_v4  ;;  %v837_v8 = vpop.f32.mrb[1].mxu0 }
 0x168   : > { %v843_v9 = vadd.f32 %v837_v8, %v600_v5  ;;  %v839_v10 = vpop.f32.mrb[2].mxu0 }
 0x169   : > { %844 = vst [vmem:[#allocation2] sm:$0xff] %v842_v7  ;;  %v840_v11 = vpop.f32.mrb[3].mxu0 }
 0x16a   : > { %845 = vst [vmem:[#allocation2 + $0x8] sm:$0xff] %v843_v9 }
 0x170   : > { %v850_v12 = vld [vmem:[#allocation2] sm:$0xff] }
 0x171   : > { %v851_v13 = vld [vmem:[#allocation2 + $0x8] sm:$0xff]  ;;  %v854_v16 = vadd.f32 %v852_v14, %v850_v12  ;;  %v883_v20 = vadd.f32 %v881_v17, %v850_v12 }
 0x172   : > { %v855_v19 = vadd.f32 %v853_v15, %v851_v13  ;;  %v884_v21 = vadd.f32 %v882_v18, %v851_v13 }
 0x173   : > { %vm856_vm0 = vcmp.gt.f32.partialorder %v854_v16, 0.75  ;;  %885 = vst [vmem:[%s1701_s17] sm:$0xff] %v883_v20 }
 0x174   : > { %v858_v22 = vsel %vm856_vm0, %v854_v16, 0.0  ;;  %vm857_vm1 = vcmp.gt.f32.partialorder %v855_v19, 0.75  ;;  %886 = vst [vmem:[%s1701_s17 + $0x8] sm:$0xff] %v884_v21 }
 0x175   : > { %v860_v23 = vsub.f32 %v854_v16, %v858_v22  ;;  %v859_v24 = vsel %vm857_vm1, %v855_v19, 0.0  ;;  %vm866_vm2 = vcmp.gt.f32.partialorder %v858_v22, 1e-05 }
 0x176   : > { %v861_v25 = vsub.f32 %v855_v19, %v859_v24  ;;  %vm867_vm3 = vcmp.gt.f32.partialorder %v859_v24, 1e-05  ;;  %v1201_v27 = vsel %vm866_vm2, 1.0, %v1464_v26 }
 0x177   : > { %v862_v28 = vmul.f32 0.9, %v860_v23  ;;  %v1202_v29 = vsel %vm867_vm3, 1.0, %v1464_v26 }
 0x178   : > { %v863_v30 = vmul.f32 0.9, %v861_v25  ;;  %v1210_v31 = vpack.c.bf16 %v1202_v29, %v1201_v27 }
 0x179   : > { %864 = vst [vmem:[%s1696_s12] sm:$0xff] %v862_v28 }
 0x17a   : > { %865 = vst [vmem:[%s1696_s12 + $0x8] sm:$0xff] %v863_v30  ;;  %880 = vst [vmem:[%s517_s29] sm:$0xff] %v1210_v31 }
 0x17b PF: > { %s1211_s1 = sshll.u32 %s1449_s27, 7  ;;  %s922_s28 = sshll.u32 %s517_s29, 4  ;;  %s923_s28 = int_to_ptr.vmem [resolvable:$true] %s922_s28 }
 0x17c   : > { %s1755_s26 = scalar_lea.hbm %s1816_s4, %s1211_s1  ;;  %s1839_s19 = sand.u32 1, %s1429_s22  }
 0x17d   : > { %s888_s20 = scalar_lea.sflag [#allocation5], %s1839_s19  ;;  %s1351_s10 = scalar_lea.vmem %s923_s28, 128 }
 0x17e   : > { %p1352_p8 = scmp.ne.s32.totalorder %s923_s28, %s1351_s10  ;;  %s1465_s7 = smov [#allocation4]  }
 0x17f   : > { %s1355_s11 = sshll.u32 %s1465_s7, 4  ;;  %s1356_s11 = int_to_ptr.vmem [resolvable:$false] %s1355_s11 }
 0x180   : > { %p1353_p9 = pnand %p1352_p8, %p1573_p7  ;;  %s1357_s13 = scalar_lea.vmem %s1356_s11, 256 }
 0x181   : > { %p1358_p11 = scmp.lt.s32.totalorder %s923_s28, %s1356_s11  ;;  %p1359_p13 = scmp.lt.s32.totalorder %s1357_s13, %s1351_s10 }
 0x182   : > { %p1354_p10 = pneg %p1353_p9 }
 0x183   : > { %p1360_p0 = por %p1359_p13, %p1358_p11 }
 0x185   : > { %p1361_p1 = pnand %p1360_p0, %p1354_p10 }
 0x187   : > { %1364 = shalt.err (!%p1361_p1)
}
 0x188   : > { %s1365_s27 = scalar_lea.hbm %s1755_s26, 128  ;;  %s1369_s9 = scalar_lea.hbm %s1816_s4, 256 }
 0x189   : > { %p1366_p2 = scmp.ne.s32.totalorder %s1755_s26, %s1365_s27  ;;  %p1370_p5 = scmp.lt.u32.totalorder %s1755_s26, %s1816_s4 }
 0x18a   : > { %p1371_p6 = scmp.lt.u32.totalorder %s1369_s9, %s1365_s27  ;;  %p1373_p9 = scmp.lt.u32.totalorder %s1365_s27, %s1755_s26 }
 0x18b   : > { %p1367_p3 = pnand %p1366_p2, %p1573_p7 }
 0x18c   : > { %p1372_p8 = por %p1371_p6, %p1370_p5 }
 0x18d   : > { %p1368_p4 = pneg %p1367_p3 }
 0x18e   : > { %p1374_p10 = por %p1373_p9, %p1372_p8 }
 0x190   : > { %p1375_p11 = pnand %p1374_p10, %p1368_p4 }
 0x192   : > { %1378 = shalt.err (!%p1375_p11)
}
 0x193   : > { %1212 = dma.vmem_to_hbm [thread:$0]  (%p1573_p7), %s923_s28, 128, %s1755_s26, %s888_s20  }
 0x194 PF: > { %p1218_p13 = scmp.ge.s32.totalorder %s1461_s30, 2  ;;  %s942_s17 = sand.u32 1, %s1425_s21  }
 0x195   : > { %s943_s16 = scalar_lea.sflag [#allocation5], %s942_s17 }
 0x196   : > { %p1215_p0 = pnand %p1218_p13, %p1581_p12 }
 0x198   : > { %1420 = dma.done.wait (!%p1215_p0), %s943_s16, 128  }
 0x199   : > { %1422 = vsyncadd (!%p1215_p0), %s943_s16, 4294967168  ;;  %s20_s30 = sadd.s32 1, %s1461_s30   ;;  %s1840_s29 = sld [smem:[#allocation7_spill]] }
 0x19a   : > { %p17_p1 = scmp.ge.s32.totalorder %s20_s30, 20   ;;  %s1841_s23 = sld [smem:[#allocation13_spill]] }
 0x19b   : > { %s1842_s24 = sld [smem:[#allocation8_spill]]  ;;  %s1843_s25 = sld [smem:[#allocation14_spill]] }
 0x19c   : > { %s1844_s26 = sld [smem:[#allocation9_spill]]  ;;  %s1845_s27 = sld [smem:[#allocation10_spill]] }
 0x19d   : > { %s1846_s28 = sld [smem:[#allocation11_spill]]  ;;  %s1847_s15 = sld [smem:[#allocation12_spill]] }
 0x19e   : > { %s1848_s21 = smov %s1429_s22  ;;  %19 = sbr.rel (!%p17_p1) target bundleno = 8 (0x8), region = 155 }
 0x19f   : > { %s1849_s22 = smov %s1840_s29 }
 0x1a3   : > { %s1850_s29 = smov %s1847_s15 }
 0x1a5   :  { %972 = vsyncpa [#allocation5], 1 }
 0x1a6   :  { %974 = vsyncpa [#allocation5 + $0x1], 1 }

// kernel: spiking_flownet_forward.43
= control target key start
LH: loop header
LB: loop body
LE: loop exit
PB: predicated region body
PF: predicated region fallthrough
CT: control target
= control target key end

     0   :  { %s1518_s12 = smov 0   ;;  %s1520_s13 = smov 0   ;;  %s1830_s0 = inlined_call_operand.vmem [shape: bf16[8,4608], index: 0, kind: input, shape index: {}]   ;;  %s1831_s1 = inlined_call_operand.vmem [shape: bf16[4608,512], index: 1, kind: input, shape index: {}]   ;;  %s1832_s2 = inlined_call_operand.vmem [shape: f32[1,512], index: 2, kind: input, shape index: {}]   ;;  %s1833_s3 = inlined_call_operand.vmem [shape: f32[8,512], index: 3, kind: output, shape index: {}]  }
   0x1   :  { %s1522_s14 = smov 0   ;;  %s1524_s15 = smov 0  }
   0x2   :  { %s1526_s16 = smov 0   ;;  %s1528_s17 = smov 0  }
   0x3   :  { %s1530_s18 = smov 0  }
   0x4 LB: > { %s25_s19 = sadd.s32 1, %s1487_s16  ;;  %s28_s20 = sadd.s32 1, %s1491_s17  ;;  %s1495_s18 = sphi %s1530_s18, %s13_s18   ;;  %s1491_s17 = sphi %s1528_s17, %s1839_s17   ;;  %s1487_s16 = sphi %s1526_s16, %s1838_s16   ;;  %s1483_s15 = sphi %s1524_s15, %s1837_s15   ;;  %s1479_s14 = sphi %s1522_s14, %s1836_s14   ;;  %s1475_s13 = sphi %s1520_s13, %s1835_s13   ;;  %s1471_s12 = sphi %s1518_s12, %s1834_s12  }
   0x5   : > { %p26_p0 = scmp.ge.s32.totalorder %s25_s19, 9  ;;  %p76_p1 = scmp.ne.s32.totalorder %s1475_s13, %s1471_s12 }
   0x6   : > { %p77_p2 = scmp.eq.s32.totalorder %s1495_s18, 0  ;;  %s69_s24 = sadd.s32 1, %s1475_s13 }
   0x7   : > { %s1841_s19 = smov (%p26_p0, %s25_s19), 0  ;;  %s1843_s20 = smov (!%p26_p0, %s28_s20), %s1491_s17 }
   0x8   : > { %p78_p3 = por %p77_p2, %p76_p1  ;;  %p30_p4 = scmp.ge.s32.totalorder %s1843_s20, 2 }
   0x9   : > { %s64_s21 = ssub.s32 %s1487_s16, %s1841_s19  ;;  %p1198_p6 = scmp.ge.s32.totalorder %s1495_s18, 18 }
   0xa   : > { %s1845_s20 = smov (%p30_p4, %s1843_s20), 0 }
   0xb   : > { %s65_s22 = ssub.s32 %s1491_s17, %s1845_s20  ;;  %156 = sbr.rel (%p1198_p6) target bundleno = 57 (0x39), region = 16 }
   0xc   : > { %s66_s23 = sor.u32 %s65_s22, %s64_s21 }
   0xd   : > { %p67_p5 = scmp.eq.s32.totalorder %s66_s23, 0 }
   0xf   : > { %s1569_s25 = scalar_select %p67_p5, %s1475_s13, %s69_s24  }
  0x12   : > { %172 = sbr.rel (!%p78_p3) target bundleno = 57 (0x39), region = 24  ;;  %s174_s26 = sand.u32 (%p78_p3), 1, %s1475_s13  }
  0x13   : > { %s1201_s27 = sshll.u32 (%p78_p3), %s1491_s17, 1  ;;  %s1199_s28 = sshll.u32 (%p78_p3), %s174_s26, 9 }
  0x14   : > { %s1283_s29 = sshll.u32 (%p78_p3), %s1487_s16, 8  ;;  %s1583_s8 = scalar_lea.vmem (%p78_p3), [#allocation3], %s1199_s28 }
  0x15   : > { %s180_s30 = sadd.s32 (%p78_p3), %s1283_s29, %s1201_s27 }
  0x16   : > { %s1203_s4 = sshll.u32 (%p78_p3), %s180_s30, 2 }
  0x17   : > { %s1578_s7 = scalar_lea.vmem (%p78_p3), %s1831_s1, %s1203_s4 }
  0x18   : > { %v336_v0 = vld [vmem:[%s1578_s7] sm:$0xff] (%p78_p3)  ;;  %v338_v1 = vld [vmem:[%s1578_s7 + $0x10] sm:$0xff] (%p78_p3) }
  0x19   : > { %v340_v2 = vld [vmem:[%s1578_s7 + $0x20] sm:$0xff]  ;;  %337 = vst [vmem:[%s1583_s8] sm:$0xff] %v336_v0  ;;  %339 = vst [vmem:[%s1583_s8 + $0x8] sm:$0xff] %v338_v1  ;;  %v342_v3 = vld [vmem:[%s1578_s7 + $0x30] sm:$0xff] }
  0x1a   : > { %341 = vst [vmem:[%s1583_s8 + $0x10] sm:$0xff] %v340_v2  ;;  %v344_v4 = vld [vmem:[%s1578_s7 + $0x40] sm:$0xff]  ;;  %v346_v5 = vld [vmem:[%s1578_s7 + $0x50] sm:$0xff]  ;;  %343 = vst [vmem:[%s1583_s8 + $0x18] sm:$0xff] %v342_v3 }
  0x1b   : > { %345 = vst [vmem:[%s1583_s8 + $0x20] sm:$0xff] %v344_v4  ;;  %347 = vst [vmem:[%s1583_s8 + $0x28] sm:$0xff] %v346_v5  ;;  %v348_v6 = vld [vmem:[%s1578_s7 + $0x60] sm:$0xff]  ;;  %v350_v7 = vld [vmem:[%s1578_s7 + $0x70] sm:$0xff] }
  0x1c   : > { %v352_v8 = vld [vmem:[%s1578_s7 + $0x80] sm:$0xff]  ;;  %349 = vst [vmem:[%s1583_s8 + $0x30] sm:$0xff] %v348_v6  ;;  %351 = vst [vmem:[%s1583_s8 + $0x38] sm:$0xff] %v350_v7  ;;  %v354_v9 = vld [vmem:[%s1578_s7 + $0x90] sm:$0xff] }
  0x1d   : > { %353 = vst [vmem:[%s1583_s8 + $0x40] sm:$0xff] %v352_v8  ;;  %v356_v10 = vld [vmem:[%s1578_s7 + $0xa0] sm:$0xff]  ;;  %v358_v11 = vld [vmem:[%s1578_s7 + $0xb0] sm:$0xff]  ;;  %355 = vst [vmem:[%s1583_s8 + $0x48] sm:$0xff] %v354_v9 }
  0x1e   : > { %357 = vst [vmem:[%s1583_s8 + $0x50] sm:$0xff] %v356_v10  ;;  %359 = vst [vmem:[%s1583_s8 + $0x58] sm:$0xff] %v358_v11  ;;  %v360_v12 = vld [vmem:[%s1578_s7 + $0xc0] sm:$0xff]  ;;  %v362_v13 = vld [vmem:[%s1578_s7 + $0xd0] sm:$0xff] }
  0x1f   : > { %v364_v14 = vld [vmem:[%s1578_s7 + $0xe0] sm:$0xff]  ;;  %361 = vst [vmem:[%s1583_s8 + $0x60] sm:$0xff] %v360_v12  ;;  %363 = vst [vmem:[%s1583_s8 + $0x68] sm:$0xff] %v362_v13  ;;  %v366_v15 = vld [vmem:[%s1578_s7 + $0xf0] sm:$0xff] }
  0x20   : > { %365 = vst [vmem:[%s1583_s8 + $0x70] sm:$0xff] %v364_v14  ;;  %v368_v16 = vld [vmem:[%s1578_s7 + $0x100] sm:$0xff]  ;;  %v370_v17 = vld [vmem:[%s1578_s7 + $0x110] sm:$0xff]  ;;  %367 = vst [vmem:[%s1583_s8 + $0x78] sm:$0xff] %v366_v15 }
  0x21   : > { %369 = vst [vmem:[%s1583_s8 + $0x80] sm:$0xff] %v368_v16  ;;  %371 = vst [vmem:[%s1583_s8 + $0x88] sm:$0xff] %v370_v17  ;;  %v372_v18 = vld [vmem:[%s1578_s7 + $0x120] sm:$0xff]  ;;  %v374_v19 = vld [vmem:[%s1578_s7 + $0x130] sm:$0xff] }
  0x22   : > { %v376_v20 = vld [vmem:[%s1578_s7 + $0x140] sm:$0xff]  ;;  %373 = vst [vmem:[%s1583_s8 + $0x90] sm:$0xff] %v372_v18  ;;  %375 = vst [vmem:[%s1583_s8 + $0x98] sm:$0xff] %v374_v19  ;;  %v378_v21 = vld [vmem:[%s1578_s7 + $0x150] sm:$0xff] }
  0x23   : > { %377 = vst [vmem:[%s1583_s8 + $0xa0] sm:$0xff] %v376_v20  ;;  %v380_v22 = vld [vmem:[%s1578_s7 + $0x160] sm:$0xff]  ;;  %v382_v23 = vld [vmem:[%s1578_s7 + $0x170] sm:$0xff]  ;;  %379 = vst [vmem:[%s1583_s8 + $0xa8] sm:$0xff] %v378_v21 }
  0x24   : > { %381 = vst [vmem:[%s1583_s8 + $0xb0] sm:$0xff] %v380_v22  ;;  %383 = vst [vmem:[%s1583_s8 + $0xb8] sm:$0xff] %v382_v23  ;;  %v384_v24 = vld [vmem:[%s1578_s7 + $0x180] sm:$0xff]  ;;  %v386_v25 = vld [vmem:[%s1578_s7 + $0x190] sm:$0xff] }
  0x25   : > { %v388_v26 = vld [vmem:[%s1578_s7 + $0x1a0] sm:$0xff]  ;;  %385 = vst [vmem:[%s1583_s8 + $0xc0] sm:$0xff] %v384_v24  ;;  %387 = vst [vmem:[%s1583_s8 + $0xc8] sm:$0xff] %v386_v25  ;;  %v390_v27 = vld [vmem:[%s1578_s7 + $0x1b0] sm:$0xff] }
  0x26   : > { %389 = vst [vmem:[%s1583_s8 + $0xd0] sm:$0xff] %v388_v26  ;;  %v392_v28 = vld [vmem:[%s1578_s7 + $0x1c0] sm:$0xff]  ;;  %v394_v29 = vld [vmem:[%s1578_s7 + $0x1d0] sm:$0xff]  ;;  %391 = vst [vmem:[%s1583_s8 + $0xd8] sm:$0xff] %v390_v27 }
  0x27   : > { %393 = vst [vmem:[%s1583_s8 + $0xe0] sm:$0xff] %v392_v28  ;;  %395 = vst [vmem:[%s1583_s8 + $0xe8] sm:$0xff] %v394_v29  ;;  %v396_v30 = vld [vmem:[%s1578_s7 + $0x1e0] sm:$0xff]  ;;  %v398_v31 = vld [vmem:[%s1578_s7 + $0x1f0] sm:$0xff] }
  0x28   : > { %v400_v32 = vld [vmem:[%s1578_s7 + $0x200] sm:$0xff]  ;;  %397 = vst [vmem:[%s1583_s8 + $0xf0] sm:$0xff] %v396_v30  ;;  %399 = vst [vmem:[%s1583_s8 + $0xf8] sm:$0xff] %v398_v31  ;;  %v402_v33 = vld [vmem:[%s1578_s7 + $0x210] sm:$0xff] }
  0x29   : > { %401 = vst [vmem:[%s1583_s8 + $0x100] sm:$0xff] %v400_v32  ;;  %v404_v34 = vld [vmem:[%s1578_s7 + $0x220] sm:$0xff]  ;;  %v406_v35 = vld [vmem:[%s1578_s7 + $0x230] sm:$0xff]  ;;  %403 = vst [vmem:[%s1583_s8 + $0x108] sm:$0xff] %v402_v33 }
  0x2a   : > { %405 = vst [vmem:[%s1583_s8 + $0x110] sm:$0xff] %v404_v34  ;;  %407 = vst [vmem:[%s1583_s8 + $0x118] sm:$0xff] %v406_v35  ;;  %v408_v36 = vld [vmem:[%s1578_s7 + $0x240] sm:$0xff]  ;;  %v410_v37 = vld [vmem:[%s1578_s7 + $0x250] sm:$0xff] }
  0x2b   : > { %v412_v38 = vld [vmem:[%s1578_s7 + $0x260] sm:$0xff]  ;;  %409 = vst [vmem:[%s1583_s8 + $0x120] sm:$0xff] %v408_v36  ;;  %411 = vst [vmem:[%s1583_s8 + $0x128] sm:$0xff] %v410_v37  ;;  %v414_v39 = vld [vmem:[%s1578_s7 + $0x270] sm:$0xff] }
  0x2c   : > { %413 = vst [vmem:[%s1583_s8 + $0x130] sm:$0xff] %v412_v38  ;;  %v416_v40 = vld [vmem:[%s1578_s7 + $0x280] sm:$0xff]  ;;  %v418_v41 = vld [vmem:[%s1578_s7 + $0x290] sm:$0xff]  ;;  %415 = vst [vmem:[%s1583_s8 + $0x138] sm:$0xff] %v414_v39 }
  0x2d   : > { %417 = vst [vmem:[%s1583_s8 + $0x140] sm:$0xff] %v416_v40  ;;  %419 = vst [vmem:[%s1583_s8 + $0x148] sm:$0xff] %v418_v41  ;;  %v420_v42 = vld [vmem:[%s1578_s7 + $0x2a0] sm:$0xff]  ;;  %v422_v43 = vld [vmem:[%s1578_s7 + $0x2b0] sm:$0xff] }
  0x2e   : > { %v424_v44 = vld [vmem:[%s1578_s7 + $0x2c0] sm:$0xff]  ;;  %421 = vst [vmem:[%s1583_s8 + $0x150] sm:$0xff] %v420_v42  ;;  %423 = vst [vmem:[%s1583_s8 + $0x158] sm:$0xff] %v422_v43  ;;  %v426_v45 = vld [vmem:[%s1578_s7 + $0x2d0] sm:$0xff] }
  0x2f   : > { %425 = vst [vmem:[%s1583_s8 + $0x160] sm:$0xff] %v424_v44  ;;  %v428_v46 = vld [vmem:[%s1578_s7 + $0x2e0] sm:$0xff]  ;;  %v430_v47 = vld [vmem:[%s1578_s7 + $0x2f0] sm:$0xff]  ;;  %427 = vst [vmem:[%s1583_s8 + $0x168] sm:$0xff] %v426_v45 }
  0x30   : > { %429 = vst [vmem:[%s1583_s8 + $0x170] sm:$0xff] %v428_v46  ;;  %431 = vst [vmem:[%s1583_s8 + $0x178] sm:$0xff] %v430_v47  ;;  %v432_v48 = vld [vmem:[%s1578_s7 + $0x300] sm:$0xff]  ;;  %v434_v49 = vld [vmem:[%s1578_s7 + $0x310] sm:$0xff] }
  0x31   : > { %v436_v50 = vld [vmem:[%s1578_s7 + $0x320] sm:$0xff]  ;;  %433 = vst [vmem:[%s1583_s8 + $0x180] sm:$0xff] %v432_v48  ;;  %435 = vst [vmem:[%s1583_s8 + $0x188] sm:$0xff] %v434_v49  ;;  %v438_v51 = vld [vmem:[%s1578_s7 + $0x330] sm:$0xff] }
  0x32   : > { %437 = vst [vmem:[%s1583_s8 + $0x190] sm:$0xff] %v436_v50  ;;  %v440_v52 = vld [vmem:[%s1578_s7 + $0x340] sm:$0xff]  ;;  %v442_v53 = vld [vmem:[%s1578_s7 + $0x350] sm:$0xff]  ;;  %439 = vst [vmem:[%s1583_s8 + $0x198] sm:$0xff] %v438_v51 }
  0x33   : > { %441 = vst [vmem:[%s1583_s8 + $0x1a0] sm:$0xff] %v440_v52  ;;  %443 = vst [vmem:[%s1583_s8 + $0x1a8] sm:$0xff] %v442_v53  ;;  %v444_v54 = vld [vmem:[%s1578_s7 + $0x360] sm:$0xff]  ;;  %v446_v55 = vld [vmem:[%s1578_s7 + $0x370] sm:$0xff] }
  0x34   : > { %v448_v56 = vld [vmem:[%s1578_s7 + $0x380] sm:$0xff]  ;;  %445 = vst [vmem:[%s1583_s8 + $0x1b0] sm:$0xff] %v444_v54  ;;  %447 = vst [vmem:[%s1583_s8 + $0x1b8] sm:$0xff] %v446_v55  ;;  %v450_v57 = vld [vmem:[%s1578_s7 + $0x390] sm:$0xff] }
  0x35   : > { %449 = vst [vmem:[%s1583_s8 + $0x1c0] sm:$0xff] %v448_v56  ;;  %v452_v58 = vld [vmem:[%s1578_s7 + $0x3a0] sm:$0xff]  ;;  %v454_v59 = vld [vmem:[%s1578_s7 + $0x3b0] sm:$0xff]  ;;  %451 = vst [vmem:[%s1583_s8 + $0x1c8] sm:$0xff] %v450_v57 }
  0x36   : > { %453 = vst [vmem:[%s1583_s8 + $0x1d0] sm:$0xff] %v452_v58  ;;  %455 = vst [vmem:[%s1583_s8 + $0x1d8] sm:$0xff] %v454_v59  ;;  %v456_v60 = vld [vmem:[%s1578_s7 + $0x3c0] sm:$0xff]  ;;  %v458_v61 = vld [vmem:[%s1578_s7 + $0x3d0] sm:$0xff] }
  0x37   : > { %v460_v62 = vld [vmem:[%s1578_s7 + $0x3e0] sm:$0xff]  ;;  %457 = vst [vmem:[%s1583_s8 + $0x1e0] sm:$0xff] %v456_v60  ;;  %459 = vst [vmem:[%s1583_s8 + $0x1e8] sm:$0xff] %v458_v61  ;;  %v462_v63 = vld [vmem:[%s1578_s7 + $0x3f0] sm:$0xff] }
  0x38   : > { %461 = vst [vmem:[%s1583_s8 + $0x1f0] sm:$0xff] %v460_v62  ;;  %463 = vst [vmem:[%s1583_s8 + $0x1f8] sm:$0xff] %v462_v63 }
  0x39 PF: > { %p1204_p7 = scmp.ge.s32.totalorder %s1495_s18, 1  ;;  %p476_p8 = scmp.lt.s32.totalorder %s1495_s18, 19 }
  0x3b   : > { %p477_p9 = pnand %p1204_p7, %p476_p8 }
  0x3c   : > { %s483_s9 = sand.u32 (!%p477_p9), 1, %s1471_s12   ;;  %s1206_s10 = sshll.u32 (!%p477_p9), %s1479_s14, 2 }
  0x3d   : > { %480 = sbr.rel (%p477_p9) target bundleno = 375 (0x177), region = 66  ;;  %s1205_s11 = sshll.u32 (!%p477_p9), %s483_s9, 9 }
  0x3e   : > { %p526_p10 = scmp.lt.s32.totalorder (!%p477_p9), %s1206_s10, 35  ;;  %s1208_s21 = sshll.u32 (!%p477_p9), %s1483_s15, 1 }
  0x3f   : > { %p536_p11 = scmp.lt.s32.totalorder (!%p477_p9), %s1208_s21, 3  ;;  %s1732_s5 = scalar_lea.vmem (!%p477_p9), [#allocation3], %s1205_s11 }
  0x40   : > { %p1211_p12 = scmp.ne.s32.totalorder (!%p477_p9), %s1479_s14, 0 }
  0x44   : > { %s1847_s10 = smov (!%p526_p10, %s1206_s10), 35  ;;  %s1849_s21 = smov (!%p536_p11, %s1208_s21), 3 }
  0x45   : > { %s1207_s22 = sshll.u32 %s1847_s10, 2  ;;  %s538_s12 = scalar_lea.vmem %s1832_s2, %s1849_s21  ;;  %v1497_v0 = vmov (!%p1211_p12), 0.0  }
  0x46   : > { %s1718_s26 = scalar_lea.vmem %s1830_s0, %s1207_s22  ;;  %s1210_s29 = sshll.u32 %s1849_s21, 3  ;;  %554 = vst [vmem:[#allocation2] sm:$0xff] (!%p1211_p12), %v1497_v0  ;;  %555 = vst [vmem:[#allocation2 + $0x8] sm:$0xff] (!%p1211_p12), %v1497_v0 }
  0x47   : > { %s1730_s15 = scalar_lea.vmem %s1833_s3, %s1210_s29  ;;  %553 = sbr.rel (%p1211_p12) target bundleno = 78 (0x4e), region = 74 }
  0x4e PF: > { %v1341_v1 = vld [vmem:[%s1732_s5 + $0x4] ss:$8 sps:$4 sm:$0xff]   ;;  %v1345_v3 = vld [vmem:[%s1732_s5] ss:$8 sps:$4 sm:$0xff]   ;;  %v1347_v5 = vld [vmem:[%s1732_s5 + $0x14] ss:$8 sps:$4 sm:$0xff]  }
  0x4f   : > { %v1343_v2 = vld [vmem:[%s1732_s5 + $0x104] ss:$8 sps:$4 sm:$0xff]   ;;  %958 = vmatprep.subr.bf16.mxu0 %v1341_v1  ;;  %v1346_v4 = vld [vmem:[%s1732_s5 + $0x100] ss:$8 sps:$4 sm:$0xff]   ;;  %v1349_v6 = vld [vmem:[%s1732_s5 + $0x114] ss:$8 sps:$4 sm:$0xff]  }
  0x50   : > { %999 = vmatprep.subr.bf16.mxu1 %v1343_v2  ;;  %959 = vmatpush1.bf16.msra.mxu0 %v1345_v3  ;;  %v1351_v7 = vld [vmem:[%s1732_s5 + $0x10] ss:$8 sps:$4 sm:$0xff]   ;;  %v1353_v9 = vld [vmem:[%s1732_s5 + $0x24] ss:$8 sps:$4 sm:$0xff]   ;;  %v1357_v11 = vld [vmem:[%s1732_s5 + $0x20] ss:$8 sps:$4 sm:$0xff]  }
  0x51   : > { %1000 = vmatpush1.bf16.msra.mxu1 %v1346_v4  ;;  %960 = vmatprep.subr.bf16.mxu0 %v1347_v5  ;;  %v1352_v8 = vld [vmem:[%s1732_s5 + $0x110] ss:$8 sps:$4 sm:$0xff]   ;;  %v1355_v10 = vld [vmem:[%s1732_s5 + $0x124] ss:$8 sps:$4 sm:$0xff]   ;;  %v1358_v12 = vld [vmem:[%s1732_s5 + $0x120] ss:$8 sps:$4 sm:$0xff]  }
  0x52   : > { %1001 = vmatprep.subr.bf16.mxu1 %v1349_v6  ;;  %v1359_v13 = vld [vmem:[%s1732_s5 + $0x34] ss:$8 sps:$4 sm:$0xff]   ;;  %v1363_v15 = vld [vmem:[%s1732_s5 + $0x30] ss:$8 sps:$4 sm:$0xff]   ;;  %v1365_v17 = vld [vmem:[%s1732_s5 + $0x44] ss:$8 sps:$4 sm:$0xff]  }
  0x53   : > { %v1361_v14 = vld [vmem:[%s1732_s5 + $0x134] ss:$8 sps:$4 sm:$0xff]   ;;  %v1364_v16 = vld [vmem:[%s1732_s5 + $0x130] ss:$8 sps:$4 sm:$0xff]   ;;  %v1367_v18 = vld [vmem:[%s1732_s5 + $0x144] ss:$8 sps:$4 sm:$0xff]  }
  0x54   : > { %961 = vmatpush1.bf16.msra.mxu0 %v1351_v7  ;;  %v1369_v19 = vld [vmem:[%s1732_s5 + $0x40] ss:$8 sps:$4 sm:$0xff]   ;;  %v1371_v21 = vld [vmem:[%s1732_s5 + $0x54] ss:$8 sps:$4 sm:$0xff]   ;;  %v1375_v23 = vld [vmem:[%s1732_s5 + $0x50] ss:$8 sps:$4 sm:$0xff]  }
  0x55   : > { %1002 = vmatpush1.bf16.msra.mxu1 %v1352_v8  ;;  %962 = vmatprep.subr.bf16.mxu0 %v1353_v9  ;;  %v1370_v20 = vld [vmem:[%s1732_s5 + $0x140] ss:$8 sps:$4 sm:$0xff]   ;;  %v1373_v22 = vld [vmem:[%s1732_s5 + $0x154] ss:$8 sps:$4 sm:$0xff]   ;;  %v1376_v24 = vld [vmem:[%s1732_s5 + $0x150] ss:$8 sps:$4 sm:$0xff]  }
  0x56   : > { %1003 = vmatprep.subr.bf16.mxu1 %v1355_v10  ;;  %v1377_v25 = vld [vmem:[%s1732_s5 + $0x64] ss:$8 sps:$4 sm:$0xff]   ;;  %v1381_v27 = vld [vmem:[%s1732_s5 + $0x60] ss:$8 sps:$4 sm:$0xff]   ;;  %v1383_v29 = vld [vmem:[%s1732_s5 + $0x74] ss:$8 sps:$4 sm:$0xff]  }
  0x57   : > { %v1379_v26 = vld [vmem:[%s1732_s5 + $0x164] ss:$8 sps:$4 sm:$0xff]   ;;  %v1382_v28 = vld [vmem:[%s1732_s5 + $0x160] ss:$8 sps:$4 sm:$0xff]   ;;  %v1385_v30 = vld [vmem:[%s1732_s5 + $0x174] ss:$8 sps:$4 sm:$0xff]  }
  0x58   : > { %963 = vmatpush1.bf16.msra.mxu0 %v1357_v11  ;;  %v1387_v31 = vld [vmem:[%s1732_s5 + $0x70] ss:$8 sps:$4 sm:$0xff]   ;;  %v1389_v33 = vld [vmem:[%s1732_s5 + $0x84] ss:$8 sps:$4 sm:$0xff]   ;;  %v1393_v35 = vld [vmem:[%s1732_s5 + $0x80] ss:$8 sps:$4 sm:$0xff]  }
  0x59   : > { %1004 = vmatpush1.bf16.msra.mxu1 %v1358_v12  ;;  %964 = vmatprep.subr.bf16.mxu0 %v1359_v13  ;;  %v1388_v32 = vld [vmem:[%s1732_s5 + $0x170] ss:$8 sps:$4 sm:$0xff]   ;;  %v1391_v34 = vld [vmem:[%s1732_s5 + $0x184] ss:$8 sps:$4 sm:$0xff]   ;;  %v1394_v36 = vld [vmem:[%s1732_s5 + $0x180] ss:$8 sps:$4 sm:$0xff]  }
  0x5a   : > { %1005 = vmatprep.subr.bf16.mxu1 %v1361_v14  ;;  %v1395_v37 = vld [vmem:[%s1732_s5 + $0x94] ss:$8 sps:$4 sm:$0xff]   ;;  %v1399_v39 = vld [vmem:[%s1732_s5 + $0x90] ss:$8 sps:$4 sm:$0xff]   ;;  %v1401_v41 = vld [vmem:[%s1732_s5 + $0xa4] ss:$8 sps:$4 sm:$0xff]  }
  0x5b   : > { %v1397_v38 = vld [vmem:[%s1732_s5 + $0x194] ss:$8 sps:$4 sm:$0xff]   ;;  %v1400_v40 = vld [vmem:[%s1732_s5 + $0x190] ss:$8 sps:$4 sm:$0xff]   ;;  %v1403_v42 = vld [vmem:[%s1732_s5 + $0x1a4] ss:$8 sps:$4 sm:$0xff]  }
  0x5c   : > { %965 = vmatpush1.bf16.msra.mxu0 %v1363_v15  ;;  %v1405_v43 = vld [vmem:[%s1732_s5 + $0xa0] ss:$8 sps:$4 sm:$0xff]   ;;  %v1407_v45 = vld [vmem:[%s1732_s5 + $0xb4] ss:$8 sps:$4 sm:$0xff]   ;;  %v1411_v50 = vld [vmem:[%s1732_s5 + $0xb0] ss:$8 sps:$4 sm:$0xff]  }
  0x5d   : > { %1006 = vmatpush1.bf16.msra.mxu1 %v1364_v16  ;;  %966 = vmatprep.subr.bf16.mxu0 %v1365_v17  ;;  %v1406_v44 = vld [vmem:[%s1732_s5 + $0x1a0] ss:$8 sps:$4 sm:$0xff]   ;;  %v1409_v46 = vld [vmem:[%s1732_s5 + $0x1b4] ss:$8 sps:$4 sm:$0xff]   ;;  %v1412_v51 = vld [vmem:[%s1732_s5 + $0x1b0] ss:$8 sps:$4 sm:$0xff]  }
  0x5e   : > { %1007 = vmatprep.subr.bf16.mxu1 %v1367_v18  ;;  %v558_v47 = vld [vmem:[%s1718_s26] sm:$0xff]  ;;  %v559_v49 = vld [vmem:[%s1718_s26 + $0x8] sm:$0xff]  ;;  %v1413_v53 = vld [vmem:[%s1732_s5 + $0xc4] ss:$8 sps:$4 sm:$0xff]   ;;  %p1280_p13 = scmp.ne.s32.totalorder %s1479_s14, 8 }
  0x5f   : > { %v1213_v48 = vcombine.high %v558_v47, %v558_v47  ;;  %v1215_v52 = vcombine.high %v559_v49, %v559_v49  ;;  %v1415_v54 = vld [vmem:[%s1732_s5 + $0x1c4] ss:$8 sps:$4 sm:$0xff]   ;;  %v1417_v55 = vld [vmem:[%s1732_s5 + $0xc0] ss:$8 sps:$4 sm:$0xff]   ;;  %v1419_v57 = vld [vmem:[%s1732_s5 + $0xd4] ss:$8 sps:$4 sm:$0xff]   ;;  %v1212_v5 = vcombine.low %v558_v47, %v558_v47  ;;  %v1214_v6 = vcombine.low %v559_v49, %v559_v49 }
  0x60   : > { %967 = vmatpush1.bf16.msra.mxu0 %v1369_v19  ;;  %v1418_v56 = vld [vmem:[%s1732_s5 + $0x1c0] ss:$8 sps:$4 sm:$0xff]   ;;  %v1421_v58 = vld [vmem:[%s1732_s5 + $0x1d4] ss:$8 sps:$4 sm:$0xff]   ;;  %v1423_v59 = vld [vmem:[%s1732_s5 + $0xd0] ss:$8 sps:$4 sm:$0xff]  }
  0x61   : > { %1008 = vmatpush1.bf16.msra.mxu1 %v1370_v20  ;;  %968 = vmatprep.subr.bf16.mxu0 %v1371_v21  ;;  %v1424_v60 = vld [vmem:[%s1732_s5 + $0x1d0] ss:$8 sps:$4 sm:$0xff]   ;;  %v1425_v61 = vld [vmem:[%s1732_s5 + $0xe4] ss:$8 sps:$4 sm:$0xff]   ;;  %v1429_v63 = vld [vmem:[%s1732_s5 + $0xe0] ss:$8 sps:$4 sm:$0xff]   ;;  %v1052_v21 = vlaneseq (!%p1280_p13) }
  0x62   : > { %1009 = vmatprep.subr.bf16.mxu1 %v1373_v22  ;;  %990 = vmatprep.mubr.bf16.mxu0 %v1213_v48  ;;  %v1427_v62 = vld [vmem:[%s1732_s5 + $0x1e4] ss:$8 sps:$4 sm:$0xff]   ;;  %v1430_v0 = vld [vmem:[%s1732_s5 + $0x1e0] ss:$8 sps:$4 sm:$0xff]   ;;  %v1431_v1 = vld [vmem:[%s1732_s5 + $0xf4] ss:$8 sps:$4 sm:$0xff]  }
  0x63   : > { %1031 = vmatprep.mubr.bf16.mxu1 %v1215_v52  ;;  %v1433_v2 = vld [vmem:[%s1732_s5 + $0x1f4] ss:$8 sps:$4 sm:$0xff]   ;;  %v1435_v3 = vld [vmem:[%s1732_s5 + $0xf0] ss:$8 sps:$4 sm:$0xff]   ;;  %v1053_v22 = vshrl.u32 (!%p1280_p13), %v1052_v21, 7 }
  0x64   : > { %969 = vmatpush1.bf16.msra.mxu0 %v1375_v23  ;;  %v1436_v4 = vld [vmem:[%s1732_s5 + $0x1f0] ss:$8 sps:$4 sm:$0xff]  }
  0x65   : > { %1010 = vmatpush1.bf16.msra.mxu1 %v1376_v24  ;;  %970 = vmatprep.subr.bf16.mxu0 %v1377_v25  ;;  %v556_v8 = vld [vmem:[#allocation2] sm:$0xff]  ;;  %v557_v12 = vld [vmem:[#allocation2 + $0x8] sm:$0xff]  ;;  %v1054_v24 = vsub.s32 (!%p1280_p13), 0, %v1053_v22  ;;  %v1058_v25 = vsub.s32 (!%p1280_p13), 1, %v1053_v22 }
  0x66   : > { %1011 = vmatprep.subr.bf16.mxu1 %v1379_v26  ;;  %v1050_v23 = vld [vmem:[%s538_s12] sm:$0x3] (!%p1280_p13) }
  0x68   : > { %971 = vmatpush1.bf16.msra.mxu0 %v1381_v27 }
  0x69   : > { %1012 = vmatpush1.bf16.msra.mxu1 %v1382_v28  ;;  %972 = vmatprep.subr.bf16.mxu0 %v1383_v29  ;;  %v1055_v28 = vrot.slane (!%p1280_p13), %v1050_v23, %v1054_v24  ;;  %v1059_v29 = vrot.slane (!%p1280_p13), %v1050_v23, %v1058_v25 }
  0x6a   : > { %1013 = vmatprep.subr.bf16.mxu1 %v1385_v30 }
  0x6c   : > { %973 = vmatpush1.bf16.msra.mxu0 %v1387_v31 }
  0x6d   : > { %1014 = vmatpush1.bf16.msra.mxu1 %v1388_v32  ;;  %974 = vmatprep.subr.bf16.mxu0 %v1389_v33 }
  0x6e   : > { %1015 = vmatprep.subr.bf16.mxu1 %v1391_v34 }
  0x70   : > { %975 = vmatpush1.bf16.msra.mxu0 %v1393_v35 }
  0x71   : > { %1016 = vmatpush1.bf16.msra.mxu1 %v1394_v36  ;;  %976 = vmatprep.subr.bf16.mxu0 %v1395_v37 }
  0x72   : > { %1017 = vmatprep.subr.bf16.mxu1 %v1397_v38 }
  0x74   : > { %977 = vmatpush1.bf16.msra.mxu0 %v1399_v39 }
  0x75   : > { %1018 = vmatpush1.bf16.msra.mxu1 %v1400_v40  ;;  %978 = vmatprep.subr.bf16.mxu0 %v1401_v41 }
  0x76   : > { %1019 = vmatprep.subr.bf16.mxu1 %v1403_v42 }
  0x78   : > { %979 = vmatpush1.bf16.msra.mxu0 %v1405_v43 }
  0x79   : > { %1020 = vmatpush1.bf16.msra.mxu1 %v1406_v44  ;;  %980 = vmatprep.subr.bf16.mxu0 %v1407_v45 }
  0x7a   : > { %1021 = vmatprep.subr.bf16.mxu1 %v1409_v46 }
  0x7c   : > { %981 = vmatpush1.bf16.msra.mxu0 %v1411_v50 }
  0x7d   : > { %1022 = vmatpush1.bf16.msra.mxu1 %v1412_v51  ;;  %982 = vmatprep.subr.bf16.mxu0 %v1413_v53 }
  0x7e   : > { %1023 = vmatprep.subr.bf16.mxu1 %v1415_v54 }
  0x80   : > { %983 = vmatpush1.bf16.msra.mxu0 %v1417_v55 }
  0x81   : > { %1024 = vmatpush1.bf16.msra.mxu1 %v1418_v56  ;;  %984 = vmatprep.subr.bf16.mxu0 %v1419_v57 }
  0x82   : > { %1025 = vmatprep.subr.bf16.mxu1 %v1421_v58 }
  0x84   : > { %985 = vmatpush1.bf16.msra.mxu0 %v1423_v59 }
  0x85   : > { %1026 = vmatpush1.bf16.msra.mxu1 %v1424_v60  ;;  %986 = vmatprep.subr.bf16.mxu0 %v1425_v61 }
  0x86   : > { %1027 = vmatprep.subr.bf16.mxu1 %v1427_v62 }
  0x88   : > { %987 = vmatpush1.bf16.msra.mxu0 %v1429_v63 }
  0x89   : > { %1028 = vmatpush1.bf16.msra.mxu1 %v1430_v0  ;;  %988 = vmatprep.subr.bf16.mxu0 %v1431_v1 }
  0x8a   : > { %1029 = vmatprep.subr.bf16.mxu1 %v1433_v2 }
  0x8c   : > { %989 = vmatpush1.bf16.msra.mxu0 %v1435_v3 }
  0x8d   : > { %1030 = vmatpush1.bf16.msra.mxu1 %v1436_v4 }
  0x8f   : > { %991 = vmatmul.mubr.bf16.vlgmr.msra.gmra.mrb[0].mxu0 %v1212_v5 }
  0x90   : > { %1032 = vmatmul.mubr.bf16.vlgmr.msra.gmra.mrb[0].mxu1 %v1214_v6 }
 0x162   : > { %v992_v7 = vpop.f32.mrb[0].mxu0 }
 0x163   : > { %v1033_v9 = vpop.f32.mrb[0].mxu1  ;;  %v994_v11 = vpop.f32.mrb[1].mxu0  ;;  %1047 = sbr.rel (%p1280_p13) target bundleno = 375 (0x177), region = 78 }
 0x164   : > { %v1034_v10 = vadd.f32 %v1033_v9, %v992_v7  ;;  %v1035_v13 = vpop.f32.mrb[1].mxu1  ;;  %v996_v15 = vpop.f32.mrb[2].mxu0 }
 0x165   : > { %v1036_v14 = vadd.f32 %v1035_v13, %v994_v11  ;;  %v1037_v16 = vpop.f32.mrb[2].mxu1  ;;  %v997_v18 = vpop.f32.mrb[3].mxu0 }
 0x166   : > { %v1040_v17 = vadd.f32 %v1034_v10, %v556_v8  ;;  %v1038_v19 = vpop.f32.mrb[3].mxu1 }
 0x167   : > { %v1041_v20 = vadd.f32 %v1036_v14, %v557_v12 }
 0x168   : > { %1042 = vst [vmem:[#allocation2] sm:$0xff] %v1040_v17 }
 0x169   : > { %1043 = vst [vmem:[#allocation2 + $0x8] sm:$0xff] %v1041_v20 }
 0x16f   : > { %v1048_v26 = vld [vmem:[#allocation2] sm:$0xff] }
 0x170   : > { %v1049_v27 = vld [vmem:[#allocation2 + $0x8] sm:$0xff]  ;;  %v1062_v30 = vadd.f32 %v1055_v28, %v1048_v26 }
 0x171   : > { %v1063_v31 = vadd.f32 %v1059_v29, %v1049_v27 }
 0x172   : > { %vm1064_vm0 = vcmp.ge.f32.partialorder %v1062_v30, 0.0  ;;  %v1066_v32 = vmul.f32 0.1, %v1062_v30 }
 0x173   : > { %vm1065_vm1 = vcmp.ge.f32.partialorder %v1063_v31, 0.0  ;;  %v1067_v33 = vmul.f32 0.1, %v1063_v31 }
 0x174   : > { %v1068_v34 = vsel %vm1064_vm0, %v1062_v30, %v1066_v32 }
 0x175   : > { %v1069_v35 = vsel %vm1065_vm1, %v1063_v31, %v1067_v33  ;;  %1070 = vst [vmem:[%s1730_s15] sm:$0xff] %v1068_v34 }
 0x176   : > { %1071 = vst [vmem:[%s1730_s15 + $0x8] sm:$0xff] %v1069_v35 }
 0x177 PF: > { %s13_s18 = sadd.s32 1, %s1495_s18   ;;  %s1834_s12 = smov %s1475_s13 }
 0x178   : > { %p10_p0 = scmp.ge.s32.totalorder %s13_s18, 20   ;;  %s1835_s13 = smov %s1569_s25 }
 0x179   : > { %s1836_s14 = smov %s1487_s16  ;;  %s1837_s15 = smov %s1491_s17 }
 0x17a   : > { %s1838_s16 = smov %s1841_s19  ;;  %s1839_s17 = smov %s1845_s20 }
 0x17b   :  { %12 = sbr.rel (!%p10_p0) target bundleno = 4 (0x4), region = 119 }

// kernel: spiking_flownet_forward.48
= control target key start
LH: loop header
LB: loop body
LE: loop exit
PB: predicated region body
PF: predicated region fallthrough
CT: control target
= control target key end

     0   :  { %s1052_s12 = smov 0   ;;  %s1054_s13 = smov 0   ;;  %s1156_s0 = inlined_call_operand.vmem [shape: bf16[4,8,2048], index: 0, kind: input, shape index: {}]   ;;  %s1157_s1 = inlined_call_operand.vmem [shape: bf16[4,2048,128], index: 1, kind: input, shape index: {}]   ;;  %s1158_s2 = inlined_call_operand.vmem [shape: f32[1,128], index: 2, kind: input, shape index: {}]   ;;  %s1159_s3 = inlined_call_operand.vmem [shape: f32[4,8,128], index: 3, kind: output, shape index: {}]  }
   0x1   :  { %s1056_s14 = smov 0   ;;  %s1058_s15 = smov 0  }
   0x2   :  { %s1060_s16 = smov 0  }
   0x3 LB: > { %s28_s17 = sadd.s32 1, %s1021_s14  ;;  %s39_s18 = sadd.s32 1, %s1025_s15  ;;  %s1029_s16 = sphi %s1060_s16, %s13_s16   ;;  %s1025_s15 = sphi %s1058_s15, %s1163_s15   ;;  %s1021_s14 = sphi %s1056_s14, %s1162_s14   ;;  %s1017_s13 = sphi %s1054_s13, %s1161_s13   ;;  %s1013_s12 = sphi %s1052_s12, %s1160_s12  }
   0x4   : > { %p29_p0 = scmp.ge.s32.totalorder %s28_s17, 4  ;;  %p821_p1 = scmp.ge.s32.totalorder %s1029_s16, 1 }
   0x5   : > { %p210_p2 = scmp.lt.s32.totalorder %s1029_s16, 17 }
   0x6   : > { %s1165_s17 = smov (%p29_p0, %s28_s17), 0  ;;  %s1167_s18 = smov (!%p29_p0, %s39_s18), %s1025_s15 }
   0x7   : > { %p211_p3 = pnand %p821_p1, %p210_p2  ;;  %p41_p4 = scmp.ge.s32.totalorder %s1167_s18, 4 }
   0x8   : > { %s822_s19 = sshll.u32 (!%p211_p3), %s1013_s12, 2  ;;  %p263_p5 = scmp.lt.s32.totalorder (!%p211_p3), %s1017_s13, 3 }
   0x9   : > { %s1169_s18 = smov (%p41_p4, %s1167_s18), 0  ;;  %214 = sbr.rel (%p211_p3) target bundleno = 296 (0x128), region = 32 }
   0xa   : > { %p267_p6 = scmp.lt.s32.totalorder (!%p211_p3), %s822_s19, 15  ;;  %s825_s20 = sshll.u32 (!%p211_p3), %s1013_s12, 6 }
   0xb   : > { %p279_p7 = scmp.lt.s32.totalorder (!%p211_p3), %s825_s20, 255  ;;  %p829_p8 = scmp.ne.s32.totalorder (!%p211_p3), %s1013_s12, 0 }
  0x10   : > { %s1171_s13 = smov (!%p263_p5, %s1017_s13), 3  ;;  %s1173_s19 = smov (!%p267_p6, %s822_s19), 15 }
  0x11   : > { %s823_s21 = sshll.u32 %s1171_s13, 4  ;;  %s826_s23 = sshll.u32 %s1171_s13, 8  ;;  %v1031_v0 = vmov (!%p829_p8), 0.0  }
  0x12   : > { %s272_s22 = sadd.s32 %s823_s21, %s1173_s19  ;;  %s828_s25 = sshll.u32 %s1171_s13, 3  ;;  %307 = vst [vmem:[#allocation2] sm:$0xff] (!%p829_p8), %v1031_v0 }
  0x13   : > { %s824_s24 = sshll.u32 %s272_s22, 2  ;;  %s1094_s4 = scalar_lea.vmem %s1159_s3, %s828_s25 }
  0x14   : > { %s1089_s28 = scalar_lea.vmem %s1156_s0, %s824_s24  ;;  %s1175_s20 = smov (!%p279_p7, %s825_s20), 255 }
  0x15   : > { %s285_s5 = sadd.s32 %s826_s23, %s1175_s20  ;;  %306 = sbr.rel (%p829_p8) target bundleno = 28 (0x1c), region = 36 }
  0x16   : > { %s827_s6 = sshll.u32 %s285_s5, 2 }
  0x17   : > { %s1099_s9 = scalar_lea.vmem %s1157_s1, %s827_s6 }
  0x1c PF: > { %v955_v1 = vld [vmem:[%s1099_s9 + $0x40] sm:$0xff]   ;;  %v959_v5 = vld [vmem:[%s1099_s9 + $0x48] sm:$0xff]   ;;  %v963_v9 = vld [vmem:[%s1099_s9 + $0x50] sm:$0xff]   ;;  %p866_p9 = scmp.ne.s32.totalorder %s1013_s12, 3 }
  0x1d   : > { %v956_v2 = vld [vmem:[%s1099_s9 + $0xc0] sm:$0xff]   ;;  %870 = vmatprep.subr.bf16.mxu0 %v955_v1  ;;  %v960_v6 = vld [vmem:[%s1099_s9 + $0xc8] sm:$0xff]   ;;  %v964_v10 = vld [vmem:[%s1099_s9 + $0xd0] sm:$0xff]  }
  0x1e   : > { %v957_v3 = vld [vmem:[%s1099_s9] sm:$0xff]   ;;  %892 = vmatprep.subr.bf16.mxu1 %v956_v2  ;;  %v961_v7 = vld [vmem:[%s1099_s9 + $0x8] sm:$0xff]   ;;  %v965_v11 = vld [vmem:[%s1099_s9 + $0x10] sm:$0xff]  }
  0x1f   : > { %v958_v4 = vld [vmem:[%s1099_s9 + $0x80] sm:$0xff]   ;;  %871 = vmatpush3.bf16.msra.mxu0 %v957_v3  ;;  %v962_v8 = vld [vmem:[%s1099_s9 + $0x88] sm:$0xff]   ;;  %v966_v12 = vld [vmem:[%s1099_s9 + $0x90] sm:$0xff]  }
  0x20   : > { %893 = vmatpush3.bf16.msra.mxu1 %v958_v4  ;;  %872 = vmatprep.subr.bf16.mxu0 %v959_v5  ;;  %v967_v13 = vld [vmem:[%s1099_s9 + $0x58] sm:$0xff]   ;;  %v971_v17 = vld [vmem:[%s1099_s9 + $0x60] sm:$0xff]   ;;  %v975_v21 = vld [vmem:[%s1099_s9 + $0x68] sm:$0xff]  }
  0x21   : > { %894 = vmatprep.subr.bf16.mxu1 %v960_v6  ;;  %v968_v14 = vld [vmem:[%s1099_s9 + $0xd8] sm:$0xff]   ;;  %v972_v18 = vld [vmem:[%s1099_s9 + $0xe0] sm:$0xff]   ;;  %v976_v22 = vld [vmem:[%s1099_s9 + $0xe8] sm:$0xff]  }
  0x22   : > { %v969_v15 = vld [vmem:[%s1099_s9 + $0x18] sm:$0xff]   ;;  %v973_v19 = vld [vmem:[%s1099_s9 + $0x20] sm:$0xff]   ;;  %v977_v23 = vld [vmem:[%s1099_s9 + $0x28] sm:$0xff]  }
  0x23   : > { %873 = vmatpush3.bf16.msra.mxu0 %v961_v7  ;;  %v970_v16 = vld [vmem:[%s1099_s9 + $0x98] sm:$0xff]   ;;  %v974_v20 = vld [vmem:[%s1099_s9 + $0xa0] sm:$0xff]   ;;  %v978_v24 = vld [vmem:[%s1099_s9 + $0xa8] sm:$0xff]  }
  0x24   : > { %895 = vmatpush3.bf16.msra.mxu1 %v962_v8  ;;  %874 = vmatprep.subr.bf16.mxu0 %v963_v9  ;;  %v979_v25 = vld [vmem:[%s1099_s9 + $0x70] sm:$0xff]   ;;  %v983_v29 = vld [vmem:[%s1099_s9 + $0x78] sm:$0xff]   ;;  %v309_v33 = vld [vmem:[%s1089_s28] sm:$0xff] }
  0x25   : > { %896 = vmatprep.subr.bf16.mxu1 %v964_v10  ;;  %v980_v26 = vld [vmem:[%s1099_s9 + $0xf0] sm:$0xff]   ;;  %v984_v30 = vld [vmem:[%s1099_s9 + $0xf8] sm:$0xff]   ;;  %v310_v34 = vld [vmem:[%s1089_s28 + $0x8] sm:$0xff]  ;;  %v830_v35 = vcombine.low %v309_v33, %v309_v33  ;;  %v831_v36 = vcombine.high %v309_v33, %v309_v33 }
  0x26   : > { %v981_v27 = vld [vmem:[%s1099_s9 + $0x30] sm:$0xff]   ;;  %v985_v31 = vld [vmem:[%s1099_s9 + $0x38] sm:$0xff]   ;;  %v832_v37 = vcombine.low %v310_v34, %v310_v34  ;;  %v833_v38 = vcombine.high %v310_v34, %v310_v34  ;;  %v308_v47 = vld [vmem:[#allocation2] sm:$0xff] }
  0x27   : > { %875 = vmatpush3.bf16.msra.mxu0 %v965_v11  ;;  %v982_v28 = vld [vmem:[%s1099_s9 + $0xb0] sm:$0xff]   ;;  %v986_v32 = vld [vmem:[%s1099_s9 + $0xb8] sm:$0xff]   ;;  %613 = vmatprep.mubr.bf16.mxu0 %v831_v36  ;;  %v867_v53 = vld [vmem:[%s1158_s2] ss:$0 sm:$0xff] (!%p866_p9) }
  0x28   : > { %897 = vmatpush3.bf16.msra.mxu1 %v966_v12  ;;  %876 = vmatprep.subr.bf16.mxu0 %v967_v13 }
  0x29   : > { %898 = vmatprep.subr.bf16.mxu1 %v968_v14  ;;  %653 = vmatprep.mubr.bf16.mxu1 %v833_v38 }
  0x2b   : > { %877 = vmatpush3.bf16.msra.mxu0 %v969_v15 }
  0x2c   : > { %899 = vmatpush3.bf16.msra.mxu1 %v970_v16  ;;  %878 = vmatprep.subr.bf16.mxu0 %v971_v17 }
  0x2d   : > { %900 = vmatprep.subr.bf16.mxu1 %v972_v18 }
  0x2f   : > { %879 = vmatpush3.bf16.msra.mxu0 %v973_v19 }
  0x30   : > { %901 = vmatpush3.bf16.msra.mxu1 %v974_v20  ;;  %880 = vmatprep.subr.bf16.mxu0 %v975_v21 }
  0x31   : > { %902 = vmatprep.subr.bf16.mxu1 %v976_v22 }
  0x33   : > { %881 = vmatpush3.bf16.msra.mxu0 %v977_v23 }
  0x34   : > { %903 = vmatpush3.bf16.msra.mxu1 %v978_v24  ;;  %882 = vmatprep.subr.bf16.mxu0 %v979_v25 }
  0x35   : > { %904 = vmatprep.subr.bf16.mxu1 %v980_v26 }
  0x37   : > { %883 = vmatpush3.bf16.msra.mxu0 %v981_v27 }
  0x38   : > { %905 = vmatpush3.bf16.msra.mxu1 %v982_v28  ;;  %884 = vmatprep.subr.bf16.mxu0 %v983_v29 }
  0x39   : > { %906 = vmatprep.subr.bf16.mxu1 %v984_v30 }
  0x3b   : > { %885 = vmatpush3.bf16.msra.mxu0 %v985_v31 }
  0x3c   : > { %907 = vmatpush3.bf16.msra.mxu1 %v986_v32 }
  0x3e   : > { %614 = vmatmul.mubr.bf16.vlgmr.msra.gmra.mrb[0].mxu0 %v830_v35 }
  0x3f   : > { %654 = vmatmul.mubr.bf16.vlgmr.msra.gmra.mrb[0].mxu1 %v832_v37 }
 0x111   : > { %v886_v39 = vpop.f32.mrb[0].mxu0 }
 0x112   : > { %v908_v40 = vpop.f32.mrb[0].mxu1  ;;  %v887_v41 = vpop.f32.mrb[1].mxu0 }
 0x113   : > { %v909_v42 = vpop.f32.mrb[1].mxu1  ;;  %v888_v43 = vadd.f32 %v887_v41, %v886_v39  ;;  %v889_v45 = vpop.f32.mrb[2].mxu0 }
 0x114   : > { %v910_v44 = vadd.f32 %v909_v42, %v908_v40  ;;  %v911_v46 = vpop.f32.mrb[2].mxu1  ;;  %v890_v48 = vpop.f32.mrb[3].mxu0  ;;  %666 = sbr.rel (%p866_p9) target bundleno = 296 (0x128), region = 40 }
 0x115   : > { %v912_v49 = vpop.f32.mrb[3].mxu1 }
 0x116   : > { %v656_v50 = vadd.f32 %v910_v44, %v888_v43 }
 0x118   : > { %v661_v51 = vadd.f32 %v656_v50, %v308_v47 }
 0x11a   : > { %662 = vst [vmem:[#allocation2] sm:$0xff] %v661_v51 }
 0x121   : > { %v667_v52 = vld [vmem:[#allocation2] sm:$0xff] }
 0x122   : > { %v675_v54 = vadd.f32 %v867_v53, %v667_v52 }
 0x124   : > { %vm676_vm0 = vcmp.ge.f32.partialorder %v675_v54, 0.0  ;;  %v677_v55 = vmul.f32 0.1, %v675_v54 }
 0x126   : > { %v678_v56 = vsel %vm676_vm0, %v675_v54, %v677_v55 }
 0x127   : > { %679 = vst [vmem:[%s1094_s4] sm:$0xff] %v678_v56 }
 0x128 PF: > { %s13_s16 = sadd.s32 1, %s1029_s16   ;;  %s1160_s12 = smov %s1021_s14 }
 0x129   : > { %p10_p10 = scmp.ge.s32.totalorder %s13_s16, 18   ;;  %s1161_s13 = smov %s1025_s15 }
 0x12a   : > { %s1162_s14 = smov %s1165_s17  ;;  %s1163_s15 = smov %s1169_s18 }
 0x12b   :  { %12 = sbr.rel (!%p10_p10) target bundleno = 3 (0x3), region = 76 }

// kernel: spiking_flownet_forward.47
= control target key start
LH: loop header
LB: loop body
LE: loop exit
PB: predicated region body
PF: predicated region fallthrough
CT: control target
= control target key end

     0   :  { %s980_s9 = smov 0   ;;  %s982_s10 = smov 0   ;;  %s1081_s0 = inlined_call_operand.vmem [shape: bf16[4,8,2048], index: 0, kind: input, shape index: {}]   ;;  %s1082_s1 = inlined_call_operand.vmem [shape: bf16[4,2048,128], index: 1, kind: input, shape index: {}]   ;;  %s1083_s2 = inlined_call_operand.vmem [shape: f32[4,8,128], index: 2, kind: output, shape index: {}]  }
   0x1   :  { %s984_s11 = smov 0   ;;  %s986_s12 = smov 0  }
   0x2   :  { %s988_s13 = smov 0  }
   0x3 LB: > { %s27_s14 = sadd.s32 1, %s954_s11  ;;  %s38_s15 = sadd.s32 1, %s958_s12  ;;  %s962_s13 = sphi %s988_s13, %s12_s13   ;;  %s958_s12 = sphi %s986_s12, %s1087_s12   ;;  %s954_s11 = sphi %s984_s11, %s1086_s11   ;;  %s950_s10 = sphi %s982_s10, %s1085_s10   ;;  %s946_s9 = sphi %s980_s9, %s1084_s9  }
   0x4   : > { %p28_p0 = scmp.ge.s32.totalorder %s27_s14, 4  ;;  %p755_p1 = scmp.ge.s32.totalorder %s962_s13, 1 }
   0x5   : > { %p177_p2 = scmp.lt.s32.totalorder %s962_s13, 17 }
   0x6   : > { %s1089_s14 = smov (%p28_p0, %s27_s14), 0  ;;  %s1091_s15 = smov (!%p28_p0, %s38_s15), %s958_s12 }
   0x7   : > { %p178_p3 = pnand %p755_p1, %p177_p2  ;;  %p40_p4 = scmp.ge.s32.totalorder %s1091_s15, 4 }
   0x8   : > { %s756_s16 = sshll.u32 (!%p178_p3), %s946_s9, 2  ;;  %p225_p5 = scmp.lt.s32.totalorder (!%p178_p3), %s950_s10, 3 }
   0x9   : > { %s1093_s15 = smov (%p40_p4, %s1091_s15), 0  ;;  %181 = sbr.rel (%p178_p3) target bundleno = 291 (0x123), region = 28 }
   0xa   : > { %p229_p6 = scmp.lt.s32.totalorder (!%p178_p3), %s756_s16, 15  ;;  %s759_s17 = sshll.u32 (!%p178_p3), %s946_s9, 6 }
   0xb   : > { %p241_p7 = scmp.lt.s32.totalorder (!%p178_p3), %s759_s17, 255  ;;  %p763_p8 = scmp.ne.s32.totalorder (!%p178_p3), %s946_s9, 0 }
  0x10   : > { %s1095_s10 = smov (!%p225_p5, %s950_s10), 3  ;;  %s1097_s16 = smov (!%p229_p6, %s756_s16), 15 }
  0x11   : > { %s757_s18 = sshll.u32 %s1095_s10, 4  ;;  %s760_s20 = sshll.u32 %s1095_s10, 8  ;;  %v964_v0 = vmov (!%p763_p8), 0.0  }
  0x12   : > { %s234_s19 = sadd.s32 %s757_s18, %s1097_s16  ;;  %s762_s22 = sshll.u32 %s1095_s10, 3  ;;  %266 = vst [vmem:[#allocation2] sm:$0xff] (!%p763_p8), %v964_v0 }
  0x13   : > { %s758_s21 = sshll.u32 %s234_s19, 2  ;;  %s1022_s28 = scalar_lea.vmem %s1083_s2, %s762_s22 }
  0x14   : > { %s1017_s25 = scalar_lea.vmem %s1081_s0, %s758_s21  ;;  %s1099_s17 = smov (!%p241_p7, %s759_s17), 255 }
  0x15   : > { %s247_s29 = sadd.s32 %s760_s20, %s1099_s17  ;;  %265 = sbr.rel (%p763_p8) target bundleno = 28 (0x1c), region = 32 }
  0x16   : > { %s761_s30 = sshll.u32 %s247_s29, 2 }
  0x17   : > { %s1027_s5 = scalar_lea.vmem %s1082_s1, %s761_s30 }
  0x1c PF: > { %v888_v1 = vld [vmem:[%s1027_s5 + $0x40] sm:$0xff]   ;;  %v892_v5 = vld [vmem:[%s1027_s5 + $0x48] sm:$0xff]   ;;  %v896_v9 = vld [vmem:[%s1027_s5 + $0x50] sm:$0xff]   ;;  %p800_p9 = scmp.ne.s32.totalorder %s946_s9, 3 }
  0x1d   : > { %v889_v2 = vld [vmem:[%s1027_s5 + $0xc0] sm:$0xff]   ;;  %803 = vmatprep.subr.bf16.mxu0 %v888_v1  ;;  %v893_v6 = vld [vmem:[%s1027_s5 + $0xc8] sm:$0xff]   ;;  %v897_v10 = vld [vmem:[%s1027_s5 + $0xd0] sm:$0xff]  }
  0x1e   : > { %v890_v3 = vld [vmem:[%s1027_s5] sm:$0xff]   ;;  %825 = vmatprep.subr.bf16.mxu1 %v889_v2  ;;  %v894_v7 = vld [vmem:[%s1027_s5 + $0x8] sm:$0xff]   ;;  %v898_v11 = vld [vmem:[%s1027_s5 + $0x10] sm:$0xff]  }
  0x1f   : > { %v891_v4 = vld [vmem:[%s1027_s5 + $0x80] sm:$0xff]   ;;  %804 = vmatpush3.bf16.msra.mxu0 %v890_v3  ;;  %v895_v8 = vld [vmem:[%s1027_s5 + $0x88] sm:$0xff]   ;;  %v899_v12 = vld [vmem:[%s1027_s5 + $0x90] sm:$0xff]  }
  0x20   : > { %826 = vmatpush3.bf16.msra.mxu1 %v891_v4  ;;  %805 = vmatprep.subr.bf16.mxu0 %v892_v5  ;;  %v900_v13 = vld [vmem:[%s1027_s5 + $0x58] sm:$0xff]   ;;  %v904_v17 = vld [vmem:[%s1027_s5 + $0x60] sm:$0xff]   ;;  %v908_v21 = vld [vmem:[%s1027_s5 + $0x68] sm:$0xff]  }
  0x21   : > { %827 = vmatprep.subr.bf16.mxu1 %v893_v6  ;;  %v901_v14 = vld [vmem:[%s1027_s5 + $0xd8] sm:$0xff]   ;;  %v905_v18 = vld [vmem:[%s1027_s5 + $0xe0] sm:$0xff]   ;;  %v909_v22 = vld [vmem:[%s1027_s5 + $0xe8] sm:$0xff]  }
  0x22   : > { %v902_v15 = vld [vmem:[%s1027_s5 + $0x18] sm:$0xff]   ;;  %v906_v19 = vld [vmem:[%s1027_s5 + $0x20] sm:$0xff]   ;;  %v910_v23 = vld [vmem:[%s1027_s5 + $0x28] sm:$0xff]  }
  0x23   : > { %806 = vmatpush3.bf16.msra.mxu0 %v894_v7  ;;  %v903_v16 = vld [vmem:[%s1027_s5 + $0x98] sm:$0xff]   ;;  %v907_v20 = vld [vmem:[%s1027_s5 + $0xa0] sm:$0xff]   ;;  %v911_v24 = vld [vmem:[%s1027_s5 + $0xa8] sm:$0xff]  }
  0x24   : > { %828 = vmatpush3.bf16.msra.mxu1 %v895_v8  ;;  %807 = vmatprep.subr.bf16.mxu0 %v896_v9  ;;  %v912_v25 = vld [vmem:[%s1027_s5 + $0x70] sm:$0xff]   ;;  %v916_v29 = vld [vmem:[%s1027_s5 + $0x78] sm:$0xff]   ;;  %v268_v33 = vld [vmem:[%s1017_s25] sm:$0xff] }
  0x25   : > { %829 = vmatprep.subr.bf16.mxu1 %v897_v10  ;;  %v913_v26 = vld [vmem:[%s1027_s5 + $0xf0] sm:$0xff]   ;;  %v917_v30 = vld [vmem:[%s1027_s5 + $0xf8] sm:$0xff]   ;;  %v269_v34 = vld [vmem:[%s1017_s25 + $0x8] sm:$0xff]  ;;  %v764_v35 = vcombine.low %v268_v33, %v268_v33  ;;  %v765_v36 = vcombine.high %v268_v33, %v268_v33 }
  0x26   : > { %v914_v27 = vld [vmem:[%s1027_s5 + $0x30] sm:$0xff]   ;;  %v918_v31 = vld [vmem:[%s1027_s5 + $0x38] sm:$0xff]   ;;  %v766_v37 = vcombine.low %v269_v34, %v269_v34  ;;  %v767_v38 = vcombine.high %v269_v34, %v269_v34  ;;  %v267_v47 = vld [vmem:[#allocation2] sm:$0xff] }
  0x27   : > { %808 = vmatpush3.bf16.msra.mxu0 %v898_v11  ;;  %v915_v28 = vld [vmem:[%s1027_s5 + $0xb0] sm:$0xff]   ;;  %v919_v32 = vld [vmem:[%s1027_s5 + $0xb8] sm:$0xff]   ;;  %572 = vmatprep.mubr.bf16.mxu0 %v765_v36 }
  0x28   : > { %830 = vmatpush3.bf16.msra.mxu1 %v899_v12  ;;  %809 = vmatprep.subr.bf16.mxu0 %v900_v13 }
  0x29   : > { %831 = vmatprep.subr.bf16.mxu1 %v901_v14  ;;  %612 = vmatprep.mubr.bf16.mxu1 %v767_v38 }
  0x2b   : > { %810 = vmatpush3.bf16.msra.mxu0 %v902_v15 }
  0x2c   : > { %832 = vmatpush3.bf16.msra.mxu1 %v903_v16  ;;  %811 = vmatprep.subr.bf16.mxu0 %v904_v17 }
  0x2d   : > { %833 = vmatprep.subr.bf16.mxu1 %v905_v18 }
  0x2f   : > { %812 = vmatpush3.bf16.msra.mxu0 %v906_v19 }
  0x30   : > { %834 = vmatpush3.bf16.msra.mxu1 %v907_v20  ;;  %813 = vmatprep.subr.bf16.mxu0 %v908_v21 }
  0x31   : > { %835 = vmatprep.subr.bf16.mxu1 %v909_v22 }
  0x33   : > { %814 = vmatpush3.bf16.msra.mxu0 %v910_v23 }
  0x34   : > { %836 = vmatpush3.bf16.msra.mxu1 %v911_v24  ;;  %815 = vmatprep.subr.bf16.mxu0 %v912_v25 }
  0x35   : > { %837 = vmatprep.subr.bf16.mxu1 %v913_v26 }
  0x37   : > { %816 = vmatpush3.bf16.msra.mxu0 %v914_v27 }
  0x38   : > { %838 = vmatpush3.bf16.msra.mxu1 %v915_v28  ;;  %817 = vmatprep.subr.bf16.mxu0 %v916_v29 }
  0x39   : > { %839 = vmatprep.subr.bf16.mxu1 %v917_v30 }
  0x3b   : > { %818 = vmatpush3.bf16.msra.mxu0 %v918_v31 }
  0x3c   : > { %840 = vmatpush3.bf16.msra.mxu1 %v919_v32 }
  0x3e   : > { %573 = vmatmul.mubr.bf16.vlgmr.msra.gmra.mrb[0].mxu0 %v764_v35 }
  0x3f   : > { %613 = vmatmul.mubr.bf16.vlgmr.msra.gmra.mrb[0].mxu1 %v766_v37 }
 0x111   : > { %v819_v39 = vpop.f32.mrb[0].mxu0 }
 0x112   : > { %v841_v40 = vpop.f32.mrb[0].mxu1  ;;  %v820_v41 = vpop.f32.mrb[1].mxu0 }
 0x113   : > { %v842_v42 = vpop.f32.mrb[1].mxu1  ;;  %v821_v43 = vadd.f32 %v820_v41, %v819_v39  ;;  %v822_v45 = vpop.f32.mrb[2].mxu0 }
 0x114   : > { %v843_v44 = vadd.f32 %v842_v42, %v841_v40  ;;  %v844_v46 = vpop.f32.mrb[2].mxu1  ;;  %v823_v48 = vpop.f32.mrb[3].mxu0  ;;  %625 = sbr.rel (%p800_p9) target bundleno = 291 (0x123), region = 36 }
 0x115   : > { %v845_v49 = vpop.f32.mrb[3].mxu1 }
 0x116   : > { %v615_v50 = vadd.f32 %v843_v44, %v821_v43 }
 0x118   : > { %v620_v51 = vadd.f32 %v615_v50, %v267_v47 }
 0x11a   : > { %621 = vst [vmem:[#allocation2] sm:$0xff] %v620_v51 }
 0x121   : > { %v626_v52 = vld [vmem:[#allocation2] sm:$0xff] }
 0x122   : > { %627 = vst [vmem:[%s1022_s28] sm:$0xff] %v626_v52 }
 0x123 PF: > { %s12_s13 = sadd.s32 1, %s962_s13   ;;  %s1084_s9 = smov %s954_s11 }
 0x124   : > { %p9_p10 = scmp.ge.s32.totalorder %s12_s13, 18   ;;  %s1085_s10 = smov %s958_s12 }
 0x125   : > { %s1086_s11 = smov %s1089_s14  ;;  %s1087_s12 = smov %s1093_s15 }
 0x126   :  { %11 = sbr.rel (!%p9_p10) target bundleno = 3 (0x3), region = 69 }

// kernel: spiking_flownet_forward.50
= control target key start
LH: loop header
LB: loop body
LE: loop exit
PB: predicated region body
PF: predicated region fallthrough
CT: control target
= control target key end

     0   :  { %s732_s12 = smov 0   ;;  %s734_s13 = smov 0   ;;  %s802_s0 = inlined_call_operand.vmem [shape: bf16[4,8,1664], index: 0, kind: input, shape index: {}]   ;;  %s803_s1 = inlined_call_operand.vmem [shape: bf16[4,1664,128], index: 1, kind: input, shape index: {}]   ;;  %s804_s2 = inlined_call_operand.vmem [shape: f32[1,128], index: 2, kind: input, shape index: {}]   ;;  %s805_s3 = inlined_call_operand.vmem [shape: f32[4,8,128], index: 3, kind: output, shape index: {}]  }
   0x1   :  { %s736_s14 = smov 0   ;;  %s738_s15 = smov 0  }
   0x2   :  { %s740_s16 = smov 0  }
   0x3 LB: > { %s28_s17 = sadd.s32 1, %s699_s14  ;;  %s39_s18 = sadd.s32 1, %s703_s15  ;;  %s707_s16 = sphi %s740_s16, %s13_s16   ;;  %s703_s15 = sphi %s738_s15, %s809_s15   ;;  %s699_s14 = sphi %s736_s14, %s808_s14   ;;  %s695_s13 = sphi %s734_s13, %s807_s13   ;;  %s691_s12 = sphi %s732_s12, %s806_s12  }
   0x4   : > { %p29_p0 = scmp.ge.s32.totalorder %s28_s17, 13  ;;  %p569_p1 = scmp.ge.s32.totalorder %s707_s16, 1 }
   0x5   : > { %p208_p2 = scmp.lt.s32.totalorder %s707_s16, 53 }
   0x6   : > { %s811_s17 = smov (%p29_p0, %s28_s17), 0  ;;  %s813_s18 = smov (!%p29_p0, %s39_s18), %s703_s15 }
   0x7   : > { %p209_p3 = pnand %p569_p1, %p208_p2  ;;  %p41_p4 = scmp.ge.s32.totalorder %s813_s18, 4 }
   0x8   : > { %p259_p5 = scmp.lt.s32.totalorder (!%p209_p3), %s695_s13, 3  ;;  %p263_p6 = scmp.lt.s32.totalorder (!%p209_p3), %s691_s12, 12 }
   0x9   : > { %s815_s18 = smov (%p41_p4, %s813_s18), 0  ;;  %212 = sbr.rel (%p209_p3) target bundleno = 288 (0x120), region = 32 }
   0xa   : > { %s571_s19 = sshll.u32 (!%p209_p3), %s691_s12, 4  ;;  %p574_p8 = scmp.ne.s32.totalorder (!%p209_p3), %s691_s12, 0 }
   0xb   : > { %p274_p7 = scmp.lt.s32.totalorder (!%p209_p3), %s571_s19, 207 }
  0x10   : > { %s817_s13 = smov (!%p259_p5, %s695_s13), 3  ;;  %s819_s19 = smov (!%p274_p7, %s571_s19), 207 }
  0x11   : > { %s264_s20 = scalar_select %p263_p6, %s691_s12, 12 }
  0x12   : > { %s616_s21 = smul.u32 13, %s817_s13  ;;  %s573_s22 = sshll.u32 %s817_s13, 3  ;;  %v709_v0 = vmov (!%p574_p8), 0.0  }
  0x13   : > { %s770_s26 = scalar_lea.vmem %s805_s3, %s573_s22  ;;  %s617_s28 = smul.u32 208, %s817_s13  ;;  %302 = vst [vmem:[#allocation2] sm:$0xff] (!%p574_p8), %v709_v0 }
  0x14   : > { %s268_s23 = sadd.s32 %s616_s21, %s264_s20  ;;  %301 = sbr.rel (%p574_p8) target bundleno = 27 (0x1b), region = 36 }
  0x15   : > { %s570_s27 = sshll.u32 %s268_s23, 2  ;;  %s280_s5 = sadd.s32 %s617_s28, %s819_s19 }
  0x16   : > { %s775_s4 = scalar_lea.vmem %s802_s0, %s570_s27  ;;  %s572_s6 = sshll.u32 %s280_s5, 2 }
  0x17   : > { %s282_s9 = scalar_lea.vmem %s803_s1, %s572_s6 }
  0x1b PF: > { %v661_v1 = vld [vmem:[%s282_s9] sm:$0xff]   ;;  %v710_v2 = vmov 0.0   ;;  %v662_v3 = vld [vmem:[%s282_s9 + $0x8] sm:$0xff]   ;;  %vm711_vm0 = vmmov 0   ;;  %v663_v4 = vld [vmem:[%s282_s9 + $0x10] sm:$0xff]   ;;  %p583_p9 = scmp.ne.s32.totalorder %s691_s12, 12 }
  0x1c   : > { %596 = vmatprep.subr.bf16.mxu0 %v710_v2  ;;  %612 = vmatprep.mubr.msk.bf16.mxu0 %vm711_vm0, %v710_v2  ;;  %v664_v5 = vld [vmem:[%s282_s9 + $0x18] sm:$0xff]   ;;  %v665_v6 = vld [vmem:[%s282_s9 + $0x20] sm:$0xff]   ;;  %v666_v7 = vld [vmem:[%s282_s9 + $0x28] sm:$0xff]  }
  0x1d   : > { %597 = vmatpush3.bf16.msra.mxu0 %v661_v1  ;;  %v667_v8 = vld [vmem:[%s282_s9 + $0x30] sm:$0xff]   ;;  %v668_v9 = vld [vmem:[%s282_s9 + $0x38] sm:$0xff]   ;;  %v304_v10 = vld [vmem:[%s775_s4] sm:$0xf] }
  0x1e   : > { %598 = vmatprep.subr.bf16.mxu0 %v710_v2  ;;  %v303_v11 = vld [vmem:[#allocation2] sm:$0xff] }
  0x1f   : > { %v584_v18 = vld [vmem:[%s804_s2] ss:$0 sm:$0xff] (!%p583_p9) }
  0x21   : > { %599 = vmatpush3.bf16.msra.mxu0 %v662_v3 }
  0x22   : > { %600 = vmatprep.subr.bf16.mxu0 %v710_v2 }
  0x25   : > { %601 = vmatpush3.bf16.msra.mxu0 %v663_v4 }
  0x26   : > { %602 = vmatprep.subr.bf16.mxu0 %v710_v2 }
  0x29   : > { %603 = vmatpush3.bf16.msra.mxu0 %v664_v5 }
  0x2a   : > { %604 = vmatprep.subr.bf16.mxu0 %v710_v2 }
  0x2d   : > { %605 = vmatpush3.bf16.msra.mxu0 %v665_v6 }
  0x2e   : > { %606 = vmatprep.subr.bf16.mxu0 %v710_v2 }
  0x31   : > { %607 = vmatpush3.bf16.msra.mxu0 %v666_v7 }
  0x32   : > { %608 = vmatprep.subr.bf16.mxu0 %v710_v2 }
  0x35   : > { %609 = vmatpush3.bf16.msra.mxu0 %v667_v8 }
  0x36   : > { %610 = vmatprep.subr.bf16.mxu0 %v710_v2 }
  0x39   : > { %611 = vmatpush3.bf16.msra.mxu0 %v668_v9 }
  0x3c   : > { %613 = vmatmul.mubr.bf16.vlgmr.msra.gmra.mrb[0].mxu0 %v304_v10 }
 0x10c   : > { %414 = sbr.rel (%p583_p9) target bundleno = 288 (0x120), region = 40 }
 0x10f   : > { %v403_v12 = vpop.f32.mrb[0].mxu0 }
 0x110   : > { %v409_v13 = vadd.f32 %v403_v12, %v303_v11  ;;  %v614_v14 = vpop.f32.mrb[1].mxu0 }
 0x111   : > { %v406_v15 = vpop.f32.mrb[2].mxu0 }
 0x112   : > { %410 = vst [vmem:[#allocation2] sm:$0xff] %v409_v13  ;;  %v615_v16 = vpop.f32.mrb[3].mxu0 }
 0x119   : > { %v415_v17 = vld [vmem:[#allocation2] sm:$0xff] }
 0x11a   : > { %v423_v19 = vadd.f32 %v584_v18, %v415_v17 }
 0x11c   : > { %vm424_vm1 = vcmp.ge.f32.partialorder %v423_v19, 0.0  ;;  %v425_v20 = vmul.f32 0.1, %v423_v19 }
 0x11e   : > { %v426_v21 = vsel %vm424_vm1, %v423_v19, %v425_v20 }
 0x11f   : > { %427 = vst [vmem:[%s770_s26] sm:$0xff] %v426_v21 }
 0x120 PF: > { %s13_s16 = sadd.s32 1, %s707_s16   ;;  %s806_s12 = smov %s699_s14 }
 0x121   : > { %p10_p10 = scmp.ge.s32.totalorder %s13_s16, 54   ;;  %s807_s13 = smov %s703_s15 }
 0x122   : > { %s808_s14 = smov %s811_s17  ;;  %s809_s15 = smov %s815_s18 }
 0x123   :  { %12 = sbr.rel (!%p10_p10) target bundleno = 3 (0x3), region = 76 }

// kernel: spiking_flownet_forward.49
= control target key start
LH: loop header
LB: loop body
LE: loop exit
PB: predicated region body
PF: predicated region fallthrough
CT: control target
= control target key end

     0   :  { %s660_s9 = smov 0   ;;  %s662_s10 = smov 0   ;;  %s727_s0 = inlined_call_operand.vmem [shape: bf16[4,8,1664], index: 0, kind: input, shape index: {}]   ;;  %s728_s1 = inlined_call_operand.vmem [shape: bf16[4,1664,128], index: 1, kind: input, shape index: {}]   ;;  %s729_s2 = inlined_call_operand.vmem [shape: f32[4,8,128], index: 2, kind: output, shape index: {}]  }
   0x1   :  { %s664_s11 = smov 0   ;;  %s666_s12 = smov 0  }
   0x2   :  { %s668_s13 = smov 0  }
   0x3 LB: > { %s27_s14 = sadd.s32 1, %s632_s11  ;;  %s38_s15 = sadd.s32 1, %s636_s12  ;;  %s640_s13 = sphi %s668_s13, %s12_s13   ;;  %s636_s12 = sphi %s666_s12, %s733_s12   ;;  %s632_s11 = sphi %s664_s11, %s732_s11   ;;  %s628_s10 = sphi %s662_s10, %s731_s10   ;;  %s624_s9 = sphi %s660_s9, %s730_s9  }
   0x4   : > { %p28_p0 = scmp.ge.s32.totalorder %s27_s14, 13  ;;  %p503_p1 = scmp.ge.s32.totalorder %s640_s13, 1 }
   0x5   : > { %p175_p2 = scmp.lt.s32.totalorder %s640_s13, 53 }
   0x6   : > { %s735_s14 = smov (%p28_p0, %s27_s14), 0  ;;  %s737_s15 = smov (!%p28_p0, %s38_s15), %s636_s12 }
   0x7   : > { %p176_p3 = pnand %p503_p1, %p175_p2  ;;  %p40_p4 = scmp.ge.s32.totalorder %s737_s15, 4 }
   0x8   : > { %p221_p5 = scmp.lt.s32.totalorder (!%p176_p3), %s628_s10, 3  ;;  %p225_p6 = scmp.lt.s32.totalorder (!%p176_p3), %s624_s9, 12 }
   0x9   : > { %s739_s15 = smov (%p40_p4, %s737_s15), 0  ;;  %179 = sbr.rel (%p176_p3) target bundleno = 283 (0x11b), region = 28 }
   0xa   : > { %s505_s16 = sshll.u32 (!%p176_p3), %s624_s9, 4  ;;  %p508_p8 = scmp.ne.s32.totalorder (!%p176_p3), %s624_s9, 0 }
   0xb   : > { %p236_p7 = scmp.lt.s32.totalorder (!%p176_p3), %s505_s16, 207 }
  0x10   : > { %s741_s10 = smov (!%p221_p5, %s628_s10), 3  ;;  %s743_s16 = smov (!%p236_p7, %s505_s16), 207 }
  0x11   : > { %s226_s17 = scalar_select %p225_p6, %s624_s9, 12 }
  0x12   : > { %s549_s18 = smul.u32 13, %s741_s10  ;;  %s507_s19 = sshll.u32 %s741_s10, 3  ;;  %v642_v0 = vmov (!%p508_p8), 0.0  }
  0x13   : > { %s698_s23 = scalar_lea.vmem %s729_s2, %s507_s19  ;;  %s550_s25 = smul.u32 208, %s741_s10  ;;  %261 = vst [vmem:[#allocation2] sm:$0xff] (!%p508_p8), %v642_v0 }
  0x14   : > { %s230_s20 = sadd.s32 %s549_s18, %s226_s17  ;;  %260 = sbr.rel (%p508_p8) target bundleno = 27 (0x1b), region = 32 }
  0x15   : > { %s504_s24 = sshll.u32 %s230_s20, 2  ;;  %s242_s29 = sadd.s32 %s550_s25, %s743_s16 }
  0x16   : > { %s703_s28 = scalar_lea.vmem %s727_s0, %s504_s24  ;;  %s506_s30 = sshll.u32 %s242_s29, 2 }
  0x17   : > { %s244_s5 = scalar_lea.vmem %s728_s1, %s506_s30 }
  0x1b PF: > { %v594_v1 = vld [vmem:[%s244_s5] sm:$0xff]   ;;  %v643_v2 = vmov 0.0   ;;  %v595_v3 = vld [vmem:[%s244_s5 + $0x8] sm:$0xff]   ;;  %vm644_vm0 = vmmov 0   ;;  %v596_v4 = vld [vmem:[%s244_s5 + $0x10] sm:$0xff]   ;;  %p517_p9 = scmp.ne.s32.totalorder %s624_s9, 12 }
  0x1c   : > { %529 = vmatprep.subr.bf16.mxu0 %v643_v2  ;;  %545 = vmatprep.mubr.msk.bf16.mxu0 %vm644_vm0, %v643_v2  ;;  %v597_v5 = vld [vmem:[%s244_s5 + $0x18] sm:$0xff]   ;;  %v598_v6 = vld [vmem:[%s244_s5 + $0x20] sm:$0xff]   ;;  %v599_v7 = vld [vmem:[%s244_s5 + $0x28] sm:$0xff]  }
  0x1d   : > { %530 = vmatpush3.bf16.msra.mxu0 %v594_v1  ;;  %v600_v8 = vld [vmem:[%s244_s5 + $0x30] sm:$0xff]   ;;  %v601_v9 = vld [vmem:[%s244_s5 + $0x38] sm:$0xff]   ;;  %v263_v10 = vld [vmem:[%s703_s28] sm:$0xf] }
  0x1e   : > { %531 = vmatprep.subr.bf16.mxu0 %v643_v2  ;;  %v262_v11 = vld [vmem:[#allocation2] sm:$0xff] }
  0x21   : > { %532 = vmatpush3.bf16.msra.mxu0 %v595_v3 }
  0x22   : > { %533 = vmatprep.subr.bf16.mxu0 %v643_v2 }
  0x25   : > { %534 = vmatpush3.bf16.msra.mxu0 %v596_v4 }
  0x26   : > { %535 = vmatprep.subr.bf16.mxu0 %v643_v2 }
  0x29   : > { %536 = vmatpush3.bf16.msra.mxu0 %v597_v5 }
  0x2a   : > { %537 = vmatprep.subr.bf16.mxu0 %v643_v2 }
  0x2d   : > { %538 = vmatpush3.bf16.msra.mxu0 %v598_v6 }
  0x2e   : > { %539 = vmatprep.subr.bf16.mxu0 %v643_v2 }
  0x31   : > { %540 = vmatpush3.bf16.msra.mxu0 %v599_v7 }
  0x32   : > { %541 = vmatprep.subr.bf16.mxu0 %v643_v2 }
  0x35   : > { %542 = vmatpush3.bf16.msra.mxu0 %v600_v8 }
  0x36   : > { %543 = vmatprep.subr.bf16.mxu0 %v643_v2 }
  0x39   : > { %544 = vmatpush3.bf16.msra.mxu0 %v601_v9 }
  0x3c   : > { %546 = vmatmul.mubr.bf16.vlgmr.msra.gmra.mrb[0].mxu0 %v263_v10 }
 0x10c   : > { %373 = sbr.rel (%p517_p9) target bundleno = 283 (0x11b), region = 36 }
 0x10f   : > { %v362_v12 = vpop.f32.mrb[0].mxu0 }
 0x110   : > { %v368_v13 = vadd.f32 %v362_v12, %v262_v11  ;;  %v547_v14 = vpop.f32.mrb[1].mxu0 }
 0x111   : > { %v365_v15 = vpop.f32.mrb[2].mxu0 }
 0x112   : > { %369 = vst [vmem:[#allocation2] sm:$0xff] %v368_v13  ;;  %v548_v16 = vpop.f32.mrb[3].mxu0 }
 0x119   : > { %v374_v17 = vld [vmem:[#allocation2] sm:$0xff] }
 0x11a   : > { %375 = vst [vmem:[%s698_s23] sm:$0xff] %v374_v17 }
 0x11b PF: > { %s12_s13 = sadd.s32 1, %s640_s13   ;;  %s730_s9 = smov %s632_s11 }
 0x11c   : > { %p9_p10 = scmp.ge.s32.totalorder %s12_s13, 54   ;;  %s731_s10 = smov %s636_s12 }
 0x11d   : > { %s732_s11 = smov %s735_s14  ;;  %s733_s12 = smov %s739_s15 }
 0x11e   :  { %11 = sbr.rel (!%p9_p10) target bundleno = 3 (0x3), region = 69 }

// kernel: spiking_flownet_forward.52
= control target key start
LH: loop header
LB: loop body
LE: loop exit
PB: predicated region body
PF: predicated region fallthrough
CT: control target
= control target key end

     0   :  { %s873_s12 = smov 0   ;;  %s875_s13 = smov 0   ;;  %s994_s0 = inlined_call_operand.vmem [shape: bf16[4,32,896], index: 0, kind: input, shape index: {}]   ;;  %s995_s1 = inlined_call_operand.vmem [shape: bf16[4,896,128], index: 1, kind: input, shape index: {}]   ;;  %s996_s2 = inlined_call_operand.vmem [shape: f32[1,128], index: 2, kind: input, shape index: {}]   ;;  %s997_s3 = inlined_call_operand.vmem [shape: f32[4,32,128], index: 3, kind: output, shape index: {}]  }
   0x1   :  { %s877_s14 = smov 0   ;;  %s879_s15 = smov 0  }
   0x2   :  { %s881_s16 = smov 0   ;;  %s883_s17 = smov 0  }
   0x3   :  { %s885_s18 = smov 0  }
   0x4 LB: > { %s28_s19 = sadd.s32 1, %s842_s16  ;;  %s39_s20 = sadd.s32 1, %s846_s17  ;;  %s850_s18 = sphi %s885_s18, %s13_s18   ;;  %s846_s17 = sphi %s883_s17, %s1003_s17   ;;  %s842_s16 = sphi %s881_s16, %s1002_s16   ;;  %s838_s15 = sphi %s879_s15, %s1001_s15   ;;  %s834_s14 = sphi %s877_s14, %s1000_s14   ;;  %s830_s13 = sphi %s875_s13, %s999_s13   ;;  %s826_s12 = sphi %s873_s12, %s998_s12  }
   0x5   : > { %p29_p0 = scmp.ge.s32.totalorder %s28_s19, 7  ;;  %p57_p1 = scmp.ne.s32.totalorder %s830_s13, %s826_s12 }
   0x6   : > { %p58_p2 = scmp.eq.s32.totalorder %s850_s18, 0  ;;  %s50_s24 = sadd.s32 1, %s830_s13 }
   0x7   : > { %s1005_s19 = smov (%p29_p0, %s28_s19), 0  ;;  %s1007_s20 = smov (!%p29_p0, %s39_s20), %s846_s17 }
   0x8   : > { %p59_p3 = por %p58_p2, %p57_p1  ;;  %p41_p4 = scmp.ge.s32.totalorder %s1007_s20, 4 }
   0x9   : > { %s46_s21 = ssub.s32 %s842_s16, %s1005_s19  ;;  %p672_p6 = scmp.ge.s32.totalorder %s850_s18, 28 }
   0xa   : > { %s1009_s20 = smov (%p41_p4, %s1007_s20), 0 }
   0xb   : > { %s43_s22 = ssub.s32 %s846_s17, %s1009_s20  ;;  %175 = sbr.rel (%p672_p6) target bundleno = 27 (0x1b), region = 20 }
   0xc   : > { %s47_s23 = sor.u32 %s46_s21, %s43_s22 }
   0xd   : > { %p48_p5 = scmp.eq.s32.totalorder %s47_s23, 0 }
   0xf   : > { %s924_s25 = scalar_select %p48_p5, %s830_s13, %s50_s24  }
  0x12   : > { %178 = sbr.rel (!%p59_p3) target bundleno = 27 (0x1b), region = 24  ;;  %s180_s26 = sand.u32 (%p59_p3), 1, %s830_s13  }
  0x13   : > { %s727_s27 = smul.u32 (%p59_p3), 28, %s846_s17  ;;  %s673_s28 = sshll.u32 (%p59_p3), %s180_s26, 4 }
  0x14   : > { %s182_s7 = scalar_lea.vmem (%p59_p3), [#allocation3], %s673_s28 }
  0x15   : > { %s187_s29 = sadd.s32 (%p59_p3), %s842_s16, %s727_s27 }
  0x16   : > { %s674_s30 = sshll.u32 (%p59_p3), %s187_s29, 2 }
  0x17   : > { %s189_s6 = scalar_lea.vmem (%p59_p3), %s994_s0, %s674_s30 }
  0x18   : > { %v205_v0 = vld [vmem:[%s189_s6] sm:$0xf] (%p59_p3)  ;;  %v207_v1 = vld [vmem:[%s189_s6 + $0x1c] sm:$0xf] (%p59_p3)  ;;  %v209_v2 = vld [vmem:[%s189_s6 + $0x38] sm:$0xf] (%p59_p3) }
  0x19   : > { %206 = vst [vmem:[%s182_s7] sm:$0xf] %v205_v0  ;;  %208 = vst [vmem:[%s182_s7 + $0x4] sm:$0xf] %v207_v1  ;;  %v211_v3 = vld [vmem:[%s189_s6 + $0x54] sm:$0xf] }
  0x1a   : > { %210 = vst [vmem:[%s182_s7 + $0x8] sm:$0xf] %v209_v2  ;;  %212 = vst [vmem:[%s182_s7 + $0xc] sm:$0xf] %v211_v3 }
  0x1b PF: > { %p675_p7 = scmp.ge.s32.totalorder %s850_s18, 1  ;;  %p258_p8 = scmp.lt.s32.totalorder %s850_s18, 29 }
  0x1d   : > { %p259_p9 = pnand %p675_p7, %p258_p8 }
  0x1e   : > { %s265_s8 = sand.u32 (!%p259_p9), 1, %s826_s12   ;;  %s677_s9 = sshll.u32 (!%p259_p9), %s834_s14, 4 }
  0x1f   : > { %262 = sbr.rel (%p259_p9) target bundleno = 311 (0x137), region = 69  ;;  %s937_s10 = sshll.u32 (!%p259_p9), %s265_s8, 4 }
  0x20   : > { %p312_p10 = scmp.lt.s32.totalorder (!%p259_p9), %s838_s15, 3  ;;  %p314_p11 = scmp.lt.s32.totalorder (!%p259_p9), %s677_s9, 111 }
  0x21   : > { %s267_s30 = scalar_lea.vmem (!%p259_p9), [#allocation3], %s937_s10  ;;  %p681_p12 = scmp.ne.s32.totalorder (!%p259_p9), %s834_s14, 0 }
  0x26   : > { %s1011_s15 = smov (!%p312_p10, %s838_s15), 3  ;;  %s1013_s9 = smov (!%p314_p11, %s677_s9), 111 }
  0x27   : > { %s728_s11 = smul.u32 112, %s1011_s15  ;;  %s696_s21 = sshll.u32 %s1011_s15, 5  ;;  %v852_v4 = vmov (!%p681_p12), 0.0  }
  0x28   : > { %s944_s24 = scalar_lea.vmem %s997_s3, %s696_s21  ;;  %344 = sbr.rel (%p681_p12) target bundleno = 47 (0x2f), region = 77  ;;  %345 = vst [vmem:[#allocation2] sm:$0xff] (!%p681_p12), %v852_v4  ;;  %346 = vst [vmem:[#allocation2 + $0x8] sm:$0xff] (!%p681_p12), %v852_v4 }
  0x29   : > { %s320_s26 = sadd.s32 %s728_s11, %s1013_s9  ;;  %347 = vst [vmem:[#allocation2 + $0x10] sm:$0xff] (!%p681_p12), %v852_v4  ;;  %348 = vst [vmem:[#allocation2 + $0x18] sm:$0xff] (!%p681_p12), %v852_v4 }
  0x2a   : > { %s678_s27 = sshll.u32 %s320_s26, 2 }
  0x2b   : > { %s949_s12 = scalar_lea.vmem %s995_s1, %s678_s27 }
  0x2f PF: > { %v786_v5 = vld [vmem:[%s949_s12] sm:$0xff]   ;;  %v787_v6 = vld [vmem:[%s949_s12 + $0x8] sm:$0xff]   ;;  %v788_v7 = vld [vmem:[%s949_s12 + $0x10] sm:$0xff]   ;;  %p692_p13 = scmp.ne.s32.totalorder %s834_s14, 6 }
  0x30   : > { %707 = vmatprep.subr.bf16.mxu0 %v786_v5  ;;  %v789_v8 = vld [vmem:[%s949_s12 + $0x18] sm:$0xff]   ;;  %v794_v9 = vld [vmem:[%s267_s30] sm:$0xff]   ;;  %v791_v11 = vld [vmem:[%s949_s12 + $0x28] sm:$0xff]  }
  0x31   : > { %708 = vmatpush3.bf16.msra.mxu0 %v786_v5  ;;  %723 = vmatprep.mubr.bf16.mxu0 %v794_v9  ;;  %v790_v10 = vld [vmem:[%s949_s12 + $0x20] sm:$0xff]   ;;  %v792_v12 = vld [vmem:[%s949_s12 + $0x30] sm:$0xff]   ;;  %v793_v13 = vld [vmem:[%s949_s12 + $0x38] sm:$0xff]  }
  0x32   : > { %709 = vmatprep.subr.bf16.mxu0 %v787_v6  ;;  %v795_v14 = vld [vmem:[%s267_s30 + $0x8] sm:$0xff]   ;;  %v351_v15 = vld [vmem:[#allocation2 + $0x10] sm:$0xff]  ;;  %v349_v16 = vld [vmem:[#allocation2] sm:$0xff] }
  0x33   : > { %v352_v18 = vld [vmem:[#allocation2 + $0x18] sm:$0xff]  ;;  %v350_v21 = vld [vmem:[#allocation2 + $0x8] sm:$0xff]  ;;  %v693_v28 = vld [vmem:[%s996_s2] ss:$0 sm:$0xff] (!%p692_p13) }
  0x35   : > { %710 = vmatpush3.bf16.msra.mxu0 %v787_v6 }
  0x36   : > { %711 = vmatprep.subr.bf16.mxu0 %v788_v7 }
  0x39   : > { %712 = vmatpush3.bf16.msra.mxu0 %v788_v7 }
  0x3a   : > { %713 = vmatprep.subr.bf16.mxu0 %v789_v8 }
  0x3d   : > { %714 = vmatpush3.bf16.msra.mxu0 %v789_v8 }
  0x3e   : > { %715 = vmatprep.subr.bf16.mxu0 %v790_v10 }
  0x41   : > { %716 = vmatpush3.bf16.msra.mxu0 %v790_v10 }
  0x42   : > { %717 = vmatprep.subr.bf16.mxu0 %v791_v11 }
  0x45   : > { %718 = vmatpush3.bf16.msra.mxu0 %v791_v11 }
  0x46   : > { %719 = vmatprep.subr.bf16.mxu0 %v792_v12 }
  0x49   : > { %720 = vmatpush3.bf16.msra.mxu0 %v792_v12 }
  0x4a   : > { %721 = vmatprep.subr.bf16.mxu0 %v793_v13 }
  0x4d   : > { %722 = vmatpush3.bf16.msra.mxu0 %v793_v13 }
  0x50   : > { %724 = vmatmul.mubr.bf16.vlgmr.msra.gmra.mrb[0].mxu0 %v795_v14 }
 0x123   : > { %v725_v17 = vpop.f32.mrb[0].mxu0  ;;  %493 = sbr.rel (%p692_p13) target bundleno = 311 (0x137), region = 81 }
 0x124   : > { %v484_v19 = vadd.f32 %v725_v17, %v351_v15  ;;  %v467_v20 = vpop.f32.mrb[1].mxu0 }
 0x125   : > { %v482_v22 = vadd.f32 %v467_v20, %v349_v16  ;;  %v726_v23 = vpop.f32.mrb[2].mxu0 }
 0x126   : > { %488 = vst [vmem:[#allocation2 + $0x10] sm:$0xff] %v484_v19  ;;  %v485_v24 = vadd.f32 %v726_v23, %v352_v18  ;;  %v470_v25 = vpop.f32.mrb[3].mxu0 }
 0x127   : > { %486 = vst [vmem:[#allocation2] sm:$0xff] %v482_v22  ;;  %v483_v26 = vadd.f32 %v470_v25, %v350_v21 }
 0x128   : > { %489 = vst [vmem:[#allocation2 + $0x18] sm:$0xff] %v485_v24 }
 0x129   : > { %487 = vst [vmem:[#allocation2 + $0x8] sm:$0xff] %v483_v26 }
 0x12d   : > { %v496_v32 = vld [vmem:[#allocation2 + $0x10] sm:$0xff] }
 0x12e   : > { %v494_v27 = vld [vmem:[#allocation2] sm:$0xff]  ;;  %v507_v34 = vadd.f32 %v693_v28, %v496_v32 }
 0x12f   : > { %v505_v30 = vadd.f32 %v693_v28, %v494_v27  ;;  %v497_v33 = vld [vmem:[#allocation2 + $0x18] sm:$0xff] }
 0x130   : > { %v495_v29 = vld [vmem:[#allocation2 + $0x8] sm:$0xff]  ;;  %v508_v35 = vadd.f32 %v693_v28, %v497_v33  ;;  %vm511_vm2 = vcmp.ge.f32.partialorder %v507_v34, 0.0  ;;  %v515_v38 = vmul.f32 0.1, %v507_v34 }
 0x131   : > { %v506_v31 = vadd.f32 %v693_v28, %v495_v29  ;;  %vm509_vm0 = vcmp.ge.f32.partialorder %v505_v30, 0.0  ;;  %v513_v36 = vmul.f32 0.1, %v505_v30 }
 0x132   : > { %vm512_vm3 = vcmp.ge.f32.partialorder %v508_v35, 0.0  ;;  %v516_v39 = vmul.f32 0.1, %v508_v35  ;;  %v519_v42 = vsel %vm511_vm2, %v507_v34, %v515_v38 }
 0x133   : > { %vm510_vm1 = vcmp.ge.f32.partialorder %v506_v31, 0.0  ;;  %v514_v37 = vmul.f32 0.1, %v506_v31  ;;  %v517_v40 = vsel %vm509_vm0, %v505_v30, %v513_v36  ;;  %523 = vst [vmem:[%s944_s24 + $0x10] sm:$0xff] %v519_v42 }
 0x134   : > { %521 = vst [vmem:[%s944_s24] sm:$0xff] %v517_v40  ;;  %v520_v43 = vsel %vm512_vm3, %v508_v35, %v516_v39 }
 0x135   : > { %v518_v41 = vsel %vm510_vm1, %v506_v31, %v514_v37  ;;  %524 = vst [vmem:[%s944_s24 + $0x18] sm:$0xff] %v520_v43 }
 0x136   : > { %522 = vst [vmem:[%s944_s24 + $0x8] sm:$0xff] %v518_v41 }
 0x137 PF: > { %s13_s18 = sadd.s32 1, %s850_s18   ;;  %s998_s12 = smov %s830_s13 }
 0x138   : > { %p10_p0 = scmp.ge.s32.totalorder %s13_s18, 30   ;;  %s999_s13 = smov %s924_s25 }
 0x139   : > { %s1000_s14 = smov %s842_s16  ;;  %s1001_s15 = smov %s846_s17 }
 0x13a   : > { %s1002_s16 = smov %s1005_s19  ;;  %s1003_s17 = smov %s1009_s20 }
 0x13b   :  { %12 = sbr.rel (!%p10_p0) target bundleno = 4 (0x4), region = 122 }

// kernel: spiking_flownet_forward.51
= control target key start
LH: loop header
LB: loop body
LE: loop exit
PB: predicated region body
PF: predicated region fallthrough
CT: control target
= control target key end

     0   :  { %s790_s9 = smov 0   ;;  %s792_s10 = smov 0   ;;  %s908_s0 = inlined_call_operand.vmem [shape: bf16[4,32,896], index: 0, kind: input, shape index: {}]   ;;  %s909_s1 = inlined_call_operand.vmem [shape: bf16[4,896,128], index: 1, kind: input, shape index: {}]   ;;  %s910_s2 = inlined_call_operand.vmem [shape: f32[4,32,128], index: 2, kind: output, shape index: {}]  }
   0x1   :  { %s794_s11 = smov 0   ;;  %s796_s12 = smov 0  }
   0x2   :  { %s798_s13 = smov 0   ;;  %s800_s14 = smov 0  }
   0x3   :  { %s802_s15 = smov 0  }
   0x4 LB: > { %s27_s16 = sadd.s32 1, %s764_s13  ;;  %s38_s17 = sadd.s32 1, %s768_s14  ;;  %s772_s15 = sphi %s802_s15, %s12_s15   ;;  %s768_s14 = sphi %s800_s14, %s916_s14   ;;  %s764_s13 = sphi %s798_s13, %s915_s13   ;;  %s760_s12 = sphi %s796_s12, %s914_s12   ;;  %s756_s11 = sphi %s794_s11, %s913_s11   ;;  %s752_s10 = sphi %s792_s10, %s912_s10   ;;  %s748_s9 = sphi %s790_s9, %s911_s9  }
   0x5   : > { %p28_p0 = scmp.ge.s32.totalorder %s27_s16, 7  ;;  %p56_p1 = scmp.ne.s32.totalorder %s752_s10, %s748_s9 }
   0x6   : > { %p57_p2 = scmp.eq.s32.totalorder %s772_s15, 0  ;;  %s49_s21 = sadd.s32 1, %s752_s10 }
   0x7   : > { %s918_s16 = smov (%p28_p0, %s27_s16), 0  ;;  %s920_s17 = smov (!%p28_p0, %s38_s17), %s768_s14 }
   0x8   : > { %p58_p3 = por %p57_p2, %p56_p1  ;;  %p40_p4 = scmp.ge.s32.totalorder %s920_s17, 4 }
   0x9   : > { %s45_s18 = ssub.s32 %s764_s13, %s918_s16  ;;  %p595_p6 = scmp.ge.s32.totalorder %s772_s15, 28 }
   0xa   : > { %s922_s17 = smov (%p40_p4, %s920_s17), 0 }
   0xb   : > { %s42_s19 = ssub.s32 %s768_s14, %s922_s17  ;;  %142 = sbr.rel (%p595_p6) target bundleno = 27 (0x1b), region = 16 }
   0xc   : > { %s46_s20 = sor.u32 %s45_s18, %s42_s19 }
   0xd   : > { %p47_p5 = scmp.eq.s32.totalorder %s46_s20, 0 }
   0xf   : > { %s841_s22 = scalar_select %p47_p5, %s752_s10, %s49_s21  }
  0x12   : > { %145 = sbr.rel (!%p58_p3) target bundleno = 27 (0x1b), region = 20  ;;  %s147_s23 = sand.u32 (%p58_p3), 1, %s752_s10  }
  0x13   : > { %s649_s24 = smul.u32 (%p58_p3), 28, %s768_s14  ;;  %s596_s25 = sshll.u32 (%p58_p3), %s147_s23, 4 }
  0x14   : > { %s149_s3 = scalar_lea.vmem (%p58_p3), [#allocation3], %s596_s25 }
  0x15   : > { %s154_s26 = sadd.s32 (%p58_p3), %s764_s13, %s649_s24 }
  0x16   : > { %s597_s27 = sshll.u32 (%p58_p3), %s154_s26, 2 }
  0x17   : > { %s156_s30 = scalar_lea.vmem (%p58_p3), %s908_s0, %s597_s27 }
  0x18   : > { %v172_v0 = vld [vmem:[%s156_s30] sm:$0xf] (%p58_p3)  ;;  %v174_v1 = vld [vmem:[%s156_s30 + $0x1c] sm:$0xf] (%p58_p3)  ;;  %v176_v2 = vld [vmem:[%s156_s30 + $0x38] sm:$0xf] (%p58_p3) }
  0x19   : > { %173 = vst [vmem:[%s149_s3] sm:$0xf] %v172_v0  ;;  %175 = vst [vmem:[%s149_s3 + $0x4] sm:$0xf] %v174_v1  ;;  %v178_v3 = vld [vmem:[%s156_s30 + $0x54] sm:$0xf] }
  0x1a   : > { %177 = vst [vmem:[%s149_s3 + $0x8] sm:$0xf] %v176_v2  ;;  %179 = vst [vmem:[%s149_s3 + $0xc] sm:$0xf] %v178_v3 }
  0x1b PF: > { %p598_p7 = scmp.ge.s32.totalorder %s772_s15, 1  ;;  %p225_p8 = scmp.lt.s32.totalorder %s772_s15, 29 }
  0x1d   : > { %p226_p9 = pnand %p598_p7, %p225_p8 }
  0x1e   : > { %s232_s4 = sand.u32 (!%p226_p9), 1, %s748_s9   ;;  %s600_s5 = sshll.u32 (!%p226_p9), %s756_s11, 4 }
  0x1f   : > { %229 = sbr.rel (%p226_p9) target bundleno = 306 (0x132), region = 65  ;;  %s854_s6 = sshll.u32 (!%p226_p9), %s232_s4, 4 }
  0x20   : > { %p274_p10 = scmp.lt.s32.totalorder (!%p226_p9), %s760_s12, 3  ;;  %p276_p11 = scmp.lt.s32.totalorder (!%p226_p9), %s600_s5, 111 }
  0x21   : > { %s234_s26 = scalar_lea.vmem (!%p226_p9), [#allocation3], %s854_s6  ;;  %p604_p12 = scmp.ne.s32.totalorder (!%p226_p9), %s756_s11, 0 }
  0x26   : > { %s924_s12 = smov (!%p274_p10, %s760_s12), 3  ;;  %s926_s5 = smov (!%p276_p11, %s600_s5), 111 }
  0x27   : > { %s650_s7 = smul.u32 112, %s924_s12  ;;  %s618_s8 = sshll.u32 %s924_s12, 5  ;;  %v774_v4 = vmov (!%p604_p12), 0.0  }
  0x28   : > { %s861_s20 = scalar_lea.vmem %s910_s2, %s618_s8  ;;  %303 = sbr.rel (%p604_p12) target bundleno = 47 (0x2f), region = 73  ;;  %304 = vst [vmem:[#allocation2] sm:$0xff] (!%p604_p12), %v774_v4  ;;  %305 = vst [vmem:[#allocation2 + $0x8] sm:$0xff] (!%p604_p12), %v774_v4 }
  0x29   : > { %s282_s21 = sadd.s32 %s650_s7, %s926_s5  ;;  %306 = vst [vmem:[#allocation2 + $0x10] sm:$0xff] (!%p604_p12), %v774_v4  ;;  %307 = vst [vmem:[#allocation2 + $0x18] sm:$0xff] (!%p604_p12), %v774_v4 }
  0x2a   : > { %s601_s23 = sshll.u32 %s282_s21, 2 }
  0x2b   : > { %s866_s9 = scalar_lea.vmem %s909_s1, %s601_s23 }
  0x2f PF: > { %v708_v5 = vld [vmem:[%s866_s9] sm:$0xff]   ;;  %v709_v6 = vld [vmem:[%s866_s9 + $0x8] sm:$0xff]   ;;  %v710_v7 = vld [vmem:[%s866_s9 + $0x10] sm:$0xff]   ;;  %p615_p13 = scmp.ne.s32.totalorder %s756_s11, 6 }
  0x30   : > { %629 = vmatprep.subr.bf16.mxu0 %v708_v5  ;;  %v711_v8 = vld [vmem:[%s866_s9 + $0x18] sm:$0xff]   ;;  %v716_v9 = vld [vmem:[%s234_s26] sm:$0xff]   ;;  %v713_v11 = vld [vmem:[%s866_s9 + $0x28] sm:$0xff]  }
  0x31   : > { %630 = vmatpush3.bf16.msra.mxu0 %v708_v5  ;;  %645 = vmatprep.mubr.bf16.mxu0 %v716_v9  ;;  %v712_v10 = vld [vmem:[%s866_s9 + $0x20] sm:$0xff]   ;;  %v714_v12 = vld [vmem:[%s866_s9 + $0x30] sm:$0xff]   ;;  %v715_v13 = vld [vmem:[%s866_s9 + $0x38] sm:$0xff]  }
  0x32   : > { %631 = vmatprep.subr.bf16.mxu0 %v709_v6  ;;  %v717_v14 = vld [vmem:[%s234_s26 + $0x8] sm:$0xff]   ;;  %v310_v15 = vld [vmem:[#allocation2 + $0x10] sm:$0xff]  ;;  %v308_v16 = vld [vmem:[#allocation2] sm:$0xff] }
  0x33   : > { %v311_v18 = vld [vmem:[#allocation2 + $0x18] sm:$0xff]  ;;  %v309_v21 = vld [vmem:[#allocation2 + $0x8] sm:$0xff] }
  0x35   : > { %632 = vmatpush3.bf16.msra.mxu0 %v709_v6 }
  0x36   : > { %633 = vmatprep.subr.bf16.mxu0 %v710_v7 }
  0x39   : > { %634 = vmatpush3.bf16.msra.mxu0 %v710_v7 }
  0x3a   : > { %635 = vmatprep.subr.bf16.mxu0 %v711_v8 }
  0x3d   : > { %636 = vmatpush3.bf16.msra.mxu0 %v711_v8 }
  0x3e   : > { %637 = vmatprep.subr.bf16.mxu0 %v712_v10 }
  0x41   : > { %638 = vmatpush3.bf16.msra.mxu0 %v712_v10 }
  0x42   : > { %639 = vmatprep.subr.bf16.mxu0 %v713_v11 }
  0x45   : > { %640 = vmatpush3.bf16.msra.mxu0 %v713_v11 }
  0x46   : > { %641 = vmatprep.subr.bf16.mxu0 %v714_v12 }
  0x49   : > { %642 = vmatpush3.bf16.msra.mxu0 %v714_v12 }
  0x4a   : > { %643 = vmatprep.subr.bf16.mxu0 %v715_v13 }
  0x4d   : > { %644 = vmatpush3.bf16.msra.mxu0 %v715_v13 }
  0x50   : > { %646 = vmatmul.mubr.bf16.vlgmr.msra.gmra.mrb[0].mxu0 %v717_v14 }
 0x123   : > { %v647_v17 = vpop.f32.mrb[0].mxu0  ;;  %452 = sbr.rel (%p615_p13) target bundleno = 306 (0x132), region = 77 }
 0x124   : > { %v443_v19 = vadd.f32 %v647_v17, %v310_v15  ;;  %v426_v20 = vpop.f32.mrb[1].mxu0 }
 0x125   : > { %v441_v22 = vadd.f32 %v426_v20, %v308_v16  ;;  %v648_v23 = vpop.f32.mrb[2].mxu0 }
 0x126   : > { %447 = vst [vmem:[#allocation2 + $0x10] sm:$0xff] %v443_v19  ;;  %v444_v24 = vadd.f32 %v648_v23, %v311_v18  ;;  %v429_v25 = vpop.f32.mrb[3].mxu0 }
 0x127   : > { %445 = vst [vmem:[#allocation2] sm:$0xff] %v441_v22  ;;  %v442_v26 = vadd.f32 %v429_v25, %v309_v21 }
 0x128   : > { %448 = vst [vmem:[#allocation2 + $0x18] sm:$0xff] %v444_v24 }
 0x129   : > { %446 = vst [vmem:[#allocation2 + $0x8] sm:$0xff] %v442_v26 }
 0x12d   : > { %v455_v29 = vld [vmem:[#allocation2 + $0x10] sm:$0xff] }
 0x12e   : > { %v453_v27 = vld [vmem:[#allocation2] sm:$0xff]  ;;  %459 = vst [vmem:[%s861_s20 + $0x10] sm:$0xff] %v455_v29 }
 0x12f   : > { %457 = vst [vmem:[%s861_s20] sm:$0xff] %v453_v27  ;;  %v456_v30 = vld [vmem:[#allocation2 + $0x18] sm:$0xff] }
 0x130   : > { %v454_v28 = vld [vmem:[#allocation2 + $0x8] sm:$0xff]  ;;  %460 = vst [vmem:[%s861_s20 + $0x18] sm:$0xff] %v456_v30 }
 0x131   : > { %458 = vst [vmem:[%s861_s20 + $0x8] sm:$0xff] %v454_v28 }
 0x132 PF: > { %s12_s15 = sadd.s32 1, %s772_s15   ;;  %s911_s9 = smov %s752_s10 }
 0x133   : > { %p9_p0 = scmp.ge.s32.totalorder %s12_s15, 30   ;;  %s912_s10 = smov %s841_s22 }
 0x134   : > { %s913_s11 = smov %s764_s13  ;;  %s914_s12 = smov %s768_s14 }
 0x135   : > { %s915_s13 = smov %s918_s16  ;;  %s916_s14 = smov %s922_s17 }
 0x136   :  { %11 = sbr.rel (!%p9_p0) target bundleno = 4 (0x4), region = 115 }

// kernel: spiking_flownet_forward.53
= control target key start
LH: loop header
LB: loop body
LE: loop exit
PB: predicated region body
PF: predicated region fallthrough
CT: control target
= control target key end

     0   :  { %s1052_s9 = smov 0   ;;  %s1054_s10 = smov 0   ;;  %s1203_s0 = inlined_call_operand.vmem [shape: bf16[4,128,384], index: 0, kind: input, shape index: {}]   ;;  %s1204_s1 = inlined_call_operand.vmem [shape: bf16[4,384,128], index: 1, kind: input, shape index: {}]   ;;  %s1205_s2 = inlined_call_operand.vmem [shape: f32[4,128,128], index: 2, kind: output, shape index: {}]  }
   0x1   :  { %s1056_s11 = smov 0   ;;  %s1058_s12 = smov 0  }
   0x2   :  { %s1060_s13 = smov 0   ;;  %s1062_s14 = smov 0  }
   0x3   :  { %s1064_s15 = smov 0  }
   0x4 LB: > { %s27_s16 = sadd.s32 1, %s1026_s13  ;;  %s38_s17 = sadd.s32 1, %s1030_s14  ;;  %s1034_s15 = sphi %s1064_s15, %s12_s15   ;;  %s1030_s14 = sphi %s1062_s14, %s1211_s14   ;;  %s1026_s13 = sphi %s1060_s13, %s1210_s13   ;;  %s1022_s12 = sphi %s1058_s12, %s1209_s12   ;;  %s1018_s11 = sphi %s1056_s11, %s1208_s11   ;;  %s1014_s10 = sphi %s1054_s10, %s1207_s10   ;;  %s1010_s9 = sphi %s1052_s9, %s1206_s9  }
   0x5   : > { %p28_p0 = scmp.ge.s32.totalorder %s27_s16, 3  ;;  %p56_p1 = scmp.ne.s32.totalorder %s1014_s10, %s1010_s9 }
   0x6   : > { %p57_p2 = scmp.eq.s32.totalorder %s1034_s15, 0  ;;  %s49_s21 = sadd.s32 1, %s1014_s10 }
   0x7   : > { %s1213_s16 = smov (%p28_p0, %s27_s16), 0  ;;  %s1215_s17 = smov (!%p28_p0, %s38_s17), %s1030_s14 }
   0x8   : > { %p58_p3 = por %p57_p2, %p56_p1  ;;  %p40_p4 = scmp.ge.s32.totalorder %s1215_s17, 4 }
   0x9   : > { %s45_s18 = ssub.s32 %s1026_s13, %s1213_s16  ;;  %p811_p6 = scmp.ge.s32.totalorder %s1034_s15, 12 }
   0xa   : > { %s1217_s17 = smov (%p40_p4, %s1215_s17), 0 }
   0xb   : > { %s42_s19 = ssub.s32 %s1030_s14, %s1217_s17  ;;  %142 = sbr.rel (%p811_p6) target bundleno = 35 (0x23), region = 16 }
   0xc   : > { %s46_s20 = sor.u32 %s45_s18, %s42_s19 }
   0xd   : > { %p47_p5 = scmp.eq.s32.totalorder %s46_s20, 0 }
   0xf   : > { %s1103_s22 = scalar_select %p47_p5, %s1014_s10, %s49_s21  }
  0x12   : > { %145 = sbr.rel (!%p58_p3) target bundleno = 35 (0x23), region = 20  ;;  %s147_s23 = sand.u32 (%p58_p3), 1, %s1014_s10  }
  0x13   : > { %s905_s24 = smul.u32 (%p58_p3), 48, %s1030_s14  ;;  %s812_s25 = sshll.u32 (%p58_p3), %s147_s23, 6 }
  0x14   : > { %s149_s3 = scalar_lea.vmem (%p58_p3), [#allocation3], %s812_s25 }
  0x15   : > { %s154_s26 = sadd.s32 (%p58_p3), %s1026_s13, %s905_s24 }
  0x16   : > { %s813_s27 = sshll.u32 (%p58_p3), %s154_s26, 2 }
  0x17   : > { %s1112_s30 = scalar_lea.vmem (%p58_p3), %s1203_s0, %s813_s27 }
  0x18   : > { %v172_v0 = vld [vmem:[%s1112_s30] sm:$0xf] (%p58_p3)  ;;  %v174_v1 = vld [vmem:[%s1112_s30 + $0xc] sm:$0xf] (%p58_p3)  ;;  %v176_v2 = vld [vmem:[%s1112_s30 + $0x18] sm:$0xf] (%p58_p3) }
  0x19   : > { %173 = vst [vmem:[%s149_s3] sm:$0xf] %v172_v0  ;;  %175 = vst [vmem:[%s149_s3 + $0x4] sm:$0xf] %v174_v1  ;;  %v178_v3 = vld [vmem:[%s1112_s30 + $0x24] sm:$0xf] }
  0x1a   : > { %177 = vst [vmem:[%s149_s3 + $0x8] sm:$0xf] %v176_v2  ;;  %v180_v4 = vld [vmem:[%s1112_s30 + $0x30] sm:$0xf]  ;;  %v182_v5 = vld [vmem:[%s1112_s30 + $0x3c] sm:$0xf] }
  0x1b   : > { %179 = vst [vmem:[%s149_s3 + $0xc] sm:$0xf] %v178_v3  ;;  %181 = vst [vmem:[%s149_s3 + $0x10] sm:$0xf] %v180_v4  ;;  %v184_v6 = vld [vmem:[%s1112_s30 + $0x48] sm:$0xf] }
  0x1c   : > { %183 = vst [vmem:[%s149_s3 + $0x14] sm:$0xf] %v182_v5  ;;  %v186_v7 = vld [vmem:[%s1112_s30 + $0x54] sm:$0xf]  ;;  %v188_v8 = vld [vmem:[%s1112_s30 + $0x60] sm:$0xf] }
  0x1d   : > { %185 = vst [vmem:[%s149_s3 + $0x18] sm:$0xf] %v184_v6  ;;  %187 = vst [vmem:[%s149_s3 + $0x1c] sm:$0xf] %v186_v7  ;;  %v190_v9 = vld [vmem:[%s1112_s30 + $0x6c] sm:$0xf] }
  0x1e   : > { %189 = vst [vmem:[%s149_s3 + $0x20] sm:$0xf] %v188_v8  ;;  %v192_v10 = vld [vmem:[%s1112_s30 + $0x78] sm:$0xf]  ;;  %v194_v11 = vld [vmem:[%s1112_s30 + $0x84] sm:$0xf] }
  0x1f   : > { %191 = vst [vmem:[%s149_s3 + $0x24] sm:$0xf] %v190_v9  ;;  %193 = vst [vmem:[%s149_s3 + $0x28] sm:$0xf] %v192_v10  ;;  %v196_v12 = vld [vmem:[%s1112_s30 + $0x90] sm:$0xf] }
  0x20   : > { %195 = vst [vmem:[%s149_s3 + $0x2c] sm:$0xf] %v194_v11  ;;  %v198_v13 = vld [vmem:[%s1112_s30 + $0x9c] sm:$0xf]  ;;  %v200_v14 = vld [vmem:[%s1112_s30 + $0xa8] sm:$0xf] }
  0x21   : > { %197 = vst [vmem:[%s149_s3 + $0x30] sm:$0xf] %v196_v12  ;;  %199 = vst [vmem:[%s149_s3 + $0x34] sm:$0xf] %v198_v13  ;;  %v202_v15 = vld [vmem:[%s1112_s30 + $0xb4] sm:$0xf] }
  0x22   : > { %201 = vst [vmem:[%s149_s3 + $0x38] sm:$0xf] %v200_v14  ;;  %203 = vst [vmem:[%s149_s3 + $0x3c] sm:$0xf] %v202_v15 }
  0x23 PF: > { %p814_p7 = scmp.ge.s32.totalorder %s1034_s15, 1  ;;  %p273_p8 = scmp.lt.s32.totalorder %s1034_s15, 13 }
  0x25   : > { %p274_p9 = pnand %p814_p7, %p273_p8 }
  0x26   : > { %s280_s4 = sand.u32 (!%p274_p9), 1, %s1010_s9   ;;  %s816_s5 = sshll.u32 (!%p274_p9), %s1018_s11, 4 }
  0x27   : > { %277 = sbr.rel (%p274_p9) target bundleno = 324 (0x144), region = 65  ;;  %s815_s6 = sshll.u32 (!%p274_p9), %s280_s4, 6 }
  0x28   : > { %p322_p10 = scmp.lt.s32.totalorder (!%p274_p9), %s1022_s12, 3  ;;  %p324_p11 = scmp.lt.s32.totalorder (!%p274_p9), %s816_s5, 47 }
  0x29   : > { %s1146_s9 = scalar_lea.vmem (!%p274_p9), [#allocation3], %s815_s6  ;;  %p820_p12 = scmp.ne.s32.totalorder (!%p274_p9), %s1018_s11, 0 }
  0x2e   : > { %s1219_s12 = smov (!%p322_p10, %s1022_s12), 3  ;;  %s1221_s5 = smov (!%p324_p11, %s816_s5), 47 }
  0x2f   : > { %s906_s7 = smul.u32 48, %s1219_s12  ;;  %s840_s8 = sshll.u32 %s1219_s12, 7  ;;  %v1036_v16 = vmov (!%p820_p12), 0.0  }
  0x30   : > { %s1139_s20 = scalar_lea.vmem %s1205_s2, %s840_s8  ;;  %351 = sbr.rel (%p820_p12) target bundleno = 56 (0x38), region = 73  ;;  %352 = vst [vmem:[#allocation2] sm:$0xff] (!%p820_p12), %v1036_v16  ;;  %353 = vst [vmem:[#allocation2 + $0x8] sm:$0xff] (!%p820_p12), %v1036_v16 }
  0x31   : > { %s330_s21 = sadd.s32 %s906_s7, %s1221_s5  ;;  %354 = vst [vmem:[#allocation2 + $0x10] sm:$0xff] (!%p820_p12), %v1036_v16  ;;  %355 = vst [vmem:[#allocation2 + $0x18] sm:$0xff] (!%p820_p12), %v1036_v16 }
  0x32   : > { %s817_s23 = sshll.u32 %s330_s21, 2  ;;  %356 = vst [vmem:[#allocation2 + $0x20] sm:$0xff] (!%p820_p12), %v1036_v16  ;;  %357 = vst [vmem:[#allocation2 + $0x28] sm:$0xff] (!%p820_p12), %v1036_v16 }
  0x33   : > { %s1144_s26 = scalar_lea.vmem %s1204_s1, %s817_s23  ;;  %358 = vst [vmem:[#allocation2 + $0x30] sm:$0xff] (!%p820_p12), %v1036_v16  ;;  %359 = vst [vmem:[#allocation2 + $0x38] sm:$0xff] (!%p820_p12), %v1036_v16 }
  0x34   : > { %360 = vst [vmem:[#allocation2 + $0x40] sm:$0xff] (!%p820_p12), %v1036_v16  ;;  %361 = vst [vmem:[#allocation2 + $0x48] sm:$0xff] (!%p820_p12), %v1036_v16 }
  0x35   : > { %362 = vst [vmem:[#allocation2 + $0x50] sm:$0xff] (!%p820_p12), %v1036_v16  ;;  %363 = vst [vmem:[#allocation2 + $0x58] sm:$0xff] (!%p820_p12), %v1036_v16 }
  0x36   : > { %364 = vst [vmem:[#allocation2 + $0x60] sm:$0xff] (!%p820_p12), %v1036_v16  ;;  %365 = vst [vmem:[#allocation2 + $0x68] sm:$0xff] (!%p820_p12), %v1036_v16 }
  0x37   : > { %366 = vst [vmem:[#allocation2 + $0x70] sm:$0xff] %v1036_v16  ;;  %367 = vst [vmem:[#allocation2 + $0x78] sm:$0xff] %v1036_v16 }
  0x38 PF: > { %v964_v17 = vld [vmem:[%s1144_s26] sm:$0xff]   ;;  %v965_v18 = vld [vmem:[%s1144_s26 + $0x8] sm:$0xff]   ;;  %v966_v19 = vld [vmem:[%s1144_s26 + $0x10] sm:$0xff]   ;;  %p837_p13 = scmp.ne.s32.totalorder %s1018_s11, 2 }
  0x39   : > { %857 = vmatprep.subr.bf16.mxu0 %v964_v17  ;;  %889 = vmatprep.subr.bf16.mxu1 %v964_v17  ;;  %v967_v20 = vld [vmem:[%s1144_s26 + $0x18] sm:$0xff]   ;;  %v972_v21 = vld [vmem:[%s1146_s9] sm:$0xff]   ;;  %v969_v24 = vld [vmem:[%s1144_s26 + $0x28] sm:$0xff]  }
  0x3a   : > { %858 = vmatpush3.bf16.msra.mxu0 %v964_v17  ;;  %897 = vmatpush3.bf16.msra.mxu1 %v964_v17  ;;  %v973_v22 = vld [vmem:[%s1146_s9 + $0x20] sm:$0xff]   ;;  %v970_v25 = vld [vmem:[%s1144_s26 + $0x30] sm:$0xff]   ;;  %v971_v26 = vld [vmem:[%s1144_s26 + $0x38] sm:$0xff]  }
  0x3b   : > { %859 = vmatprep.subr.bf16.mxu0 %v965_v18  ;;  %890 = vmatprep.subr.bf16.mxu1 %v965_v18  ;;  %v968_v23 = vld [vmem:[%s1144_s26 + $0x20] sm:$0xff]   ;;  %v974_v27 = vld [vmem:[%s1146_s9 + $0x8] sm:$0xff]   ;;  %v976_v29 = vld [vmem:[%s1146_s9 + $0x10] sm:$0xff]  }
  0x3c   : > { %873 = vmatprep.mubr.bf16.mxu0 %v972_v21  ;;  %881 = vmatprep.mubr.bf16.mxu1 %v973_v22  ;;  %v975_v28 = vld [vmem:[%s1146_s9 + $0x28] sm:$0xff]   ;;  %v977_v30 = vld [vmem:[%s1146_s9 + $0x30] sm:$0xff]   ;;  %v978_v31 = vld [vmem:[%s1146_s9 + $0x18] sm:$0xff]  }
  0x3d   : > { %v979_v32 = vld [vmem:[%s1146_s9 + $0x38] sm:$0xff]   ;;  %v370_v33 = vld [vmem:[#allocation2 + $0x10] sm:$0xff]  ;;  %v368_v35 = vld [vmem:[#allocation2] sm:$0xff] }
  0x3e   : > { %860 = vmatpush3.bf16.msra.mxu0 %v965_v18  ;;  %898 = vmatpush3.bf16.msra.mxu1 %v965_v18  ;;  %v378_v34 = vld [vmem:[#allocation2 + $0x50] sm:$0xff]  ;;  %v376_v36 = vld [vmem:[#allocation2 + $0x40] sm:$0xff]  ;;  %v371_v39 = vld [vmem:[#allocation2 + $0x18] sm:$0xff] }
  0x3f   : > { %861 = vmatprep.subr.bf16.mxu0 %v966_v19  ;;  %891 = vmatprep.subr.bf16.mxu1 %v966_v19  ;;  %v379_v40 = vld [vmem:[#allocation2 + $0x58] sm:$0xff]  ;;  %v369_v45 = vld [vmem:[#allocation2 + $0x8] sm:$0xff]  ;;  %v374_v57 = vld [vmem:[#allocation2 + $0x30] sm:$0xff] }
  0x40   : > { %v377_v46 = vld [vmem:[#allocation2 + $0x48] sm:$0xff]  ;;  %v382_v58 = vld [vmem:[#allocation2 + $0x70] sm:$0xff]  ;;  %v372_v59 = vld [vmem:[#allocation2 + $0x20] sm:$0xff] }
  0x41   : > { %v380_v60 = vld [vmem:[#allocation2 + $0x60] sm:$0xff]  ;;  %v375_v63 = vld [vmem:[#allocation2 + $0x38] sm:$0xff]  ;;  %v373_v5 = vld [vmem:[#allocation2 + $0x28] sm:$0xff] }
  0x42   : > { %862 = vmatpush3.bf16.msra.mxu0 %v966_v19  ;;  %899 = vmatpush3.bf16.msra.mxu1 %v966_v19  ;;  %v383_v0 = vld [vmem:[#allocation2 + $0x78] sm:$0xff]  ;;  %v381_v6 = vld [vmem:[#allocation2 + $0x68] sm:$0xff] }
  0x43   : > { %863 = vmatprep.subr.bf16.mxu0 %v967_v20  ;;  %892 = vmatprep.subr.bf16.mxu1 %v967_v20 }
  0x46   : > { %864 = vmatpush3.bf16.msra.mxu0 %v967_v20  ;;  %900 = vmatpush3.bf16.msra.mxu1 %v967_v20 }
  0x47   : > { %865 = vmatprep.subr.bf16.mxu0 %v968_v23  ;;  %893 = vmatprep.subr.bf16.mxu1 %v968_v23 }
  0x4a   : > { %866 = vmatpush3.bf16.msra.mxu0 %v968_v23  ;;  %901 = vmatpush3.bf16.msra.mxu1 %v968_v23 }
  0x4b   : > { %867 = vmatprep.subr.bf16.mxu0 %v969_v24  ;;  %894 = vmatprep.subr.bf16.mxu1 %v969_v24 }
  0x4e   : > { %868 = vmatpush3.bf16.msra.mxu0 %v969_v24  ;;  %902 = vmatpush3.bf16.msra.mxu1 %v969_v24 }
  0x4f   : > { %869 = vmatprep.subr.bf16.mxu0 %v970_v25  ;;  %895 = vmatprep.subr.bf16.mxu1 %v970_v25 }
  0x52   : > { %870 = vmatpush3.bf16.msra.mxu0 %v970_v25  ;;  %903 = vmatpush3.bf16.msra.mxu1 %v970_v25 }
  0x53   : > { %871 = vmatprep.subr.bf16.mxu0 %v971_v26  ;;  %896 = vmatprep.subr.bf16.mxu1 %v971_v26 }
  0x56   : > { %872 = vmatpush3.bf16.msra.mxu0 %v971_v26  ;;  %904 = vmatpush3.bf16.msra.mxu1 %v971_v26 }
  0x59   : > { %874 = vmatmul.mubr.bf16.vlgmr.msra.gmra.mrb[0].mxu0 %v974_v27  ;;  %882 = vmatmul.mubr.bf16.vlgmr.msra.gmra.mrb[0].mxu1 %v975_v28 }
  0x5a   : > { %877 = vmatprep.mubr.bf16.mxu0 %v976_v29  ;;  %885 = vmatprep.mubr.bf16.mxu1 %v977_v30 }
  0x61   : > { %878 = vmatmul.mubr.bf16.gmra.mrb[4].mxu0 %v978_v31  ;;  %886 = vmatmul.mubr.bf16.gmra.mrb[4].mxu1 %v979_v32 }
 0x12c   : > { %v875_v37 = vpop.f32.mrb[0].mxu0  ;;  %v883_v38 = vpop.f32.mrb[0].mxu1 }
 0x12d   : > { %v611_v41 = vadd.f32 %v875_v37, %v370_v33  ;;  %v619_v42 = vadd.f32 %v883_v38, %v378_v34  ;;  %v546_v43 = vpop.f32.mrb[1].mxu0  ;;  %v578_v44 = vpop.f32.mrb[1].mxu1 }
 0x12e   : > { %v609_v47 = vadd.f32 %v546_v43, %v368_v35  ;;  %v617_v48 = vadd.f32 %v578_v44, %v376_v36  ;;  %v876_v49 = vpop.f32.mrb[2].mxu0  ;;  %v884_v50 = vpop.f32.mrb[2].mxu1 }
 0x12f   : > { %627 = vst [vmem:[#allocation2 + $0x10] sm:$0xff] %v611_v41  ;;  %635 = vst [vmem:[#allocation2 + $0x50] sm:$0xff] %v619_v42  ;;  %v612_v51 = vadd.f32 %v876_v49, %v371_v39  ;;  %v620_v52 = vadd.f32 %v884_v50, %v379_v40  ;;  %v549_v53 = vpop.f32.mrb[3].mxu0  ;;  %v581_v54 = vpop.f32.mrb[3].mxu1 }
 0x130   : > { %625 = vst [vmem:[#allocation2] sm:$0xff] %v609_v47  ;;  %633 = vst [vmem:[#allocation2 + $0x40] sm:$0xff] %v617_v48  ;;  %v610_v55 = vadd.f32 %v549_v53, %v369_v45  ;;  %v618_v56 = vadd.f32 %v581_v54, %v377_v46 }
 0x131   : > { %628 = vst [vmem:[#allocation2 + $0x18] sm:$0xff] %v612_v51  ;;  %636 = vst [vmem:[#allocation2 + $0x58] sm:$0xff] %v620_v52 }
 0x132   : > { %626 = vst [vmem:[#allocation2 + $0x8] sm:$0xff] %v610_v55  ;;  %634 = vst [vmem:[#allocation2 + $0x48] sm:$0xff] %v618_v56 }
 0x134   : > { %v879_v61 = vpop.f32.mrb[4].mxu0  ;;  %v887_v62 = vpop.f32.mrb[4].mxu1  ;;  %644 = sbr.rel (%p837_p13) target bundleno = 324 (0x144), region = 77 }
 0x135   : > { %v615_v1 = vadd.f32 %v879_v61, %v374_v57  ;;  %v623_v2 = vadd.f32 %v887_v62, %v382_v58  ;;  %v562_v3 = vpop.f32.mrb[5].mxu0  ;;  %v594_v4 = vpop.f32.mrb[5].mxu1 }
 0x136   : > { %v613_v7 = vadd.f32 %v562_v3, %v372_v59  ;;  %v621_v8 = vadd.f32 %v594_v4, %v380_v60  ;;  %v880_v9 = vpop.f32.mrb[6].mxu0  ;;  %v888_v10 = vpop.f32.mrb[6].mxu1  ;;  %v647_v19 = vld [vmem:[#allocation2 + $0x10] sm:$0xff] (!%p837_p13) }
 0x137   : > { %631 = vst [vmem:[#allocation2 + $0x30] sm:$0xff] %v615_v1  ;;  %639 = vst [vmem:[#allocation2 + $0x70] sm:$0xff] %v623_v2  ;;  %v616_v11 = vadd.f32 %v880_v9, %v375_v63  ;;  %v624_v12 = vadd.f32 %v888_v10, %v383_v0  ;;  %v565_v13 = vpop.f32.mrb[7].mxu0  ;;  %v597_v14 = vpop.f32.mrb[7].mxu1  ;;  %v645_v17 = vld [vmem:[#allocation2] sm:$0xff] (!%p837_p13)  ;;  %v655_v27 = vld [vmem:[#allocation2 + $0x50] sm:$0xff] (!%p837_p13) }
 0x138   : > { %629 = vst [vmem:[#allocation2 + $0x20] sm:$0xff] %v613_v7  ;;  %637 = vst [vmem:[#allocation2 + $0x60] sm:$0xff] %v621_v8  ;;  %v614_v15 = vadd.f32 %v565_v13, %v373_v5  ;;  %v622_v16 = vadd.f32 %v597_v14, %v381_v6  ;;  %v648_v20 = vld [vmem:[#allocation2 + $0x18] sm:$0xff] (!%p837_p13)  ;;  %v653_v25 = vld [vmem:[#allocation2 + $0x40] sm:$0xff] (!%p837_p13) }
 0x139   : > { %632 = vst [vmem:[#allocation2 + $0x38] sm:$0xff] %v616_v11  ;;  %640 = vst [vmem:[#allocation2 + $0x78] sm:$0xff] %v624_v12  ;;  %v646_v18 = vld [vmem:[#allocation2 + $0x8] sm:$0xff] (!%p837_p13)  ;;  %v656_v28 = vld [vmem:[#allocation2 + $0x58] sm:$0xff] (!%p837_p13) }
 0x13a   : > { %630 = vst [vmem:[#allocation2 + $0x28] sm:$0xff] %v614_v15  ;;  %638 = vst [vmem:[#allocation2 + $0x68] sm:$0xff] %v622_v16  ;;  %v654_v26 = vld [vmem:[#allocation2 + $0x48] sm:$0xff] (!%p837_p13) }
 0x13b   : > { %661 = vst [vmem:[%s1139_s20] sm:$0xff] %v645_v17  ;;  %662 = vst [vmem:[%s1139_s20 + $0x8] sm:$0xff] %v646_v18 }
 0x13c   : > { %663 = vst [vmem:[%s1139_s20 + $0x10] sm:$0xff] %v647_v19  ;;  %664 = vst [vmem:[%s1139_s20 + $0x18] sm:$0xff] %v648_v20 }
 0x13d   : > { %669 = vst [vmem:[%s1139_s20 + $0x40] sm:$0xff] %v653_v25  ;;  %670 = vst [vmem:[%s1139_s20 + $0x48] sm:$0xff] %v654_v26 }
 0x13e   : > { %v651_v23 = vld [vmem:[#allocation2 + $0x30] sm:$0xff]  ;;  %671 = vst [vmem:[%s1139_s20 + $0x50] sm:$0xff] %v655_v27  ;;  %672 = vst [vmem:[%s1139_s20 + $0x58] sm:$0xff] %v656_v28 }
 0x13f   : > { %v649_v21 = vld [vmem:[#allocation2 + $0x20] sm:$0xff]  ;;  %667 = vst [vmem:[%s1139_s20 + $0x30] sm:$0xff] %v651_v23  ;;  %v659_v31 = vld [vmem:[#allocation2 + $0x70] sm:$0xff] }
 0x140   : > { %665 = vst [vmem:[%s1139_s20 + $0x20] sm:$0xff] %v649_v21  ;;  %v652_v24 = vld [vmem:[#allocation2 + $0x38] sm:$0xff]  ;;  %v657_v29 = vld [vmem:[#allocation2 + $0x60] sm:$0xff]  ;;  %675 = vst [vmem:[%s1139_s20 + $0x70] sm:$0xff] %v659_v31 }
 0x141   : > { %v650_v22 = vld [vmem:[#allocation2 + $0x28] sm:$0xff]  ;;  %668 = vst [vmem:[%s1139_s20 + $0x38] sm:$0xff] %v652_v24  ;;  %673 = vst [vmem:[%s1139_s20 + $0x60] sm:$0xff] %v657_v29  ;;  %v660_v32 = vld [vmem:[#allocation2 + $0x78] sm:$0xff] }
 0x142   : > { %666 = vst [vmem:[%s1139_s20 + $0x28] sm:$0xff] %v650_v22  ;;  %v658_v30 = vld [vmem:[#allocation2 + $0x68] sm:$0xff]  ;;  %676 = vst [vmem:[%s1139_s20 + $0x78] sm:$0xff] %v660_v32 }
 0x143   : > { %674 = vst [vmem:[%s1139_s20 + $0x68] sm:$0xff] %v658_v30 }
 0x144 PF: > { %s12_s15 = sadd.s32 1, %s1034_s15   ;;  %s1206_s9 = smov %s1014_s10 }
 0x145   : > { %p9_p0 = scmp.ge.s32.totalorder %s12_s15, 14   ;;  %s1207_s10 = smov %s1103_s22 }
 0x146   : > { %s1208_s11 = smov %s1026_s13  ;;  %s1209_s12 = smov %s1030_s14 }
 0x147   : > { %s1210_s13 = smov %s1213_s16  ;;  %s1211_s14 = smov %s1217_s17 }
 0x148   :  { %11 = sbr.rel (!%p9_p0) target bundleno = 4 (0x4), region = 115 }

</bundles_post_ra>
